<compile_context>
chip_gen: v7x
topology: tpu7x:2x2x1
jax: 0.10.0
libtpu: 0.0.40
codegen_flags: <defaults>
</compile_context>

<pallas_src>
import jax
import jax.numpy as jnp
from jax.experimental import pallas as pl
from jax.experimental.pallas import tpu as pltpu


IN_DIM = 784 * 3           # 2352 (flattened 3x28x28 image, matches x.view(-1, 784*3))
HIDDEN = 512
LATENT_DIM = 32
HEAD_OUT = 2 * LATENT_DIM  # fused [mu | logvar] head -> 64 output lanes
TM_MAX = 256               # row-tile size for large batches
B_SUBLANE = 16             # bf16 sublane packing for the x tile


def _round_up(n, m):
    return ((n + m - 1) // m) * m


def _swish(x):
    # Swish(x) = x * sigmoid(x); sigmoid lowers to the EUP (transcendental unit).
    return x * jax.nn.sigmoid(x)


def encoder_kernel(x_ref,
                   w1_ref, b1_ref,
                   w2_ref, b2_ref,
                   wh_ref, bh_ref,
                   out_ref):
    # fc1 + swish  (bf16 MXU inputs, f32 accumulation, f32 activation math)
    h = jnp.dot(x_ref[...], w1_ref[...], preferred_element_type=jnp.float32)  # (TM, 512)
    h = _swish(h + b1_ref[...])

    # fc2 + swish
    h = jnp.dot(h.astype(jnp.bfloat16), w2_ref[...],
                preferred_element_type=jnp.float32)                           # (TM, 512)
    h = _swish(h + b2_ref[...])

    # fused heads: [fc31 | fc32] in one matmul + one store
    out_ref[...] = (jnp.dot(h.astype(jnp.bfloat16), wh_ref[...],
                            preferred_element_type=jnp.float32)
                    + bh_ref[...]).astype(out_ref.dtype)                      # (TM, 64)


def prepare_params(p):
    """One-time packing: (in, out)-layout f32 params -> bf16 weights, f32 biases,
    fused [fc31 | fc32] head weight/bias."""
    wh = jnp.concatenate([p["w31"], p["w32"]], axis=1).astype(jnp.bfloat16)
    bh = jnp.concatenate([p["b31"], p["b32"]], axis=1).astype(jnp.float32)
    return dict(
        w1=p["w1"].astype(jnp.bfloat16), b1=p["b1"].astype(jnp.float32),
        w2=p["w2"].astype(jnp.bfloat16), b2=p["b2"].astype(jnp.float32),
        wh=wh, bh=bh,
    )


def _vmem_limit_bytes(tm):
    """VMEM budget derived from actual block sizes (+50% margin + scratch)."""
    w_bytes = (IN_DIM * HIDDEN + HIDDEN * HIDDEN + HIDDEN * HEAD_OUT) * 2   # bf16
    b_bytes = (2 * HIDDEN + HEAD_OUT) * 4                                   # f32
    x_tile = tm * IN_DIM * 2                                                # bf16
    o_tile = tm * HEAD_OUT * 4                                              # f32
    act = 3 * tm * HIDDEN * 4                                               # f32 intermediates
    total = 2 * (w_bytes + b_bytes + x_tile + o_tile) + act                 # 2x = double buffer
    return min(int(total * 1.5) + (2 << 20), 64 << 20)


def encoder_forward(x, packed):
    """x: (B, 2352) or (B, 3, 28, 28) float32. packed: output of prepare_params.
    Returns (mu, logvar), each (B, LATENT_DIM) float32."""
    x = x.reshape(-1, IN_DIM)              # mirrors x.view(-1, 784*3)
    B = x.shape[0]

    if B >= TM_MAX:
        TM = TM_MAX
        Bp = _round_up(B, TM)
    else:
        Bp = _round_up(B, B_SUBLANE)
        TM = Bp
    grid = (Bp // TM,)

    # Pad batch rows and cast to bf16 once in the wrapper (halves the x stream).
    xp = jnp.zeros((Bp, IN_DIM), jnp.bfloat16).at[:B].set(x.astype(jnp.bfloat16))

    # Split across both v7x TensorCores only when the batch is large enough to
    # amortize duplicating the resident weight set into both VMEMs.
    row_sem = "parallel" if Bp >= 1024 else "arbitrary"

    out = pl.pallas_call(
        encoder_kernel,
        out_shape=jax.ShapeDtypeStruct((Bp, HEAD_OUT), jnp.float32),
        grid_spec=pltpu.PrefetchScalarGridSpec(
            num_scalar_prefetch=0,
            grid=grid,
            in_specs=[
                pl.BlockSpec((TM, IN_DIM), lambda i: (i, 0)),        # x: tiled over rows
                pl.BlockSpec((IN_DIM, HIDDEN), lambda i: (0, 0)),    # w1: resident
                pl.BlockSpec((1, HIDDEN), lambda i: (0, 0)),         # b1
                pl.BlockSpec((HIDDEN, HIDDEN), lambda i: (0, 0)),    # w2: resident
                pl.BlockSpec((1, HIDDEN), lambda i: (0, 0)),         # b2
                pl.BlockSpec((HIDDEN, HEAD_OUT), lambda i: (0, 0)),  # wh: resident
                pl.BlockSpec((1, HEAD_OUT), lambda i: (0, 0)),       # bh
            ],
            out_specs=pl.BlockSpec((TM, HEAD_OUT), lambda i: (i, 0)),
        ),
        compiler_params=pltpu.CompilerParams(
            dimension_semantics=(row_sem,),
            vmem_limit_bytes=_vmem_limit_bytes(TM),
        ),
    )(xp,
      packed["w1"], packed["b1"],
      packed["w2"], packed["b2"],
      packed["wh"], packed["bh"])

    return out[:B, :LATENT_DIM], out[:B, LATENT_DIM:]


def init_params(key):
    """Deterministic synthetic parameters matching nn.Linear shapes
    (stored as (in, out) so the kernel does x @ W + b)."""
    ks = jax.random.split(key, 8)

    def linear(kw, kb, fan_in, fan_out):
        bound = 1.0 / jnp.sqrt(fan_in)
        w = jax.random.uniform(kw, (fan_in, fan_out), jnp.float32, -bound, bound)
        b = jax.random.uniform(kb, (1, fan_out), jnp.float32, -bound, bound)
        return w, b

    w1, b1 = linear(ks[0], ks[1], IN_DIM, HIDDEN)
    w2, b2 = linear(ks[2], ks[3], HIDDEN, HIDDEN)
    w31, b31 = linear(ks[4], ks[5], HIDDEN, LATENT_DIM)
    w32, b32 = linear(ks[6], ks[7], HIDDEN, LATENT_DIM)
    return dict(w1=w1, b1=b1, w2=w2, b2=b2,
                w31=w31, b31=b31, w32=w32, b32=b32)


def encoder_ref_bf16(x, packed):
    """Pure-JAX reference mirroring the kernel's bf16-weight / f32-accumulate math."""
    def mm(a, w):
        return jnp.dot(a.astype(jnp.bfloat16), w, preferred_element_type=jnp.float32)

    x = x.reshape(-1, IN_DIM)
    h = _swish(mm(x, packed["w1"]) + packed["b1"])
    h = _swish(mm(h, packed["w2"]) + packed["b2"])
    out = mm(h, packed["wh"]) + packed["bh"]
    return out[:, :LATENT_DIM], out[:, LATENT_DIM:]


def encoder_ref_f32(x, p):
    """Pure-JAX f32 reference of the original PyTorch forward pass."""
    x = x.reshape(-1, IN_DIM)
    h = _swish(x @ p["w1"] + p["b1"])
    h = _swish(h @ p["w2"] + p["b2"])
    return h @ p["w31"] + p["b31"], h @ p["w32"] + p["b32"]


if __name__ == "__main__":
    key = jax.random.PRNGKey(0)
    k_params, k_x1, k_x2 = jax.random.split(key, 3)

    params = init_params(k_params)
    packed = prepare_params(params)

    # --- small batch: 2 colored-MNIST images (2, 3, 28, 28), single-tile grid ---
    B = 2
    x_img = jax.random.normal(k_x1, (B, 3, 28, 28), jnp.float32)

    mu, logvar = encoder_forward(x_img, packed)
    jax.block_until_ready((mu, logvar))
    assert mu.shape == (B, LATENT_DIM) and logvar.shape == (B, LATENT_DIM)

    mu_r, lv_r = encoder_ref_bf16(x_img, packed)
    assert jnp.allclose(mu, mu_r, atol=1e-3, rtol=1e-3)
    assert jnp.allclose(logvar, lv_r, atol=1e-3, rtol=1e-3)

    mu_f, lv_f = encoder_ref_f32(x_img, params)
    assert jnp.allclose(mu, mu_f, atol=5e-2, rtol=5e-2)
    assert jnp.allclose(logvar, lv_f, atol=5e-2, rtol=5e-2)

    # --- larger batch: exercises the multi-tile row grid + padding path ---
    B2 = 300
    x2 = jax.random.normal(k_x2, (B2, IN_DIM), jnp.float32)
    mu2, lv2 = encoder_forward(x2, packed)
    jax.block_until_ready((mu2, lv2))
    assert mu2.shape == (B2, LATENT_DIM) and lv2.shape == (B2, LATENT_DIM)

    mu2_r, lv2_r = encoder_ref_bf16(x2, packed)
    assert jnp.allclose(mu2, mu2_r, atol=1e-3, rtol=1e-3)
    assert jnp.allclose(lv2, lv2_r, atol=1e-3, rtol=1e-3)

    print("KERNEL_OK")
</pallas_src>

<mosaic_0001>
module attributes {stable_mosaic.version = 11 : i64} {
  func.func @encoder_kernel(%arg0: i32, %arg1: memref<16x2352xbf16, #tpu.memory_space<vmem>>, %arg2: memref<2352x512xbf16, #tpu.memory_space<vmem>>, %arg3: memref<1x512xf32, #tpu.memory_space<vmem>>, %arg4: memref<512x512xbf16, #tpu.memory_space<vmem>>, %arg5: memref<1x512xf32, #tpu.memory_space<vmem>>, %arg6: memref<512x64xbf16, #tpu.memory_space<vmem>>, %arg7: memref<1x64xf32, #tpu.memory_space<vmem>>, %arg8: memref<16x64xf32, #tpu.memory_space<vmem>>) attributes {dimension_semantics = [#tpu.dimension_semantics<arbitrary>], iteration_bounds = array<i64: 1>, scalar_prefetch = 0 : i64, scratch_operands = 0 : i64, tpu.core_type = #tpu.core_type<tc>, window_params = [{transform_indices = @transform_0, window_bounds = array<i64: 16, 2352>}, {pipeline_mode = #tpu.pipeline_mode<synchronous>, transform_indices = @transform_1, window_bounds = array<i64: 2352, 512>}, {pipeline_mode = #tpu.pipeline_mode<synchronous>, transform_indices = @transform_2, window_bounds = array<i64: 1, 512>}, {pipeline_mode = #tpu.pipeline_mode<synchronous>, transform_indices = @transform_3, window_bounds = array<i64: 512, 512>}, {pipeline_mode = #tpu.pipeline_mode<synchronous>, transform_indices = @transform_4, window_bounds = array<i64: 1, 512>}, {pipeline_mode = #tpu.pipeline_mode<synchronous>, transform_indices = @transform_5, window_bounds = array<i64: 512, 64>}, {pipeline_mode = #tpu.pipeline_mode<synchronous>, transform_indices = @transform_6, window_bounds = array<i64: 1, 64>}, {transform_indices = @transform_7, window_bounds = array<i64: 16, 64>}]} {
    %c0 = arith.constant 0 : index
    %c0_0 = arith.constant 0 : index
    %0 = vector.load %arg1[%c0, %c0_0] : memref<16x2352xbf16, #tpu.memory_space<vmem>>, vector<16x2352xbf16>
    %c0_1 = arith.constant 0 : index
    %c0_2 = arith.constant 0 : index
    %1 = vector.load %arg2[%c0_1, %c0_2] : memref<2352x512xbf16, #tpu.memory_space<vmem>>, vector<2352x512xbf16>
    %cst = arith.constant dense<0.000000e+00> : vector<16x512xf32>
    %2 = tpu.matmul %0, %1, %cst {dimension_numbers = #tpu.dot_dimension_numbers<[1], [0], [0], [1], [0, 0, 1, 1], [], []>} : vector<16x2352xbf16>, vector<2352x512xbf16>, vector<16x512xf32> -> vector<16x512xf32>
    %c0_3 = arith.constant 0 : index
    %c0_4 = arith.constant 0 : index
    %3 = vector.load %arg3[%c0_3, %c0_4] : memref<1x512xf32, #tpu.memory_space<vmem>>, vector<1x512xf32>
    %4 = vector.broadcast %3 : vector<1x512xf32> to vector<16x512xf32>
    %5 = arith.addf %2, %4 : vector<16x512xf32>
    %6 = arith.negf %5 : vector<16x512xf32>
    %7 = math.exp %6 : vector<16x512xf32>
    %cst_5 = arith.constant 1.000000e+00 : f32
    %8 = vector.broadcast %cst_5 : f32 to vector<16x512xf32>
    %9 = arith.addf %8, %7 : vector<16x512xf32>
    %10 = arith.divf %8, %9 : vector<16x512xf32>
    %11 = arith.mulf %5, %10 : vector<16x512xf32>
    %12 = arith.truncf %11 : vector<16x512xf32> to vector<16x512xbf16>
    %c0_6 = arith.constant 0 : index
    %c0_7 = arith.constant 0 : index
    %13 = vector.load %arg4[%c0_6, %c0_7] : memref<512x512xbf16, #tpu.memory_space<vmem>>, vector<512x512xbf16>
    %cst_8 = arith.constant dense<0.000000e+00> : vector<16x512xf32>
    %14 = tpu.matmul %12, %13, %cst_8 {dimension_numbers = #tpu.dot_dimension_numbers<[1], [0], [0], [1], [0, 0, 1, 1], [], []>} : vector<16x512xbf16>, vector<512x512xbf16>, vector<16x512xf32> -> vector<16x512xf32>
    %c0_9 = arith.constant 0 : index
    %c0_10 = arith.constant 0 : index
    %15 = vector.load %arg5[%c0_9, %c0_10] : memref<1x512xf32, #tpu.memory_space<vmem>>, vector<1x512xf32>
    %16 = vector.broadcast %15 : vector<1x512xf32> to vector<16x512xf32>
    %17 = arith.addf %14, %16 : vector<16x512xf32>
    %18 = arith.negf %17 : vector<16x512xf32>
    %19 = math.exp %18 : vector<16x512xf32>
    %cst_11 = arith.constant 1.000000e+00 : f32
    %20 = vector.broadcast %cst_11 : f32 to vector<16x512xf32>
    %21 = arith.addf %20, %19 : vector<16x512xf32>
    %22 = arith.divf %20, %21 : vector<16x512xf32>
    %23 = arith.mulf %17, %22 : vector<16x512xf32>
    %24 = arith.truncf %23 : vector<16x512xf32> to vector<16x512xbf16>
    %c0_12 = arith.constant 0 : index
    %c0_13 = arith.constant 0 : index
    %25 = vector.load %arg6[%c0_12, %c0_13] : memref<512x64xbf16, #tpu.memory_space<vmem>>, vector<512x64xbf16>
    %cst_14 = arith.constant dense<0.000000e+00> : vector<16x64xf32>
    %26 = tpu.matmul %24, %25, %cst_14 {dimension_numbers = #tpu.dot_dimension_numbers<[1], [0], [0], [1], [0, 0, 1, 1], [], []>} : vector<16x512xbf16>, vector<512x64xbf16>, vector<16x64xf32> -> vector<16x64xf32>
    %c0_15 = arith.constant 0 : index
    %c0_16 = arith.constant 0 : index
    %27 = vector.load %arg7[%c0_15, %c0_16] : memref<1x64xf32, #tpu.memory_space<vmem>>, vector<1x64xf32>
    %28 = vector.broadcast %27 : vector<1x64xf32> to vector<16x64xf32>
    %29 = arith.addf %26, %28 : vector<16x64xf32>
    %c0_17 = arith.constant 0 : index
    %c0_18 = arith.constant 0 : index
    %30 = vector.load %arg8[%c0_17, %c0_18] : memref<16x64xf32, #tpu.memory_space<vmem>>, vector<16x64xf32>
    tpu.vector_store %arg8[%c0_17, %c0_18], %29 {strides = array<i32>} : memref<16x64xf32, #tpu.memory_space<vmem>>, vector<16x64xf32>,
    return
  }
  func.func @transform_0(%arg0: i32) -> (i32, i32) {
    %c0_i32 = arith.constant 0 : i32
    %c0_i32_0 = arith.constant 0 : i32
    return %arg0, %c0_i32 : i32, i32
  }
  func.func @transform_1(%arg0: i32) -> (i32, i32) {
    %c0_i32 = arith.constant 0 : i32
    %c0_i32_0 = arith.constant 0 : i32
    %c0_i32_1 = arith.constant 0 : i32
    return %c0_i32, %c0_i32_0 : i32, i32
  }
  func.func @transform_2(%arg0: i32) -> (i32, i32) {
    %c0_i32 = arith.constant 0 : i32
    %c0_i32_0 = arith.constant 0 : i32
    %c0_i32_1 = arith.constant 0 : i32
    return %c0_i32, %c0_i32_0 : i32, i32
  }
  func.func @transform_3(%arg0: i32) -> (i32, i32) {
    %c0_i32 = arith.constant 0 : i32
    %c0_i32_0 = arith.constant 0 : i32
    %c0_i32_1 = arith.constant 0 : i32
    return %c0_i32, %c0_i32_0 : i32, i32
  }
  func.func @transform_4(%arg0: i32) -> (i32, i32) {
    %c0_i32 = arith.constant 0 : i32
    %c0_i32_0 = arith.constant 0 : i32
    %c0_i32_1 = arith.constant 0 : i32
    return %c0_i32, %c0_i32_0 : i32, i32
  }
  func.func @transform_5(%arg0: i32) -> (i32, i32) {
    %c0_i32 = arith.constant 0 : i32
    %c0_i32_0 = arith.constant 0 : i32
    %c0_i32_1 = arith.constant 0 : i32
    return %c0_i32, %c0_i32_0 : i32, i32
  }
  func.func @transform_6(%arg0: i32) -> (i32, i32) {
    %c0_i32 = arith.constant 0 : i32
    %c0_i32_0 = arith.constant 0 : i32
    %c0_i32_1 = arith.constant 0 : i32
    return %c0_i32, %c0_i32_0 : i32, i32
  }
  func.func @transform_7(%arg0: i32) -> (i32, i32) {
    %c0_i32 = arith.constant 0 : i32
    %c0_i32_0 = arith.constant 0 : i32
    return %arg0, %c0_i32 : i32, i32
  }
}

</mosaic_0001>

<bundles_post_ra>
// kernel: tpu_custom_call.1
= control target key start
LH: loop header
LB: loop body
LE: loop exit
PB: predicated region body
PF: predicated region fallthrough
CT: control target
= control target key end

     0   :  { %12 = vsyncpa [#allocation3], 0  ;;  %s8653_s0 = inlined_call_operand.hbm [shape: bf16[16,2352], index: 0, kind: input, shape index: {}]   ;;  %s8654_s1 = inlined_call_operand.hbm [shape: bf16[2352,512], index: 1, kind: input, shape index: {}]   ;;  %s8655_s2 = inlined_call_operand.hbm [shape: f32[1,512], index: 2, kind: input, shape index: {}]   ;;  %s8656_s3 = inlined_call_operand.hbm [shape: bf16[512,512], index: 3, kind: input, shape index: {}]   ;;  %s8657_s4 = inlined_call_operand.hbm [shape: f32[1,512], index: 4, kind: input, shape index: {}]   ;;  %s8658_s5 = inlined_call_operand.vmem [shape: bf16[512,64], index: 5, kind: input, shape index: {}]   ;;  %s8659_s6 = inlined_call_operand.hbm [shape: f32[1,64], index: 6, kind: input, shape index: {}]   ;;  %s8660_s7 = inlined_call_operand.hbm [shape: f32[16,64], index: 7, kind: output, shape index: {}]  }
   0x1   :  { %13 = vsyncpa [#allocation6], 0 }
   0x2   :  { %14 = vsyncpa [#allocation9], 0 }
   0x3   :  { %15 = vsyncpa [#allocation12], 0 }
   0x4   :  { %16 = vsyncpa [#allocation4], 0  ;;  %s8385_s24 = smov [#allocation5]   ;;  %s8221_s28 = scalar_lea.hbm %s8654_s1, 75264 }
   0x5   :  { %s34_s25 = sshll.u32 %s8385_s24, 4  ;;  %p8222_p0 = scmp.ne.s32.totalorder %s8654_s1, %s8221_s28  ;;  %s35_s25 = int_to_ptr.vmem [resolvable:$true] %s34_s25 }
   0x6   :  { %p8225_p1 = scmp.lt.u32.totalorder %s8221_s28, %s8654_s1 }
   0x8   :  { %p8227_p2 = pnand %p8225_p1, %p8222_p0 }
   0xa   :  { %8230 = shalt.err (!%p8227_p2)
}
   0xb   :  { %s8231_s10 = scalar_lea.vmem %s35_s25, 75264  ;;  %p8236_p4 = scmp.lt.s32.totalorder %s35_s25, %s35_s25 }
   0xc   :  { %p8232_p3 = scmp.ne.s32.totalorder %s35_s25, %s8231_s10  ;;  %p8237_p5 = scmp.lt.s32.totalorder %s8231_s10, %s8231_s10 }
   0xe   :  { %p8238_p6 = por %p8237_p5, %p8236_p4 }
  0x10   :  { %p8239_p7 = pnand %p8238_p6, %p8232_p3 }
  0x12   :  { %8242 = shalt.err (!%p8239_p7)
}
  0x13   :  { %s8386_s11 = smov 256   ;;  %s8387_s12 = smov 16  }
  0x14   :  { %40 = dma.hbm_to_vmem [thread:$0]  %s8654_s1, 75264, %s35_s25, [#allocation6], %s8386_s11, %s8386_s11, %s8387_s12  }
  0x15   :  { %s8388_s15 = smov [#allocation8]   ;;  %s8389_s17 = smov [#allocation2]  }
  0x16   :  { %s56_s16 = sshll.u32 %s8388_s15, 4  ;;  %s22_s18 = sshll.u32 %s8389_s17, 4  ;;  %s57_s16 = int_to_ptr.vmem [resolvable:$true] %s56_s16  ;;  %s23_s18 = int_to_ptr.vmem [resolvable:$true] %s22_s18 }
  0x17   :  { %s8243_s21 = scalar_lea.hbm %s8656_s3, 16384 }
  0x18   :  { %p8244_p8 = scmp.ne.s32.totalorder %s8656_s3, %s8243_s21  ;;  %p8247_p9 = scmp.lt.u32.totalorder %s8243_s21, %s8656_s3 }
  0x1a   :  { %p8249_p10 = pnand %p8247_p9, %p8244_p8 }
  0x1c   :  { %8252 = shalt.err (!%p8249_p10)
}
  0x1d   :  { %s8253_s1 = scalar_lea.vmem %s57_s16, 16384  ;;  %p8258_p12 = scmp.lt.s32.totalorder %s57_s16, %s57_s16 }
  0x1e   :  { %p8254_p11 = scmp.ne.s32.totalorder %s57_s16, %s8253_s1  ;;  %p8259_p13 = scmp.lt.s32.totalorder %s8253_s1, %s8253_s1 }
  0x20   :  { %p8260_p0 = por %p8259_p13, %p8258_p12 }
  0x22   :  { %p8261_p1 = pnand %p8260_p0, %p8254_p11 }
  0x24   :  { %8264 = shalt.err (!%p8261_p1)
}
  0x25   :  { %62 = dma.hbm_to_vmem [thread:$0]  %s8656_s3, 16384, %s57_s16, [#allocation9], %s8386_s11, %s8386_s11, %s8387_s12  }
  0x26   :  { %s8265_s30 = scalar_lea.hbm %s8653_s0, 2432 }
  0x27   :  { %p8266_p2 = scmp.ne.s32.totalorder %s8653_s0, %s8265_s30  ;;  %p8269_p3 = scmp.lt.u32.totalorder %s8265_s30, %s8653_s0 }
  0x29   :  { %p8271_p4 = pnand %p8269_p3, %p8266_p2 }
  0x2b   :  { %8274 = shalt.err (!%p8271_p4)
}
  0x2c   :  { %s8275_s14 = scalar_lea.vmem %s23_s18, 2432  ;;  %p8280_p6 = scmp.lt.s32.totalorder %s23_s18, %s23_s18 }
  0x2d   :  { %p8276_p5 = scmp.ne.s32.totalorder %s23_s18, %s8275_s14  ;;  %p8281_p7 = scmp.lt.s32.totalorder %s8275_s14, %s8275_s14 }
  0x2f   :  { %p8282_p8 = por %p8281_p7, %p8280_p6 }
  0x31   :  { %p8283_p9 = pnand %p8282_p8, %p8276_p5 }
  0x33   :  { %8286 = shalt.err (!%p8283_p9)
}
  0x34   :  { %s8390_s3 = smov 1216   ;;  %s8391_s11 = smov 76  }
  0x35   :  { %28 = dma.hbm_to_vmem [thread:$0]  %s8653_s0, 2432, %s23_s18, [#allocation3], %s8390_s3, %s8390_s3, %s8391_s11  }
  0x36   :  { %s8392_s16 = smov [#allocation7]   ;;  %s8393_s19 = smov [#allocation10]  }
  0x37   :  { %s47_s17 = sshll.u32 %s8392_s16, 4  ;;  %s69_s20 = sshll.u32 %s8393_s19, 4  ;;  %s48_s17 = int_to_ptr.vmem [resolvable:$true] %s47_s17  ;;  %s70_s20 = int_to_ptr.vmem [resolvable:$true] %s69_s20 }
  0x38   :  { %s8287_s23 = scalar_lea.hbm %s8655_s2, 64 }
  0x39   :  { %p8288_p10 = scmp.ne.s32.totalorder %s8655_s2, %s8287_s23  ;;  %p8291_p11 = scmp.lt.u32.totalorder %s8287_s23, %s8655_s2 }
  0x3b   :  { %p8293_p12 = pnand %p8291_p11, %p8288_p10 }
  0x3d   :  { %8296 = shalt.err (!%p8293_p12)
}
  0x3e   :  { %s8297_s0 = scalar_lea.vmem %s48_s17, 64  ;;  %p8302_p0 = scmp.lt.s32.totalorder %s48_s17, %s48_s17 }
  0x3f   :  { %p8298_p13 = scmp.ne.s32.totalorder %s48_s17, %s8297_s0  ;;  %p8303_p1 = scmp.lt.s32.totalorder %s8297_s0, %s8297_s0 }
  0x41   :  { %p8304_p2 = por %p8303_p1, %p8302_p0 }
  0x43   :  { %p8305_p3 = pnand %p8304_p2, %p8298_p13 }
  0x45   :  { %8308 = shalt.err (!%p8305_p3)
}
  0x46   :  { %50 = dma.hbm_to_vmem [thread:$0]  %s8655_s2, 64, %s48_s17, [#allocation6]  }
  0x47   :  { %s8309_s30 = scalar_lea.hbm %s8657_s4, 64 }
  0x48   :  { %p8310_p4 = scmp.ne.s32.totalorder %s8657_s4, %s8309_s30  ;;  %p8313_p5 = scmp.lt.u32.totalorder %s8309_s30, %s8657_s4 }
  0x4a   :  { %p8315_p6 = pnand %p8313_p5, %p8310_p4 }
  0x4c   :  { %8318 = shalt.err (!%p8315_p6)
}
  0x4d   :  { %s8319_s14 = scalar_lea.vmem %s70_s20, 64  ;;  %p8324_p8 = scmp.lt.s32.totalorder %s70_s20, %s70_s20 }
  0x4e   :  { %p8320_p7 = scmp.ne.s32.totalorder %s70_s20, %s8319_s14  ;;  %p8325_p9 = scmp.lt.s32.totalorder %s8319_s14, %s8319_s14 }
  0x50   :  { %p8326_p10 = por %p8325_p9, %p8324_p8 }
  0x52   :  { %p8327_p11 = pnand %p8326_p10, %p8320_p7 }
  0x54   :  { %8330 = shalt.err (!%p8327_p11)
}
  0x55   :  { %72 = dma.hbm_to_vmem [thread:$0]  %s8657_s4, 64, %s70_s20, [#allocation9]  }
  0x56   :  { %s8394_s11 = smov [#allocation11]   ;;  %s8331_s17 = scalar_lea.hbm %s8659_s6, 16 }
  0x57   :  { %s81_s12 = sshll.u32 %s8394_s11, 4  ;;  %p8332_p12 = scmp.ne.s32.totalorder %s8659_s6, %s8331_s17  ;;  %s82_s12 = int_to_ptr.vmem [resolvable:$true] %s81_s12 }
  0x58   :  { %p8335_p13 = scmp.lt.u32.totalorder %s8331_s17, %s8659_s6 }
  0x5a   :  { %p8337_p0 = pnand %p8335_p13, %p8332_p12 }
  0x5c   :  { %8340 = shalt.err (!%p8337_p0)
}
  0x5d   :  { %s8341_s24 = scalar_lea.vmem %s82_s12, 16  ;;  %s8345_s4 = scalar_lea.vmem %s82_s12, 32 }
  0x5e   :  { %p8342_p1 = scmp.ne.s32.totalorder %s82_s12, %s8341_s24  ;;  %p8346_p2 = scmp.lt.s32.totalorder %s82_s12, %s82_s12 }
  0x5f   :  { %p8347_p3 = scmp.lt.s32.totalorder %s8345_s4, %s8341_s24 }
  0x61   :  { %p8348_p4 = por %p8347_p3, %p8346_p2 }
  0x63   :  { %p8349_p5 = pnand %p8348_p4, %p8342_p1 }
  0x65   :  { %8352 = shalt.err (!%p8349_p5)
}
  0x66   :  { %84 = dma.hbm_to_vmem [thread:$0]  %s8659_s6, 16, %s82_s12, [#allocation12]  }
  0x67   :  { %8375 = dma.done.wait [#allocation3], 2432  }
  0x68   :  { %8376 = vsyncadd [#allocation3], 4294964864 }
  0x69   :  { %8377 = dma.done.wait [#allocation6], 75328  }
  0x6a   :  { %8378 = vsyncadd [#allocation6], 4294891968 }
  0x6b   :  { %8379 = dma.done.wait [#allocation9], 16448  }
  0x6c   :  { %8380 = vsyncadd [#allocation9], 4294950848 }
  0x6d   :  { %8381 = dma.done.wait [#allocation12], 16  }
  0x6e   :  { %8382 = vsyncadd [#allocation12], 4294967280  ;;  %v7023_v0 = vld [vmem:[#allocation5 + $0x4] ss:$16 sps:$4 sm:$0xff]   ;;  %v7025_v1 = vld [vmem:[#allocation5 + $0xc] ss:$16 sps:$4 sm:$0xff]  }
  0x6f   :  { %3773 = vmatprep.subr.bf16.mxu0 %v7023_v0  ;;  %v7027_v2 = vld [vmem:[#allocation5] ss:$16 sps:$4 sm:$0xff]   ;;  %v7028_v3 = vld [vmem:[#allocation5 + $0x8] ss:$16 sps:$4 sm:$0xff]   ;;  %4203 = vmatprep.subr.bf16.mxu1 %v7025_v1  ;;  %v7029_v4 = vld [vmem:[#allocation5 + $0x24] ss:$16 sps:$4 sm:$0xff]  }
  0x70   :  { %3774 = vmatpush1.bf16.msra.mxu0 %v7027_v2  ;;  %4204 = vmatpush1.bf16.msra.mxu1 %v7028_v3  ;;  %v7031_v5 = vld [vmem:[#allocation5 + $0x2c] ss:$16 sps:$4 sm:$0xff]   ;;  %v7033_v6 = vld [vmem:[#allocation5 + $0x20] ss:$16 sps:$4 sm:$0xff]   ;;  %v7034_v7 = vld [vmem:[#allocation5 + $0x28] ss:$16 sps:$4 sm:$0xff]  }
  0x71   :  { %3775 = vmatprep.subr.bf16.mxu0 %v7029_v4  ;;  %4205 = vmatprep.subr.bf16.mxu1 %v7031_v5  ;;  %v7035_v8 = vld [vmem:[#allocation5 + $0x44] ss:$16 sps:$4 sm:$0xff]   ;;  %v7037_v9 = vld [vmem:[#allocation5 + $0x4c] ss:$16 sps:$4 sm:$0xff]   ;;  %v7039_v10 = vld [vmem:[#allocation5 + $0x40] ss:$16 sps:$4 sm:$0xff]  }
  0x72   :  { %v7040_v11 = vld [vmem:[#allocation5 + $0x48] ss:$16 sps:$4 sm:$0xff]   ;;  %v7041_v12 = vld [vmem:[#allocation5 + $0x64] ss:$16 sps:$4 sm:$0xff]   ;;  %v7043_v13 = vld [vmem:[#allocation5 + $0x6c] ss:$16 sps:$4 sm:$0xff]  }
  0x73   :  { %v7045_v14 = vld [vmem:[#allocation5 + $0x60] ss:$16 sps:$4 sm:$0xff]   ;;  %v7046_v15 = vld [vmem:[#allocation5 + $0x68] ss:$16 sps:$4 sm:$0xff]   ;;  %v7047_v16 = vld [vmem:[#allocation5 + $0x84] ss:$16 sps:$4 sm:$0xff]  }
  0x74   :  { %3776 = vmatpush1.bf16.msra.mxu0 %v7033_v6  ;;  %4206 = vmatpush1.bf16.msra.mxu1 %v7034_v7  ;;  %v7049_v17 = vld [vmem:[#allocation5 + $0x8c] ss:$16 sps:$4 sm:$0xff]   ;;  %v7051_v18 = vld [vmem:[#allocation5 + $0x80] ss:$16 sps:$4 sm:$0xff]   ;;  %v7052_v19 = vld [vmem:[#allocation5 + $0x88] ss:$16 sps:$4 sm:$0xff]  }
  0x75   :  { %3777 = vmatprep.subr.bf16.mxu0 %v7035_v8  ;;  %4207 = vmatprep.subr.bf16.mxu1 %v7037_v9  ;;  %v7053_v20 = vld [vmem:[#allocation5 + $0xa4] ss:$16 sps:$4 sm:$0xff]   ;;  %v7055_v21 = vld [vmem:[#allocation5 + $0xac] ss:$16 sps:$4 sm:$0xff]   ;;  %v7057_v22 = vld [vmem:[#allocation5 + $0xa0] ss:$16 sps:$4 sm:$0xff]  }
  0x76   :  { %v7058_v23 = vld [vmem:[#allocation5 + $0xa8] ss:$16 sps:$4 sm:$0xff]   ;;  %v7059_v24 = vld [vmem:[#allocation5 + $0xc4] ss:$16 sps:$4 sm:$0xff]   ;;  %v7061_v25 = vld [vmem:[#allocation5 + $0xcc] ss:$16 sps:$4 sm:$0xff]  }
  0x77   :  { %v7063_v26 = vld [vmem:[#allocation5 + $0xc0] ss:$16 sps:$4 sm:$0xff]   ;;  %v7064_v27 = vld [vmem:[#allocation5 + $0xc8] ss:$16 sps:$4 sm:$0xff]   ;;  %v7065_v28 = vld [vmem:[#allocation5 + $0xe4] ss:$16 sps:$4 sm:$0xff]  }
  0x78   :  { %3778 = vmatpush1.bf16.msra.mxu0 %v7039_v10  ;;  %4208 = vmatpush1.bf16.msra.mxu1 %v7040_v11  ;;  %v7067_v29 = vld [vmem:[#allocation5 + $0xec] ss:$16 sps:$4 sm:$0xff]   ;;  %v7069_v30 = vld [vmem:[#allocation5 + $0xe0] ss:$16 sps:$4 sm:$0xff]   ;;  %v7070_v31 = vld [vmem:[#allocation5 + $0xe8] ss:$16 sps:$4 sm:$0xff]  }
  0x79   :  { %3779 = vmatprep.subr.bf16.mxu0 %v7041_v12  ;;  %4209 = vmatprep.subr.bf16.mxu1 %v7043_v13  ;;  %v7071_v32 = vld [vmem:[#allocation5 + $0x104] ss:$16 sps:$4 sm:$0xff]   ;;  %v7073_v33 = vld [vmem:[#allocation5 + $0x10c] ss:$16 sps:$4 sm:$0xff]   ;;  %v7075_v34 = vld [vmem:[#allocation5 + $0x100] ss:$16 sps:$4 sm:$0xff]  }
  0x7a   :  { %v7076_v35 = vld [vmem:[#allocation5 + $0x108] ss:$16 sps:$4 sm:$0xff]   ;;  %v7077_v36 = vld [vmem:[#allocation5 + $0x124] ss:$16 sps:$4 sm:$0xff]   ;;  %v7079_v37 = vld [vmem:[#allocation5 + $0x12c] ss:$16 sps:$4 sm:$0xff]  }
  0x7b   :  { %v7081_v38 = vld [vmem:[#allocation5 + $0x120] ss:$16 sps:$4 sm:$0xff]   ;;  %v7082_v39 = vld [vmem:[#allocation5 + $0x128] ss:$16 sps:$4 sm:$0xff]   ;;  %v7083_v40 = vld [vmem:[#allocation5 + $0x144] ss:$16 sps:$4 sm:$0xff]  }
  0x7c   :  { %3780 = vmatpush1.bf16.msra.mxu0 %v7045_v14  ;;  %4210 = vmatpush1.bf16.msra.mxu1 %v7046_v15  ;;  %v7085_v41 = vld [vmem:[#allocation5 + $0x14c] ss:$16 sps:$4 sm:$0xff]   ;;  %v7087_v42 = vld [vmem:[#allocation5 + $0x140] ss:$16 sps:$4 sm:$0xff]   ;;  %v7088_v43 = vld [vmem:[#allocation5 + $0x148] ss:$16 sps:$4 sm:$0xff]  }
  0x7d   :  { %3781 = vmatprep.subr.bf16.mxu0 %v7047_v16  ;;  %4211 = vmatprep.subr.bf16.mxu1 %v7049_v17  ;;  %v7089_v44 = vld [vmem:[#allocation5 + $0x164] ss:$16 sps:$4 sm:$0xff]   ;;  %v7091_v45 = vld [vmem:[#allocation5 + $0x16c] ss:$16 sps:$4 sm:$0xff]   ;;  %v7093_v46 = vld [vmem:[#allocation5 + $0x160] ss:$16 sps:$4 sm:$0xff]  }
  0x7e   :  { %v7094_v47 = vld [vmem:[#allocation5 + $0x168] ss:$16 sps:$4 sm:$0xff]   ;;  %v7095_v49 = vld [vmem:[#allocation5 + $0x184] ss:$16 sps:$4 sm:$0xff]   ;;  %v7097_v50 = vld [vmem:[#allocation5 + $0x18c] ss:$16 sps:$4 sm:$0xff]  }
  0x7f   :  { %v7121_v48 = vld [vmem:[#allocation2 + $0x4] ss:$76 sps:$4 sm:$0xff]   ;;  %v7099_v51 = vld [vmem:[#allocation5 + $0x180] ss:$16 sps:$4 sm:$0xff]   ;;  %v7101_v53 = vld [vmem:[#allocation5 + $0x1a4] ss:$16 sps:$4 sm:$0xff]  }
  0x80   :  { %3782 = vmatpush1.bf16.msra.mxu0 %v7051_v18  ;;  %4212 = vmatpush1.bf16.msra.mxu1 %v7052_v19  ;;  %v7100_v52 = vld [vmem:[#allocation5 + $0x188] ss:$16 sps:$4 sm:$0xff]   ;;  %v7103_v54 = vld [vmem:[#allocation5 + $0x1ac] ss:$16 sps:$4 sm:$0xff]   ;;  %v7105_v55 = vld [vmem:[#allocation5 + $0x1a0] ss:$16 sps:$4 sm:$0xff]  }
  0x81   :  { %3783 = vmatprep.subr.bf16.mxu0 %v7053_v20  ;;  %4213 = vmatprep.subr.bf16.mxu1 %v7055_v21  ;;  %v7106_v56 = vld [vmem:[#allocation5 + $0x1a8] ss:$16 sps:$4 sm:$0xff]   ;;  %v7107_v57 = vld [vmem:[#allocation5 + $0x1c4] ss:$16 sps:$4 sm:$0xff]   ;;  %v7109_v58 = vld [vmem:[#allocation5 + $0x1cc] ss:$16 sps:$4 sm:$0xff]  }
  0x82   :  { %3805 = vmatprep.mubr.bf16.mxu0 %v7121_v48  ;;  %4235 = vmatprep.mubr.bf16.mxu1 %v7121_v48  ;;  %v7111_v59 = vld [vmem:[#allocation5 + $0x1c0] ss:$16 sps:$4 sm:$0xff]   ;;  %v7112_v60 = vld [vmem:[#allocation5 + $0x1c8] ss:$16 sps:$4 sm:$0xff]   ;;  %v7113_v61 = vld [vmem:[#allocation5 + $0x1e4] ss:$16 sps:$4 sm:$0xff]  }
  0x83   :  { %v7115_v62 = vld [vmem:[#allocation5 + $0x1ec] ss:$16 sps:$4 sm:$0xff]   ;;  %v7117_v63 = vld [vmem:[#allocation5 + $0x1e0] ss:$16 sps:$4 sm:$0xff]   ;;  %v7118_v0 = vld [vmem:[#allocation5 + $0x1e8] ss:$16 sps:$4 sm:$0xff]  }
  0x84   :  { %3784 = vmatpush1.bf16.msra.mxu0 %v7057_v22  ;;  %4214 = vmatpush1.bf16.msra.mxu1 %v7058_v23  ;;  %v7124_v1 = vld [vmem:[#allocation5 + $0x204] ss:$16 sps:$4 sm:$0xff]   ;;  %v7127_v2 = vld [vmem:[#allocation5 + $0x20c] ss:$16 sps:$4 sm:$0xff]   ;;  %v7122_v4 = vld [vmem:[#allocation5 + $0x200] ss:$16 sps:$4 sm:$0xff]  }
  0x85   :  { %3785 = vmatprep.subr.bf16.mxu0 %v7059_v24  ;;  %4215 = vmatprep.subr.bf16.mxu1 %v7061_v25  ;;  %v7119_v3 = vld [vmem:[#allocation2] ss:$76 sps:$4 sm:$0xff]   ;;  %v7133_v7 = vld [vmem:[#allocation5 + $0x22c] ss:$16 sps:$4 sm:$0xff]   ;;  %v7128_v8 = vld [vmem:[#allocation5 + $0x220] ss:$16 sps:$4 sm:$0xff]  }
  0x86   :  { %v7125_v5 = vld [vmem:[#allocation5 + $0x208] ss:$16 sps:$4 sm:$0xff]   ;;  %v7130_v6 = vld [vmem:[#allocation5 + $0x224] ss:$16 sps:$4 sm:$0xff]   ;;  %v7139_v11 = vld [vmem:[#allocation5 + $0x24c] ss:$16 sps:$4 sm:$0xff]  }
  0x87   :  { %v7131_v9 = vld [vmem:[#allocation5 + $0x228] ss:$16 sps:$4 sm:$0xff]   ;;  %v7136_v10 = vld [vmem:[#allocation5 + $0x244] ss:$16 sps:$4 sm:$0xff]   ;;  %v7134_v12 = vld [vmem:[#allocation5 + $0x240] ss:$16 sps:$4 sm:$0xff]  }
  0x88   :  { %3786 = vmatpush1.bf16.msra.mxu0 %v7063_v26  ;;  %4216 = vmatpush1.bf16.msra.mxu1 %v7064_v27  ;;  %v7137_v13 = vld [vmem:[#allocation5 + $0x248] ss:$16 sps:$4 sm:$0xff]   ;;  %v7142_v14 = vld [vmem:[#allocation5 + $0x264] ss:$16 sps:$4 sm:$0xff]   ;;  %v7145_v15 = vld [vmem:[#allocation5 + $0x26c] ss:$16 sps:$4 sm:$0xff]  }
  0x89   :  { %3787 = vmatprep.subr.bf16.mxu0 %v7065_v28  ;;  %4217 = vmatprep.subr.bf16.mxu1 %v7067_v29  ;;  %v7140_v16 = vld [vmem:[#allocation5 + $0x260] ss:$16 sps:$4 sm:$0xff]   ;;  %v7143_v17 = vld [vmem:[#allocation5 + $0x268] ss:$16 sps:$4 sm:$0xff]   ;;  %v7148_v18 = vld [vmem:[#allocation5 + $0x284] ss:$16 sps:$4 sm:$0xff]  }
  0x8a   :  { %v7151_v19 = vld [vmem:[#allocation5 + $0x28c] ss:$16 sps:$4 sm:$0xff]   ;;  %v7146_v20 = vld [vmem:[#allocation5 + $0x280] ss:$16 sps:$4 sm:$0xff]   ;;  %v7149_v21 = vld [vmem:[#allocation5 + $0x288] ss:$16 sps:$4 sm:$0xff]  }
  0x8b   :  { %v7154_v22 = vld [vmem:[#allocation5 + $0x2a4] ss:$16 sps:$4 sm:$0xff]   ;;  %v7157_v23 = vld [vmem:[#allocation5 + $0x2ac] ss:$16 sps:$4 sm:$0xff]   ;;  %v7152_v24 = vld [vmem:[#allocation5 + $0x2a0] ss:$16 sps:$4 sm:$0xff]  }
  0x8c   :  { %3788 = vmatpush1.bf16.msra.mxu0 %v7069_v30  ;;  %4218 = vmatpush1.bf16.msra.mxu1 %v7070_v31  ;;  %v7155_v25 = vld [vmem:[#allocation5 + $0x2a8] ss:$16 sps:$4 sm:$0xff]   ;;  %v7160_v26 = vld [vmem:[#allocation5 + $0x2c4] ss:$16 sps:$4 sm:$0xff]   ;;  %v7163_v27 = vld [vmem:[#allocation5 + $0x2cc] ss:$16 sps:$4 sm:$0xff]  }
  0x8d   :  { %3789 = vmatprep.subr.bf16.mxu0 %v7071_v32  ;;  %4219 = vmatprep.subr.bf16.mxu1 %v7073_v33  ;;  %v7158_v28 = vld [vmem:[#allocation5 + $0x2c0] ss:$16 sps:$4 sm:$0xff]   ;;  %v7161_v29 = vld [vmem:[#allocation5 + $0x2c8] ss:$16 sps:$4 sm:$0xff]   ;;  %v7166_v31 = vld [vmem:[#allocation5 + $0x2e4] ss:$16 sps:$4 sm:$0xff]  }
  0x8e   :  { %v7220_v30 = vld [vmem:[#allocation2 + $0xc] ss:$76 sps:$4 sm:$0xff]   ;;  %v7169_v32 = vld [vmem:[#allocation5 + $0x2ec] ss:$16 sps:$4 sm:$0xff]   ;;  %vm3769_vm0 = vcmask 392192   ;;  %vm6060_vm1 = vcmask 523264  }
  0x8f   :  { %v7164_v33 = vld [vmem:[#allocation5 + $0x2e0] ss:$16 sps:$4 sm:$0xff]   ;;  %v7193_v48 = vld [vmem:[#allocation5 + $0x36c] ss:$16 sps:$4 sm:$0xff]  }
  0x90   :  { %3790 = vmatpush1.bf16.msra.mxu0 %v7075_v34  ;;  %4220 = vmatpush1.bf16.msra.mxu1 %v7076_v35  ;;  %v7167_v34 = vld [vmem:[#allocation5 + $0x2e8] ss:$16 sps:$4 sm:$0xff]   ;;  %v7172_v35 = vld [vmem:[#allocation5 + $0x304] ss:$16 sps:$4 sm:$0xff]  }
  0x91   :  { %3791 = vmatprep.subr.bf16.mxu0 %v7077_v36  ;;  %4221 = vmatprep.subr.bf16.mxu1 %v7079_v37  ;;  %v7175_v36 = vld [vmem:[#allocation5 + $0x30c] ss:$16 sps:$4 sm:$0xff]   ;;  %v7170_v37 = vld [vmem:[#allocation5 + $0x300] ss:$16 sps:$4 sm:$0xff]  }
  0x94   :  { %3792 = vmatpush1.bf16.msra.mxu0 %v7081_v38  ;;  %4222 = vmatpush1.bf16.msra.mxu1 %v7082_v39  ;;  %v7173_v38 = vld [vmem:[#allocation5 + $0x308] ss:$16 sps:$4 sm:$0xff]   ;;  %v7178_v39 = vld [vmem:[#allocation5 + $0x324] ss:$16 sps:$4 sm:$0xff]  }
  0x95   :  { %3793 = vmatprep.subr.bf16.mxu0 %v7083_v40  ;;  %4223 = vmatprep.subr.bf16.mxu1 %v7085_v41  ;;  %v7181_v40 = vld [vmem:[#allocation5 + $0x32c] ss:$16 sps:$4 sm:$0xff]   ;;  %v7176_v41 = vld [vmem:[#allocation5 + $0x320] ss:$16 sps:$4 sm:$0xff]  }
  0x98   :  { %3794 = vmatpush1.bf16.msra.mxu0 %v7087_v42  ;;  %4224 = vmatpush1.bf16.msra.mxu1 %v7088_v43  ;;  %v7179_v42 = vld [vmem:[#allocation5 + $0x328] ss:$16 sps:$4 sm:$0xff]   ;;  %v7184_v43 = vld [vmem:[#allocation5 + $0x344] ss:$16 sps:$4 sm:$0xff]  }
  0x99   :  { %3795 = vmatprep.subr.bf16.mxu0 %v7089_v44  ;;  %4225 = vmatprep.subr.bf16.mxu1 %v7091_v45  ;;  %v7187_v44 = vld [vmem:[#allocation5 + $0x34c] ss:$16 sps:$4 sm:$0xff]   ;;  %v7182_v45 = vld [vmem:[#allocation5 + $0x340] ss:$16 sps:$4 sm:$0xff]  }
  0x9c   :  { %3796 = vmatpush1.bf16.msra.mxu0 %v7093_v46  ;;  %4226 = vmatpush1.bf16.msra.mxu1 %v7094_v47  ;;  %v7185_v46 = vld [vmem:[#allocation5 + $0x348] ss:$16 sps:$4 sm:$0xff]   ;;  %v7190_v47 = vld [vmem:[#allocation5 + $0x364] ss:$16 sps:$4 sm:$0xff]  }
  0x9d   :  { %3797 = vmatprep.subr.bf16.mxu0 %v7095_v49  ;;  %4227 = vmatprep.subr.bf16.mxu1 %v7097_v50  ;;  %v7188_v49 = vld [vmem:[#allocation5 + $0x360] ss:$16 sps:$4 sm:$0xff]   ;;  %v7191_v50 = vld [vmem:[#allocation5 + $0x368] ss:$16 sps:$4 sm:$0xff]  }
  0xa0   :  { %3798 = vmatpush1.bf16.msra.mxu0 %v7099_v51  ;;  %4228 = vmatpush1.bf16.msra.mxu1 %v7100_v52  ;;  %v7196_v51 = vld [vmem:[#allocation5 + $0x384] ss:$16 sps:$4 sm:$0xff]   ;;  %v7199_v52 = vld [vmem:[#allocation5 + $0x38c] ss:$16 sps:$4 sm:$0xff]  }
  0xa1   :  { %3799 = vmatprep.subr.bf16.mxu0 %v7101_v53  ;;  %4229 = vmatprep.subr.bf16.mxu1 %v7103_v54  ;;  %v7194_v53 = vld [vmem:[#allocation5 + $0x380] ss:$16 sps:$4 sm:$0xff]   ;;  %v7197_v54 = vld [vmem:[#allocation5 + $0x388] ss:$16 sps:$4 sm:$0xff]  }
  0xa4   :  { %3800 = vmatpush1.bf16.msra.mxu0 %v7105_v55  ;;  %4230 = vmatpush1.bf16.msra.mxu1 %v7106_v56  ;;  %v7202_v55 = vld [vmem:[#allocation5 + $0x3a4] ss:$16 sps:$4 sm:$0xff]   ;;  %v7205_v56 = vld [vmem:[#allocation5 + $0x3ac] ss:$16 sps:$4 sm:$0xff]  }
  0xa5   :  { %3801 = vmatprep.subr.bf16.mxu0 %v7107_v57  ;;  %4231 = vmatprep.subr.bf16.mxu1 %v7109_v58  ;;  %v7200_v57 = vld [vmem:[#allocation5 + $0x3a0] ss:$16 sps:$4 sm:$0xff]   ;;  %v7203_v58 = vld [vmem:[#allocation5 + $0x3a8] ss:$16 sps:$4 sm:$0xff]  }
  0xa8   :  { %3802 = vmatpush1.bf16.msra.mxu0 %v7111_v59  ;;  %4232 = vmatpush1.bf16.msra.mxu1 %v7112_v60  ;;  %v7208_v59 = vld [vmem:[#allocation5 + $0x3c4] ss:$16 sps:$4 sm:$0xff]   ;;  %v7211_v60 = vld [vmem:[#allocation5 + $0x3cc] ss:$16 sps:$4 sm:$0xff]  }
  0xa9   :  { %3803 = vmatprep.subr.bf16.mxu0 %v7113_v61  ;;  %4233 = vmatprep.subr.bf16.mxu1 %v7115_v62  ;;  %v7206_v61 = vld [vmem:[#allocation5 + $0x3c0] ss:$16 sps:$4 sm:$0xff]   ;;  %v7209_v62 = vld [vmem:[#allocation5 + $0x3c8] ss:$16 sps:$4 sm:$0xff]  }
  0xac   :  { %3804 = vmatpush1.bf16.msra.mxu0 %v7117_v63  ;;  %4234 = vmatpush1.bf16.msra.mxu1 %v7118_v0  ;;  %v7214_v63 = vld [vmem:[#allocation5 + $0x3e4] ss:$16 sps:$4 sm:$0xff]   ;;  %v7217_v0 = vld [vmem:[#allocation5 + $0x3ec] ss:$16 sps:$4 sm:$0xff]  }
  0xad   :  { %3816 = vmatprep.subr.bf16.mxu0 %v7124_v1  ;;  %4246 = vmatprep.subr.bf16.mxu1 %v7127_v2  ;;  %v7212_v1 = vld [vmem:[#allocation5 + $0x3e0] ss:$16 sps:$4 sm:$0xff]   ;;  %v7215_v2 = vld [vmem:[#allocation5 + $0x3e8] ss:$16 sps:$4 sm:$0xff]  }
  0xaf   :  { %3806 = vmatmul.mubr.bf16.vlgmr.msra.gmra.mrb[0].mxu0 %v7119_v3  ;;  %4236 = vmatmul.mubr.bf16.vlgmr.msra.gmra.mrb[0].mxu1 %v7119_v3  ;;  %v7223_v3 = vld [vmem:[#allocation5 + $0x404] ss:$16 sps:$4 sm:$0xff]  }
  0xb0   :  { %3817 = vmatpush1.bf16.msra.mxu0 %v7122_v4  ;;  %4247 = vmatpush1.bf16.msra.mxu1 %v7125_v5  ;;  %v7226_v4 = vld [vmem:[#allocation5 + $0x40c] ss:$16 sps:$4 sm:$0xff]  }
  0xb1   :  { %3818 = vmatprep.subr.bf16.mxu0 %v7130_v6  ;;  %4248 = vmatprep.subr.bf16.mxu1 %v7133_v7  ;;  %v7218_v5 = vld [vmem:[#allocation2 + $0x8] ss:$76 sps:$4 sm:$0xff]   ;;  %v7224_v7 = vld [vmem:[#allocation5 + $0x408] ss:$16 sps:$4 sm:$0xff]  }
  0xb2   :  { %3848 = vmatprep.mubr.bf16.mxu0 %v7220_v30  ;;  %4278 = vmatprep.mubr.bf16.mxu1 %v7220_v30  ;;  %v7221_v6 = vld [vmem:[#allocation5 + $0x400] ss:$16 sps:$4 sm:$0xff]   ;;  %v7262_v30 = vld [vmem:[#allocation5 + $0x4cc] ss:$16 sps:$4 sm:$0xff]  }
  0xb4   :  { %3819 = vmatpush1.bf16.msra.mxu0 %v7128_v8  ;;  %4249 = vmatpush1.bf16.msra.mxu1 %v7131_v9  ;;  %v7229_v8 = vld [vmem:[#allocation5 + $0x424] ss:$16 sps:$4 sm:$0xff]   ;;  %v7232_v9 = vld [vmem:[#allocation5 + $0x42c] ss:$16 sps:$4 sm:$0xff]  }
  0xb5   :  { %3820 = vmatprep.subr.bf16.mxu0 %v7136_v10  ;;  %4250 = vmatprep.subr.bf16.mxu1 %v7139_v11  ;;  %v7227_v10 = vld [vmem:[#allocation5 + $0x420] ss:$16 sps:$4 sm:$0xff]   ;;  %v7230_v11 = vld [vmem:[#allocation5 + $0x428] ss:$16 sps:$4 sm:$0xff]  }
  0xb8   :  { %3821 = vmatpush1.bf16.msra.mxu0 %v7134_v12  ;;  %4251 = vmatpush1.bf16.msra.mxu1 %v7137_v13  ;;  %v7319_v12 = vld [vmem:[#allocation2 + $0x14] ss:$76 sps:$4 sm:$0xff]   ;;  %v7235_v13 = vld [vmem:[#allocation5 + $0x444] ss:$16 sps:$4 sm:$0xff]  }
  0xb9   :  { %3822 = vmatprep.subr.bf16.mxu0 %v7142_v14  ;;  %4252 = vmatprep.subr.bf16.mxu1 %v7145_v15  ;;  %v7238_v14 = vld [vmem:[#allocation5 + $0x44c] ss:$16 sps:$4 sm:$0xff]   ;;  %v7233_v15 = vld [vmem:[#allocation5 + $0x440] ss:$16 sps:$4 sm:$0xff]  }
  0xbc   :  { %3823 = vmatpush1.bf16.msra.mxu0 %v7140_v16  ;;  %4253 = vmatpush1.bf16.msra.mxu1 %v7143_v17  ;;  %v7236_v16 = vld [vmem:[#allocation5 + $0x448] ss:$16 sps:$4 sm:$0xff]   ;;  %v7241_v17 = vld [vmem:[#allocation5 + $0x464] ss:$16 sps:$4 sm:$0xff]  }
  0xbd   :  { %3824 = vmatprep.subr.bf16.mxu0 %v7148_v18  ;;  %4254 = vmatprep.subr.bf16.mxu1 %v7151_v19  ;;  %v7244_v18 = vld [vmem:[#allocation5 + $0x46c] ss:$16 sps:$4 sm:$0xff]   ;;  %v7239_v19 = vld [vmem:[#allocation5 + $0x460] ss:$16 sps:$4 sm:$0xff]  }
  0xc0   :  { %3825 = vmatpush1.bf16.msra.mxu0 %v7146_v20  ;;  %4255 = vmatpush1.bf16.msra.mxu1 %v7149_v21  ;;  %v7242_v20 = vld [vmem:[#allocation5 + $0x468] ss:$16 sps:$4 sm:$0xff]   ;;  %v7247_v21 = vld [vmem:[#allocation5 + $0x484] ss:$16 sps:$4 sm:$0xff]  }
  0xc1   :  { %3826 = vmatprep.subr.bf16.mxu0 %v7154_v22  ;;  %4256 = vmatprep.subr.bf16.mxu1 %v7157_v23  ;;  %v7250_v22 = vld [vmem:[#allocation5 + $0x48c] ss:$16 sps:$4 sm:$0xff]   ;;  %v7245_v23 = vld [vmem:[#allocation5 + $0x480] ss:$16 sps:$4 sm:$0xff]  }
  0xc4   :  { %3827 = vmatpush1.bf16.msra.mxu0 %v7152_v24  ;;  %4257 = vmatpush1.bf16.msra.mxu1 %v7155_v25  ;;  %v7248_v24 = vld [vmem:[#allocation5 + $0x488] ss:$16 sps:$4 sm:$0xff]   ;;  %v7253_v25 = vld [vmem:[#allocation5 + $0x4a4] ss:$16 sps:$4 sm:$0xff]  }
  0xc5   :  { %3828 = vmatprep.subr.bf16.mxu0 %v7160_v26  ;;  %4258 = vmatprep.subr.bf16.mxu1 %v7163_v27  ;;  %v7256_v26 = vld [vmem:[#allocation5 + $0x4ac] ss:$16 sps:$4 sm:$0xff]   ;;  %v7251_v27 = vld [vmem:[#allocation5 + $0x4a0] ss:$16 sps:$4 sm:$0xff]  }
  0xc8   :  { %3829 = vmatpush1.bf16.msra.mxu0 %v7158_v28  ;;  %4259 = vmatpush1.bf16.msra.mxu1 %v7161_v29  ;;  %v7254_v28 = vld [vmem:[#allocation5 + $0x4a8] ss:$16 sps:$4 sm:$0xff]   ;;  %v7259_v29 = vld [vmem:[#allocation5 + $0x4c4] ss:$16 sps:$4 sm:$0xff]  }
  0xc9   :  { %3830 = vmatprep.subr.bf16.mxu0 %v7166_v31  ;;  %4260 = vmatprep.subr.bf16.mxu1 %v7169_v32  ;;  %v7257_v31 = vld [vmem:[#allocation5 + $0x4c0] ss:$16 sps:$4 sm:$0xff]   ;;  %v7260_v32 = vld [vmem:[#allocation5 + $0x4c8] ss:$16 sps:$4 sm:$0xff]  }
  0xcc   :  { %3831 = vmatpush1.bf16.msra.mxu0 %v7164_v33  ;;  %4261 = vmatpush1.bf16.msra.mxu1 %v7167_v34  ;;  %v7265_v33 = vld [vmem:[#allocation5 + $0x4e4] ss:$16 sps:$4 sm:$0xff]   ;;  %v7268_v34 = vld [vmem:[#allocation5 + $0x4ec] ss:$16 sps:$4 sm:$0xff]  }
  0xcd   :  { %3832 = vmatprep.subr.bf16.mxu0 %v7172_v35  ;;  %4262 = vmatprep.subr.bf16.mxu1 %v7175_v36  ;;  %v7263_v35 = vld [vmem:[#allocation5 + $0x4e0] ss:$16 sps:$4 sm:$0xff]   ;;  %v7266_v36 = vld [vmem:[#allocation5 + $0x4e8] ss:$16 sps:$4 sm:$0xff]  }
  0xd0   :  { %3833 = vmatpush1.bf16.msra.mxu0 %v7170_v37  ;;  %4263 = vmatpush1.bf16.msra.mxu1 %v7173_v38  ;;  %v7271_v37 = vld [vmem:[#allocation5 + $0x504] ss:$16 sps:$4 sm:$0xff]   ;;  %v7274_v38 = vld [vmem:[#allocation5 + $0x50c] ss:$16 sps:$4 sm:$0xff]  }
  0xd1   :  { %3834 = vmatprep.subr.bf16.mxu0 %v7178_v39  ;;  %4264 = vmatprep.subr.bf16.mxu1 %v7181_v40  ;;  %v7269_v39 = vld [vmem:[#allocation5 + $0x500] ss:$16 sps:$4 sm:$0xff]   ;;  %v7272_v40 = vld [vmem:[#allocation5 + $0x508] ss:$16 sps:$4 sm:$0xff]  }
  0xd4   :  { %3835 = vmatpush1.bf16.msra.mxu0 %v7176_v41  ;;  %4265 = vmatpush1.bf16.msra.mxu1 %v7179_v42  ;;  %v7277_v41 = vld [vmem:[#allocation5 + $0x524] ss:$16 sps:$4 sm:$0xff]   ;;  %v7280_v42 = vld [vmem:[#allocation5 + $0x52c] ss:$16 sps:$4 sm:$0xff]  }
  0xd5   :  { %3836 = vmatprep.subr.bf16.mxu0 %v7184_v43  ;;  %4266 = vmatprep.subr.bf16.mxu1 %v7187_v44  ;;  %v7275_v43 = vld [vmem:[#allocation5 + $0x520] ss:$16 sps:$4 sm:$0xff]   ;;  %v7278_v44 = vld [vmem:[#allocation5 + $0x528] ss:$16 sps:$4 sm:$0xff]  }
  0xd8   :  { %3837 = vmatpush1.bf16.msra.mxu0 %v7182_v45  ;;  %4267 = vmatpush1.bf16.msra.mxu1 %v7185_v46  ;;  %v7283_v45 = vld [vmem:[#allocation5 + $0x544] ss:$16 sps:$4 sm:$0xff]   ;;  %v7286_v46 = vld [vmem:[#allocation5 + $0x54c] ss:$16 sps:$4 sm:$0xff]  }
  0xd9   :  { %3838 = vmatprep.subr.bf16.mxu0 %v7190_v47  ;;  %4268 = vmatprep.subr.bf16.mxu1 %v7193_v48  ;;  %v7281_v47 = vld [vmem:[#allocation5 + $0x540] ss:$16 sps:$4 sm:$0xff]   ;;  %v7284_v48 = vld [vmem:[#allocation5 + $0x548] ss:$16 sps:$4 sm:$0xff]  }
  0xdc   :  { %3839 = vmatpush1.bf16.msra.mxu0 %v7188_v49  ;;  %4269 = vmatpush1.bf16.msra.mxu1 %v7191_v50  ;;  %v7289_v49 = vld [vmem:[#allocation5 + $0x564] ss:$16 sps:$4 sm:$0xff]   ;;  %v7292_v50 = vld [vmem:[#allocation5 + $0x56c] ss:$16 sps:$4 sm:$0xff]  }
  0xdd   :  { %3840 = vmatprep.subr.bf16.mxu0 %v7196_v51  ;;  %4270 = vmatprep.subr.bf16.mxu1 %v7199_v52  ;;  %v7287_v51 = vld [vmem:[#allocation5 + $0x560] ss:$16 sps:$4 sm:$0xff]   ;;  %v7290_v52 = vld [vmem:[#allocation5 + $0x568] ss:$16 sps:$4 sm:$0xff]  }
  0xe0   :  { %3841 = vmatpush1.bf16.msra.mxu0 %v7194_v53  ;;  %4271 = vmatpush1.bf16.msra.mxu1 %v7197_v54  ;;  %v7295_v53 = vld [vmem:[#allocation5 + $0x584] ss:$16 sps:$4 sm:$0xff]   ;;  %v7298_v54 = vld [vmem:[#allocation5 + $0x58c] ss:$16 sps:$4 sm:$0xff]  }
  0xe1   :  { %3842 = vmatprep.subr.bf16.mxu0 %v7202_v55  ;;  %4272 = vmatprep.subr.bf16.mxu1 %v7205_v56  ;;  %v7293_v55 = vld [vmem:[#allocation5 + $0x580] ss:$16 sps:$4 sm:$0xff]   ;;  %v7296_v56 = vld [vmem:[#allocation5 + $0x588] ss:$16 sps:$4 sm:$0xff]  }
  0xe4   :  { %3843 = vmatpush1.bf16.msra.mxu0 %v7200_v57  ;;  %4273 = vmatpush1.bf16.msra.mxu1 %v7203_v58  ;;  %v7301_v57 = vld [vmem:[#allocation5 + $0x5a4] ss:$16 sps:$4 sm:$0xff]   ;;  %v7304_v58 = vld [vmem:[#allocation5 + $0x5ac] ss:$16 sps:$4 sm:$0xff]  }
  0xe5   :  { %3844 = vmatprep.subr.bf16.mxu0 %v7208_v59  ;;  %4274 = vmatprep.subr.bf16.mxu1 %v7211_v60  ;;  %v7299_v59 = vld [vmem:[#allocation5 + $0x5a0] ss:$16 sps:$4 sm:$0xff]   ;;  %v7302_v60 = vld [vmem:[#allocation5 + $0x5a8] ss:$16 sps:$4 sm:$0xff]  }
  0xe8   :  { %3845 = vmatpush1.bf16.msra.mxu0 %v7206_v61  ;;  %4275 = vmatpush1.bf16.msra.mxu1 %v7209_v62  ;;  %v7307_v61 = vld [vmem:[#allocation5 + $0x5c4] ss:$16 sps:$4 sm:$0xff]   ;;  %v7310_v62 = vld [vmem:[#allocation5 + $0x5cc] ss:$16 sps:$4 sm:$0xff]  }
  0xe9   :  { %3846 = vmatprep.subr.bf16.mxu0 %v7214_v63  ;;  %4276 = vmatprep.subr.bf16.mxu1 %v7217_v0  ;;  %v7305_v63 = vld [vmem:[#allocation5 + $0x5c0] ss:$16 sps:$4 sm:$0xff]   ;;  %v7308_v0 = vld [vmem:[#allocation5 + $0x5c8] ss:$16 sps:$4 sm:$0xff]  }
  0xec   :  { %3847 = vmatpush1.bf16.msra.mxu0 %v7212_v1  ;;  %4277 = vmatpush1.bf16.msra.mxu1 %v7215_v2  ;;  %v7313_v1 = vld [vmem:[#allocation5 + $0x5e4] ss:$16 sps:$4 sm:$0xff]   ;;  %v7316_v2 = vld [vmem:[#allocation5 + $0x5ec] ss:$16 sps:$4 sm:$0xff]  }
  0xed   :  { %3859 = vmatprep.subr.bf16.mxu0 %v7223_v3  ;;  %4289 = vmatprep.subr.bf16.mxu1 %v7226_v4  ;;  %v7311_v3 = vld [vmem:[#allocation5 + $0x5e0] ss:$16 sps:$4 sm:$0xff]   ;;  %v7314_v4 = vld [vmem:[#allocation5 + $0x5e8] ss:$16 sps:$4 sm:$0xff]  }
  0xef   :  { %3849 = vmatmul.mubr.bf16.vlgmr.msra.gmra.mrb[0].mxu0 %v7218_v5  ;;  %4279 = vmatmul.mubr.bf16.vlgmr.msra.gmra.mrb[0].mxu1 %v7218_v5  ;;  %v7322_v5 = vld [vmem:[#allocation5 + $0x604] ss:$16 sps:$4 sm:$0xff]  }
  0xf0   :  { %3860 = vmatpush1.bf16.msra.mxu0 %v7221_v6  ;;  %4290 = vmatpush1.bf16.msra.mxu1 %v7224_v7  ;;  %v7325_v6 = vld [vmem:[#allocation5 + $0x60c] ss:$16 sps:$4 sm:$0xff]   ;;  %v7317_v7 = vld [vmem:[#allocation2 + $0x10] ss:$76 sps:$4 sm:$0xff]  }
  0xf1   :  { %3861 = vmatprep.subr.bf16.mxu0 %v7229_v8  ;;  %4291 = vmatprep.subr.bf16.mxu1 %v7232_v9  ;;  %v7320_v8 = vld [vmem:[#allocation5 + $0x600] ss:$16 sps:$4 sm:$0xff]   ;;  %v7323_v9 = vld [vmem:[#allocation5 + $0x608] ss:$16 sps:$4 sm:$0xff]  }
  0xf2   :  { %3891 = vmatprep.mubr.bf16.mxu0 %v7319_v12  ;;  %4321 = vmatprep.mubr.bf16.mxu1 %v7319_v12  ;;  %v7418_v12 = vld [vmem:[#allocation2 + $0x1c] ss:$76 sps:$4 sm:$0xff]  }
  0xf4   :  { %3862 = vmatpush1.bf16.msra.mxu0 %v7227_v10  ;;  %4292 = vmatpush1.bf16.msra.mxu1 %v7230_v11  ;;  %v7328_v10 = vld [vmem:[#allocation5 + $0x624] ss:$16 sps:$4 sm:$0xff]   ;;  %v7331_v11 = vld [vmem:[#allocation5 + $0x62c] ss:$16 sps:$4 sm:$0xff]  }
  0xf5   :  { %3863 = vmatprep.subr.bf16.mxu0 %v7235_v13  ;;  %4293 = vmatprep.subr.bf16.mxu1 %v7238_v14  ;;  %v7326_v13 = vld [vmem:[#allocation5 + $0x620] ss:$16 sps:$4 sm:$0xff]   ;;  %v7329_v14 = vld [vmem:[#allocation5 + $0x628] ss:$16 sps:$4 sm:$0xff]  }
  0xf8   :  { %3864 = vmatpush1.bf16.msra.mxu0 %v7233_v15  ;;  %4294 = vmatpush1.bf16.msra.mxu1 %v7236_v16  ;;  %v7334_v15 = vld [vmem:[#allocation5 + $0x644] ss:$16 sps:$4 sm:$0xff]   ;;  %v7337_v16 = vld [vmem:[#allocation5 + $0x64c] ss:$16 sps:$4 sm:$0xff]  }
  0xf9   :  { %3865 = vmatprep.subr.bf16.mxu0 %v7241_v17  ;;  %4295 = vmatprep.subr.bf16.mxu1 %v7244_v18  ;;  %v7332_v17 = vld [vmem:[#allocation5 + $0x640] ss:$16 sps:$4 sm:$0xff]   ;;  %v7335_v18 = vld [vmem:[#allocation5 + $0x648] ss:$16 sps:$4 sm:$0xff]  }
  0xfc   :  { %3866 = vmatpush1.bf16.msra.mxu0 %v7239_v19  ;;  %4296 = vmatpush1.bf16.msra.mxu1 %v7242_v20  ;;  %v7340_v19 = vld [vmem:[#allocation5 + $0x664] ss:$16 sps:$4 sm:$0xff]   ;;  %v7343_v20 = vld [vmem:[#allocation5 + $0x66c] ss:$16 sps:$4 sm:$0xff]  }
  0xfd   :  { %3867 = vmatprep.subr.bf16.mxu0 %v7247_v21  ;;  %4297 = vmatprep.subr.bf16.mxu1 %v7250_v22  ;;  %v7338_v21 = vld [vmem:[#allocation5 + $0x660] ss:$16 sps:$4 sm:$0xff]   ;;  %v7341_v22 = vld [vmem:[#allocation5 + $0x668] ss:$16 sps:$4 sm:$0xff]  }
 0x100   :  { %3868 = vmatpush1.bf16.msra.mxu0 %v7245_v23  ;;  %4298 = vmatpush1.bf16.msra.mxu1 %v7248_v24  ;;  %v7346_v23 = vld [vmem:[#allocation5 + $0x684] ss:$16 sps:$4 sm:$0xff]   ;;  %v7349_v24 = vld [vmem:[#allocation5 + $0x68c] ss:$16 sps:$4 sm:$0xff]  }
 0x101   :  { %3869 = vmatprep.subr.bf16.mxu0 %v7253_v25  ;;  %4299 = vmatprep.subr.bf16.mxu1 %v7256_v26  ;;  %v7344_v25 = vld [vmem:[#allocation5 + $0x680] ss:$16 sps:$4 sm:$0xff]   ;;  %v7347_v26 = vld [vmem:[#allocation5 + $0x688] ss:$16 sps:$4 sm:$0xff]  }
 0x104   :  { %3870 = vmatpush1.bf16.msra.mxu0 %v7251_v27  ;;  %4300 = vmatpush1.bf16.msra.mxu1 %v7254_v28  ;;  %v7352_v27 = vld [vmem:[#allocation5 + $0x6a4] ss:$16 sps:$4 sm:$0xff]   ;;  %v7355_v28 = vld [vmem:[#allocation5 + $0x6ac] ss:$16 sps:$4 sm:$0xff]  }
 0x105   :  { %3871 = vmatprep.subr.bf16.mxu0 %v7259_v29  ;;  %4301 = vmatprep.subr.bf16.mxu1 %v7262_v30  ;;  %v7350_v29 = vld [vmem:[#allocation5 + $0x6a0] ss:$16 sps:$4 sm:$0xff]   ;;  %v7353_v30 = vld [vmem:[#allocation5 + $0x6a8] ss:$16 sps:$4 sm:$0xff]  }
 0x108   :  { %3872 = vmatpush1.bf16.msra.mxu0 %v7257_v31  ;;  %4302 = vmatpush1.bf16.msra.mxu1 %v7260_v32  ;;  %v7358_v31 = vld [vmem:[#allocation5 + $0x6c4] ss:$16 sps:$4 sm:$0xff]   ;;  %v7361_v32 = vld [vmem:[#allocation5 + $0x6cc] ss:$16 sps:$4 sm:$0xff]  }
 0x109   :  { %3873 = vmatprep.subr.bf16.mxu0 %v7265_v33  ;;  %4303 = vmatprep.subr.bf16.mxu1 %v7268_v34  ;;  %v7356_v33 = vld [vmem:[#allocation5 + $0x6c0] ss:$16 sps:$4 sm:$0xff]   ;;  %v7359_v34 = vld [vmem:[#allocation5 + $0x6c8] ss:$16 sps:$4 sm:$0xff]  }
 0x10c   :  { %3874 = vmatpush1.bf16.msra.mxu0 %v7263_v35  ;;  %4304 = vmatpush1.bf16.msra.mxu1 %v7266_v36  ;;  %v7364_v35 = vld [vmem:[#allocation5 + $0x6e4] ss:$16 sps:$4 sm:$0xff]   ;;  %v7367_v36 = vld [vmem:[#allocation5 + $0x6ec] ss:$16 sps:$4 sm:$0xff]  }
 0x10d   :  { %3875 = vmatprep.subr.bf16.mxu0 %v7271_v37  ;;  %4305 = vmatprep.subr.bf16.mxu1 %v7274_v38  ;;  %v7362_v37 = vld [vmem:[#allocation5 + $0x6e0] ss:$16 sps:$4 sm:$0xff]   ;;  %v7365_v38 = vld [vmem:[#allocation5 + $0x6e8] ss:$16 sps:$4 sm:$0xff]  }
 0x110   :  { %3876 = vmatpush1.bf16.msra.mxu0 %v7269_v39  ;;  %4306 = vmatpush1.bf16.msra.mxu1 %v7272_v40  ;;  %v7370_v39 = vld [vmem:[#allocation5 + $0x704] ss:$16 sps:$4 sm:$0xff]   ;;  %v7373_v40 = vld [vmem:[#allocation5 + $0x70c] ss:$16 sps:$4 sm:$0xff]  }
 0x111   :  { %3877 = vmatprep.subr.bf16.mxu0 %v7277_v41  ;;  %4307 = vmatprep.subr.bf16.mxu1 %v7280_v42  ;;  %v7368_v41 = vld [vmem:[#allocation5 + $0x700] ss:$16 sps:$4 sm:$0xff]   ;;  %v7371_v42 = vld [vmem:[#allocation5 + $0x708] ss:$16 sps:$4 sm:$0xff]  }
 0x114   :  { %3878 = vmatpush1.bf16.msra.mxu0 %v7275_v43  ;;  %4308 = vmatpush1.bf16.msra.mxu1 %v7278_v44  ;;  %v7376_v43 = vld [vmem:[#allocation5 + $0x724] ss:$16 sps:$4 sm:$0xff]   ;;  %v7379_v44 = vld [vmem:[#allocation5 + $0x72c] ss:$16 sps:$4 sm:$0xff]  }
 0x115   :  { %3879 = vmatprep.subr.bf16.mxu0 %v7283_v45  ;;  %4309 = vmatprep.subr.bf16.mxu1 %v7286_v46  ;;  %v7374_v45 = vld [vmem:[#allocation5 + $0x720] ss:$16 sps:$4 sm:$0xff]   ;;  %v7377_v46 = vld [vmem:[#allocation5 + $0x728] ss:$16 sps:$4 sm:$0xff]  }
 0x118   :  { %3880 = vmatpush1.bf16.msra.mxu0 %v7281_v47  ;;  %4310 = vmatpush1.bf16.msra.mxu1 %v7284_v48  ;;  %v7382_v47 = vld [vmem:[#allocation5 + $0x744] ss:$16 sps:$4 sm:$0xff]   ;;  %v7385_v48 = vld [vmem:[#allocation5 + $0x74c] ss:$16 sps:$4 sm:$0xff]  }
 0x119   :  { %3881 = vmatprep.subr.bf16.mxu0 %v7289_v49  ;;  %4311 = vmatprep.subr.bf16.mxu1 %v7292_v50  ;;  %v7380_v49 = vld [vmem:[#allocation5 + $0x740] ss:$16 sps:$4 sm:$0xff]   ;;  %v7383_v50 = vld [vmem:[#allocation5 + $0x748] ss:$16 sps:$4 sm:$0xff]  }
 0x11c   :  { %3882 = vmatpush1.bf16.msra.mxu0 %v7287_v51  ;;  %4312 = vmatpush1.bf16.msra.mxu1 %v7290_v52  ;;  %v7388_v51 = vld [vmem:[#allocation5 + $0x764] ss:$16 sps:$4 sm:$0xff]   ;;  %v7391_v52 = vld [vmem:[#allocation5 + $0x76c] ss:$16 sps:$4 sm:$0xff]  }
 0x11d   :  { %3883 = vmatprep.subr.bf16.mxu0 %v7295_v53  ;;  %4313 = vmatprep.subr.bf16.mxu1 %v7298_v54  ;;  %v7386_v53 = vld [vmem:[#allocation5 + $0x760] ss:$16 sps:$4 sm:$0xff]   ;;  %v7389_v54 = vld [vmem:[#allocation5 + $0x768] ss:$16 sps:$4 sm:$0xff]  }
 0x120   :  { %3884 = vmatpush1.bf16.msra.mxu0 %v7293_v55  ;;  %4314 = vmatpush1.bf16.msra.mxu1 %v7296_v56  ;;  %v7394_v55 = vld [vmem:[#allocation5 + $0x784] ss:$16 sps:$4 sm:$0xff]   ;;  %v7397_v56 = vld [vmem:[#allocation5 + $0x78c] ss:$16 sps:$4 sm:$0xff]  }
 0x121   :  { %3885 = vmatprep.subr.bf16.mxu0 %v7301_v57  ;;  %4315 = vmatprep.subr.bf16.mxu1 %v7304_v58  ;;  %v7392_v57 = vld [vmem:[#allocation5 + $0x780] ss:$16 sps:$4 sm:$0xff]   ;;  %v7395_v58 = vld [vmem:[#allocation5 + $0x788] ss:$16 sps:$4 sm:$0xff]  }
 0x124   :  { %3886 = vmatpush1.bf16.msra.mxu0 %v7299_v59  ;;  %4316 = vmatpush1.bf16.msra.mxu1 %v7302_v60  ;;  %v7400_v59 = vld [vmem:[#allocation5 + $0x7a4] ss:$16 sps:$4 sm:$0xff]   ;;  %v7403_v60 = vld [vmem:[#allocation5 + $0x7ac] ss:$16 sps:$4 sm:$0xff]  }
 0x125   :  { %3887 = vmatprep.subr.bf16.mxu0 %v7307_v61  ;;  %4317 = vmatprep.subr.bf16.mxu1 %v7310_v62  ;;  %v7398_v61 = vld [vmem:[#allocation5 + $0x7a0] ss:$16 sps:$4 sm:$0xff]   ;;  %v7401_v62 = vld [vmem:[#allocation5 + $0x7a8] ss:$16 sps:$4 sm:$0xff]  }
 0x128   :  { %3888 = vmatpush1.bf16.msra.mxu0 %v7305_v63  ;;  %4318 = vmatpush1.bf16.msra.mxu1 %v7308_v0  ;;  %v7406_v63 = vld [vmem:[#allocation5 + $0x7c4] ss:$16 sps:$4 sm:$0xff]   ;;  %v7409_v0 = vld [vmem:[#allocation5 + $0x7cc] ss:$16 sps:$4 sm:$0xff]  }
 0x129   :  { %3889 = vmatprep.subr.bf16.mxu0 %v7313_v1  ;;  %4319 = vmatprep.subr.bf16.mxu1 %v7316_v2  ;;  %v7404_v1 = vld [vmem:[#allocation5 + $0x7c0] ss:$16 sps:$4 sm:$0xff]   ;;  %v7407_v2 = vld [vmem:[#allocation5 + $0x7c8] ss:$16 sps:$4 sm:$0xff]  }
 0x12c   :  { %3890 = vmatpush1.bf16.msra.mxu0 %v7311_v3  ;;  %4320 = vmatpush1.bf16.msra.mxu1 %v7314_v4  ;;  %v7412_v3 = vld [vmem:[#allocation5 + $0x7e4] ss:$16 sps:$4 sm:$0xff]   ;;  %v7415_v4 = vld [vmem:[#allocation5 + $0x7ec] ss:$16 sps:$4 sm:$0xff]  }
 0x12d   :  { %3902 = vmatprep.subr.bf16.mxu0 %v7322_v5  ;;  %4332 = vmatprep.subr.bf16.mxu1 %v7325_v6  ;;  %v7410_v5 = vld [vmem:[#allocation5 + $0x7e0] ss:$16 sps:$4 sm:$0xff]   ;;  %v7413_v6 = vld [vmem:[#allocation5 + $0x7e8] ss:$16 sps:$4 sm:$0xff]  }
 0x12f   :  { %3892 = vmatmul.mubr.bf16.vlgmr.msra.gmra.mrb[0].mxu0 %v7317_v7  ;;  %4322 = vmatmul.mubr.bf16.vlgmr.msra.gmra.mrb[0].mxu1 %v7317_v7  ;;  %v7421_v7 = vld [vmem:[#allocation5 + $0x804] ss:$16 sps:$4 sm:$0xff]  }
 0x130   :  { %3903 = vmatpush1.bf16.msra.mxu0 %v7320_v8  ;;  %4333 = vmatpush1.bf16.msra.mxu1 %v7323_v9  ;;  %v7424_v8 = vld [vmem:[#allocation5 + $0x80c] ss:$16 sps:$4 sm:$0xff]  }
 0x131   :  { %3904 = vmatprep.subr.bf16.mxu0 %v7328_v10  ;;  %4334 = vmatprep.subr.bf16.mxu1 %v7331_v11  ;;  %v7416_v9 = vld [vmem:[#allocation2 + $0x18] ss:$76 sps:$4 sm:$0xff]   ;;  %v7422_v11 = vld [vmem:[#allocation5 + $0x808] ss:$16 sps:$4 sm:$0xff]  }
 0x132   :  { %3934 = vmatprep.mubr.bf16.mxu0 %v7418_v12  ;;  %4364 = vmatprep.mubr.bf16.mxu1 %v7418_v12  ;;  %v7419_v10 = vld [vmem:[#allocation5 + $0x800] ss:$16 sps:$4 sm:$0xff]   ;;  %v7427_v12 = vld [vmem:[#allocation5 + $0x824] ss:$16 sps:$4 sm:$0xff]  }
 0x134   :  { %3905 = vmatpush1.bf16.msra.mxu0 %v7326_v13  ;;  %4335 = vmatpush1.bf16.msra.mxu1 %v7329_v14  ;;  %v7430_v13 = vld [vmem:[#allocation5 + $0x82c] ss:$16 sps:$4 sm:$0xff]  }
 0x135   :  { %3906 = vmatprep.subr.bf16.mxu0 %v7334_v15  ;;  %4336 = vmatprep.subr.bf16.mxu1 %v7337_v16  ;;  %v7517_v14 = vld [vmem:[#allocation2 + $0x24] ss:$76 sps:$4 sm:$0xff]   ;;  %v7425_v15 = vld [vmem:[#allocation5 + $0x820] ss:$16 sps:$4 sm:$0xff]  }
 0x136   :  { %v7428_v16 = vld [vmem:[#allocation5 + $0x828] ss:$16 sps:$4 sm:$0xff]  }
 0x138   :  { %3907 = vmatpush1.bf16.msra.mxu0 %v7332_v17  ;;  %4337 = vmatpush1.bf16.msra.mxu1 %v7335_v18  ;;  %v7433_v17 = vld [vmem:[#allocation5 + $0x844] ss:$16 sps:$4 sm:$0xff]   ;;  %v7436_v18 = vld [vmem:[#allocation5 + $0x84c] ss:$16 sps:$4 sm:$0xff]  }
 0x139   :  { %3908 = vmatprep.subr.bf16.mxu0 %v7340_v19  ;;  %4338 = vmatprep.subr.bf16.mxu1 %v7343_v20  ;;  %v7431_v19 = vld [vmem:[#allocation5 + $0x840] ss:$16 sps:$4 sm:$0xff]   ;;  %v7434_v20 = vld [vmem:[#allocation5 + $0x848] ss:$16 sps:$4 sm:$0xff]  }
 0x13c   :  { %3909 = vmatpush1.bf16.msra.mxu0 %v7338_v21  ;;  %4339 = vmatpush1.bf16.msra.mxu1 %v7341_v22  ;;  %v7439_v21 = vld [vmem:[#allocation5 + $0x864] ss:$16 sps:$4 sm:$0xff]   ;;  %v7442_v22 = vld [vmem:[#allocation5 + $0x86c] ss:$16 sps:$4 sm:$0xff]  }
 0x13d   :  { %3910 = vmatprep.subr.bf16.mxu0 %v7346_v23  ;;  %4340 = vmatprep.subr.bf16.mxu1 %v7349_v24  ;;  %v7437_v23 = vld [vmem:[#allocation5 + $0x860] ss:$16 sps:$4 sm:$0xff]   ;;  %v7440_v24 = vld [vmem:[#allocation5 + $0x868] ss:$16 sps:$4 sm:$0xff]  }
 0x140   :  { %3911 = vmatpush1.bf16.msra.mxu0 %v7344_v25  ;;  %4341 = vmatpush1.bf16.msra.mxu1 %v7347_v26  ;;  %v7445_v25 = vld [vmem:[#allocation5 + $0x884] ss:$16 sps:$4 sm:$0xff]   ;;  %v7448_v26 = vld [vmem:[#allocation5 + $0x88c] ss:$16 sps:$4 sm:$0xff]  }
 0x141   :  { %3912 = vmatprep.subr.bf16.mxu0 %v7352_v27  ;;  %4342 = vmatprep.subr.bf16.mxu1 %v7355_v28  ;;  %v7443_v27 = vld [vmem:[#allocation5 + $0x880] ss:$16 sps:$4 sm:$0xff]   ;;  %v7446_v28 = vld [vmem:[#allocation5 + $0x888] ss:$16 sps:$4 sm:$0xff]  }
 0x144   :  { %3913 = vmatpush1.bf16.msra.mxu0 %v7350_v29  ;;  %4343 = vmatpush1.bf16.msra.mxu1 %v7353_v30  ;;  %v7451_v29 = vld [vmem:[#allocation5 + $0x8a4] ss:$16 sps:$4 sm:$0xff]   ;;  %v7454_v30 = vld [vmem:[#allocation5 + $0x8ac] ss:$16 sps:$4 sm:$0xff]  }
 0x145   :  { %3914 = vmatprep.subr.bf16.mxu0 %v7358_v31  ;;  %4344 = vmatprep.subr.bf16.mxu1 %v7361_v32  ;;  %v7449_v31 = vld [vmem:[#allocation5 + $0x8a0] ss:$16 sps:$4 sm:$0xff]   ;;  %v7452_v32 = vld [vmem:[#allocation5 + $0x8a8] ss:$16 sps:$4 sm:$0xff]  }
 0x148   :  { %3915 = vmatpush1.bf16.msra.mxu0 %v7356_v33  ;;  %4345 = vmatpush1.bf16.msra.mxu1 %v7359_v34  ;;  %v7457_v33 = vld [vmem:[#allocation5 + $0x8c4] ss:$16 sps:$4 sm:$0xff]   ;;  %v7460_v34 = vld [vmem:[#allocation5 + $0x8cc] ss:$16 sps:$4 sm:$0xff]  }
 0x149   :  { %3916 = vmatprep.subr.bf16.mxu0 %v7364_v35  ;;  %4346 = vmatprep.subr.bf16.mxu1 %v7367_v36  ;;  %v7455_v35 = vld [vmem:[#allocation5 + $0x8c0] ss:$16 sps:$4 sm:$0xff]   ;;  %v7458_v36 = vld [vmem:[#allocation5 + $0x8c8] ss:$16 sps:$4 sm:$0xff]  }
 0x14c   :  { %3917 = vmatpush1.bf16.msra.mxu0 %v7362_v37  ;;  %4347 = vmatpush1.bf16.msra.mxu1 %v7365_v38  ;;  %v7463_v37 = vld [vmem:[#allocation5 + $0x8e4] ss:$16 sps:$4 sm:$0xff]   ;;  %v7466_v38 = vld [vmem:[#allocation5 + $0x8ec] ss:$16 sps:$4 sm:$0xff]  }
 0x14d   :  { %3918 = vmatprep.subr.bf16.mxu0 %v7370_v39  ;;  %4348 = vmatprep.subr.bf16.mxu1 %v7373_v40  ;;  %v7461_v39 = vld [vmem:[#allocation5 + $0x8e0] ss:$16 sps:$4 sm:$0xff]   ;;  %v7464_v40 = vld [vmem:[#allocation5 + $0x8e8] ss:$16 sps:$4 sm:$0xff]  }
 0x150   :  { %3919 = vmatpush1.bf16.msra.mxu0 %v7368_v41  ;;  %4349 = vmatpush1.bf16.msra.mxu1 %v7371_v42  ;;  %v7469_v41 = vld [vmem:[#allocation5 + $0x904] ss:$16 sps:$4 sm:$0xff]   ;;  %v7472_v42 = vld [vmem:[#allocation5 + $0x90c] ss:$16 sps:$4 sm:$0xff]  }
 0x151   :  { %3920 = vmatprep.subr.bf16.mxu0 %v7376_v43  ;;  %4350 = vmatprep.subr.bf16.mxu1 %v7379_v44  ;;  %v7467_v43 = vld [vmem:[#allocation5 + $0x900] ss:$16 sps:$4 sm:$0xff]   ;;  %v7470_v44 = vld [vmem:[#allocation5 + $0x908] ss:$16 sps:$4 sm:$0xff]  }
 0x154   :  { %3921 = vmatpush1.bf16.msra.mxu0 %v7374_v45  ;;  %4351 = vmatpush1.bf16.msra.mxu1 %v7377_v46  ;;  %v7475_v45 = vld [vmem:[#allocation5 + $0x924] ss:$16 sps:$4 sm:$0xff]   ;;  %v7478_v46 = vld [vmem:[#allocation5 + $0x92c] ss:$16 sps:$4 sm:$0xff]  }
 0x155   :  { %3922 = vmatprep.subr.bf16.mxu0 %v7382_v47  ;;  %4352 = vmatprep.subr.bf16.mxu1 %v7385_v48  ;;  %v7473_v47 = vld [vmem:[#allocation5 + $0x920] ss:$16 sps:$4 sm:$0xff]   ;;  %v7476_v48 = vld [vmem:[#allocation5 + $0x928] ss:$16 sps:$4 sm:$0xff]  }
 0x158   :  { %3923 = vmatpush1.bf16.msra.mxu0 %v7380_v49  ;;  %4353 = vmatpush1.bf16.msra.mxu1 %v7383_v50  ;;  %v7481_v49 = vld [vmem:[#allocation5 + $0x944] ss:$16 sps:$4 sm:$0xff]   ;;  %v7484_v50 = vld [vmem:[#allocation5 + $0x94c] ss:$16 sps:$4 sm:$0xff]  }
 0x159   :  { %3924 = vmatprep.subr.bf16.mxu0 %v7388_v51  ;;  %4354 = vmatprep.subr.bf16.mxu1 %v7391_v52  ;;  %v7479_v51 = vld [vmem:[#allocation5 + $0x940] ss:$16 sps:$4 sm:$0xff]   ;;  %v7482_v52 = vld [vmem:[#allocation5 + $0x948] ss:$16 sps:$4 sm:$0xff]  }
 0x15c   :  { %3925 = vmatpush1.bf16.msra.mxu0 %v7386_v53  ;;  %4355 = vmatpush1.bf16.msra.mxu1 %v7389_v54  ;;  %v7487_v53 = vld [vmem:[#allocation5 + $0x964] ss:$16 sps:$4 sm:$0xff]   ;;  %v7490_v54 = vld [vmem:[#allocation5 + $0x96c] ss:$16 sps:$4 sm:$0xff]  }
 0x15d   :  { %3926 = vmatprep.subr.bf16.mxu0 %v7394_v55  ;;  %4356 = vmatprep.subr.bf16.mxu1 %v7397_v56  ;;  %v7485_v55 = vld [vmem:[#allocation5 + $0x960] ss:$16 sps:$4 sm:$0xff]   ;;  %v7488_v56 = vld [vmem:[#allocation5 + $0x968] ss:$16 sps:$4 sm:$0xff]  }
 0x160   :  { %3927 = vmatpush1.bf16.msra.mxu0 %v7392_v57  ;;  %4357 = vmatpush1.bf16.msra.mxu1 %v7395_v58  ;;  %v7493_v57 = vld [vmem:[#allocation5 + $0x984] ss:$16 sps:$4 sm:$0xff]   ;;  %v7496_v58 = vld [vmem:[#allocation5 + $0x98c] ss:$16 sps:$4 sm:$0xff]  }
 0x161   :  { %3928 = vmatprep.subr.bf16.mxu0 %v7400_v59  ;;  %4358 = vmatprep.subr.bf16.mxu1 %v7403_v60  ;;  %v7491_v59 = vld [vmem:[#allocation5 + $0x980] ss:$16 sps:$4 sm:$0xff]   ;;  %v7494_v60 = vld [vmem:[#allocation5 + $0x988] ss:$16 sps:$4 sm:$0xff]  }
 0x164   :  { %3929 = vmatpush1.bf16.msra.mxu0 %v7398_v61  ;;  %4359 = vmatpush1.bf16.msra.mxu1 %v7401_v62  ;;  %v7499_v61 = vld [vmem:[#allocation5 + $0x9a4] ss:$16 sps:$4 sm:$0xff]   ;;  %v7502_v62 = vld [vmem:[#allocation5 + $0x9ac] ss:$16 sps:$4 sm:$0xff]  }
 0x165   :  { %3930 = vmatprep.subr.bf16.mxu0 %v7406_v63  ;;  %4360 = vmatprep.subr.bf16.mxu1 %v7409_v0  ;;  %v7497_v63 = vld [vmem:[#allocation5 + $0x9a0] ss:$16 sps:$4 sm:$0xff]   ;;  %v7500_v0 = vld [vmem:[#allocation5 + $0x9a8] ss:$16 sps:$4 sm:$0xff]  }
 0x168   :  { %3931 = vmatpush1.bf16.msra.mxu0 %v7404_v1  ;;  %4361 = vmatpush1.bf16.msra.mxu1 %v7407_v2  ;;  %v7505_v1 = vld [vmem:[#allocation5 + $0x9c4] ss:$16 sps:$4 sm:$0xff]   ;;  %v7508_v2 = vld [vmem:[#allocation5 + $0x9cc] ss:$16 sps:$4 sm:$0xff]  }
 0x169   :  { %3932 = vmatprep.subr.bf16.mxu0 %v7412_v3  ;;  %4362 = vmatprep.subr.bf16.mxu1 %v7415_v4  ;;  %v7503_v3 = vld [vmem:[#allocation5 + $0x9c0] ss:$16 sps:$4 sm:$0xff]   ;;  %v7506_v4 = vld [vmem:[#allocation5 + $0x9c8] ss:$16 sps:$4 sm:$0xff]  }
 0x16c   :  { %3933 = vmatpush1.bf16.msra.mxu0 %v7410_v5  ;;  %4363 = vmatpush1.bf16.msra.mxu1 %v7413_v6  ;;  %v7511_v5 = vld [vmem:[#allocation5 + $0x9e4] ss:$16 sps:$4 sm:$0xff]   ;;  %v7514_v6 = vld [vmem:[#allocation5 + $0x9ec] ss:$16 sps:$4 sm:$0xff]  }
 0x16d   :  { %3945 = vmatprep.subr.bf16.mxu0 %v7421_v7  ;;  %4375 = vmatprep.subr.bf16.mxu1 %v7424_v8  ;;  %v7509_v7 = vld [vmem:[#allocation5 + $0x9e0] ss:$16 sps:$4 sm:$0xff]   ;;  %v7512_v8 = vld [vmem:[#allocation5 + $0x9e8] ss:$16 sps:$4 sm:$0xff]  }
 0x16f   :  { %3935 = vmatmul.mubr.bf16.vlgmr.msra.gmra.mrb[0].mxu0 %v7416_v9  ;;  %4365 = vmatmul.mubr.bf16.vlgmr.msra.gmra.mrb[0].mxu1 %v7416_v9  ;;  %v7515_v9 = vld [vmem:[#allocation2 + $0x20] ss:$76 sps:$4 sm:$0xff]  }
 0x170   :  { %3946 = vmatpush1.bf16.msra.mxu0 %v7419_v10  ;;  %4376 = vmatpush1.bf16.msra.mxu1 %v7422_v11  ;;  %v7520_v10 = vld [vmem:[#allocation5 + $0xa04] ss:$16 sps:$4 sm:$0xff]   ;;  %v7523_v11 = vld [vmem:[#allocation5 + $0xa0c] ss:$16 sps:$4 sm:$0xff]  }
 0x171   :  { %3947 = vmatprep.subr.bf16.mxu0 %v7427_v12  ;;  %4377 = vmatprep.subr.bf16.mxu1 %v7430_v13  ;;  %v7518_v12 = vld [vmem:[#allocation5 + $0xa00] ss:$16 sps:$4 sm:$0xff]   ;;  %v7521_v13 = vld [vmem:[#allocation5 + $0xa08] ss:$16 sps:$4 sm:$0xff]  }
 0x172   :  { %3977 = vmatprep.mubr.bf16.mxu0 %v7517_v14  ;;  %4407 = vmatprep.mubr.bf16.mxu1 %v7517_v14  ;;  %v7526_v14 = vld [vmem:[#allocation5 + $0xa24] ss:$16 sps:$4 sm:$0xff]  }
 0x174   :  { %3948 = vmatpush1.bf16.msra.mxu0 %v7425_v15  ;;  %4378 = vmatpush1.bf16.msra.mxu1 %v7428_v16  ;;  %v7529_v15 = vld [vmem:[#allocation5 + $0xa2c] ss:$16 sps:$4 sm:$0xff]   ;;  %v7616_v16 = vld [vmem:[#allocation2 + $0x2c] ss:$76 sps:$4 sm:$0xff]  }
 0x175   :  { %3949 = vmatprep.subr.bf16.mxu0 %v7433_v17  ;;  %4379 = vmatprep.subr.bf16.mxu1 %v7436_v18  ;;  %v7524_v17 = vld [vmem:[#allocation5 + $0xa20] ss:$16 sps:$4 sm:$0xff]   ;;  %v7527_v18 = vld [vmem:[#allocation5 + $0xa28] ss:$16 sps:$4 sm:$0xff]  }
 0x178   :  { %3950 = vmatpush1.bf16.msra.mxu0 %v7431_v19  ;;  %4380 = vmatpush1.bf16.msra.mxu1 %v7434_v20  ;;  %v7532_v19 = vld [vmem:[#allocation5 + $0xa44] ss:$16 sps:$4 sm:$0xff]   ;;  %v7535_v20 = vld [vmem:[#allocation5 + $0xa4c] ss:$16 sps:$4 sm:$0xff]  }
 0x179   :  { %3951 = vmatprep.subr.bf16.mxu0 %v7439_v21  ;;  %4381 = vmatprep.subr.bf16.mxu1 %v7442_v22  ;;  %v7530_v21 = vld [vmem:[#allocation5 + $0xa40] ss:$16 sps:$4 sm:$0xff]   ;;  %v7533_v22 = vld [vmem:[#allocation5 + $0xa48] ss:$16 sps:$4 sm:$0xff]  }
 0x17c   :  { %3952 = vmatpush1.bf16.msra.mxu0 %v7437_v23  ;;  %4382 = vmatpush1.bf16.msra.mxu1 %v7440_v24  ;;  %v7538_v23 = vld [vmem:[#allocation5 + $0xa64] ss:$16 sps:$4 sm:$0xff]   ;;  %v7541_v24 = vld [vmem:[#allocation5 + $0xa6c] ss:$16 sps:$4 sm:$0xff]  }
 0x17d   :  { %3953 = vmatprep.subr.bf16.mxu0 %v7445_v25  ;;  %4383 = vmatprep.subr.bf16.mxu1 %v7448_v26  ;;  %v7536_v25 = vld [vmem:[#allocation5 + $0xa60] ss:$16 sps:$4 sm:$0xff]   ;;  %v7539_v26 = vld [vmem:[#allocation5 + $0xa68] ss:$16 sps:$4 sm:$0xff]  }
 0x180   :  { %3954 = vmatpush1.bf16.msra.mxu0 %v7443_v27  ;;  %4384 = vmatpush1.bf16.msra.mxu1 %v7446_v28  ;;  %v7544_v27 = vld [vmem:[#allocation5 + $0xa84] ss:$16 sps:$4 sm:$0xff]   ;;  %v7547_v28 = vld [vmem:[#allocation5 + $0xa8c] ss:$16 sps:$4 sm:$0xff]  }
 0x181   :  { %3955 = vmatprep.subr.bf16.mxu0 %v7451_v29  ;;  %4385 = vmatprep.subr.bf16.mxu1 %v7454_v30  ;;  %v7542_v29 = vld [vmem:[#allocation5 + $0xa80] ss:$16 sps:$4 sm:$0xff]   ;;  %v7545_v30 = vld [vmem:[#allocation5 + $0xa88] ss:$16 sps:$4 sm:$0xff]  }
 0x184   :  { %3956 = vmatpush1.bf16.msra.mxu0 %v7449_v31  ;;  %4386 = vmatpush1.bf16.msra.mxu1 %v7452_v32  ;;  %v7550_v31 = vld [vmem:[#allocation5 + $0xaa4] ss:$16 sps:$4 sm:$0xff]   ;;  %v7553_v32 = vld [vmem:[#allocation5 + $0xaac] ss:$16 sps:$4 sm:$0xff]  }
 0x185   :  { %3957 = vmatprep.subr.bf16.mxu0 %v7457_v33  ;;  %4387 = vmatprep.subr.bf16.mxu1 %v7460_v34  ;;  %v7548_v33 = vld [vmem:[#allocation5 + $0xaa0] ss:$16 sps:$4 sm:$0xff]   ;;  %v7551_v34 = vld [vmem:[#allocation5 + $0xaa8] ss:$16 sps:$4 sm:$0xff]  }
 0x188   :  { %3958 = vmatpush1.bf16.msra.mxu0 %v7455_v35  ;;  %4388 = vmatpush1.bf16.msra.mxu1 %v7458_v36  ;;  %v7556_v35 = vld [vmem:[#allocation5 + $0xac4] ss:$16 sps:$4 sm:$0xff]   ;;  %v7559_v36 = vld [vmem:[#allocation5 + $0xacc] ss:$16 sps:$4 sm:$0xff]  }
 0x189   :  { %3959 = vmatprep.subr.bf16.mxu0 %v7463_v37  ;;  %4389 = vmatprep.subr.bf16.mxu1 %v7466_v38  ;;  %v7554_v37 = vld [vmem:[#allocation5 + $0xac0] ss:$16 sps:$4 sm:$0xff]   ;;  %v7557_v38 = vld [vmem:[#allocation5 + $0xac8] ss:$16 sps:$4 sm:$0xff]  }
 0x18c   :  { %3960 = vmatpush1.bf16.msra.mxu0 %v7461_v39  ;;  %4390 = vmatpush1.bf16.msra.mxu1 %v7464_v40  ;;  %v7562_v39 = vld [vmem:[#allocation5 + $0xae4] ss:$16 sps:$4 sm:$0xff]   ;;  %v7565_v40 = vld [vmem:[#allocation5 + $0xaec] ss:$16 sps:$4 sm:$0xff]  }
 0x18d   :  { %3961 = vmatprep.subr.bf16.mxu0 %v7469_v41  ;;  %4391 = vmatprep.subr.bf16.mxu1 %v7472_v42  ;;  %v7560_v41 = vld [vmem:[#allocation5 + $0xae0] ss:$16 sps:$4 sm:$0xff]   ;;  %v7563_v42 = vld [vmem:[#allocation5 + $0xae8] ss:$16 sps:$4 sm:$0xff]  }
 0x190   :  { %3962 = vmatpush1.bf16.msra.mxu0 %v7467_v43  ;;  %4392 = vmatpush1.bf16.msra.mxu1 %v7470_v44  ;;  %v7568_v43 = vld [vmem:[#allocation5 + $0xb04] ss:$16 sps:$4 sm:$0xff]   ;;  %v7571_v44 = vld [vmem:[#allocation5 + $0xb0c] ss:$16 sps:$4 sm:$0xff]  }
 0x191   :  { %3963 = vmatprep.subr.bf16.mxu0 %v7475_v45  ;;  %4393 = vmatprep.subr.bf16.mxu1 %v7478_v46  ;;  %v7566_v45 = vld [vmem:[#allocation5 + $0xb00] ss:$16 sps:$4 sm:$0xff]   ;;  %v7569_v46 = vld [vmem:[#allocation5 + $0xb08] ss:$16 sps:$4 sm:$0xff]  }
 0x194   :  { %3964 = vmatpush1.bf16.msra.mxu0 %v7473_v47  ;;  %4394 = vmatpush1.bf16.msra.mxu1 %v7476_v48  ;;  %v7574_v47 = vld [vmem:[#allocation5 + $0xb24] ss:$16 sps:$4 sm:$0xff]   ;;  %v7577_v48 = vld [vmem:[#allocation5 + $0xb2c] ss:$16 sps:$4 sm:$0xff]  }
 0x195   :  { %3965 = vmatprep.subr.bf16.mxu0 %v7481_v49  ;;  %4395 = vmatprep.subr.bf16.mxu1 %v7484_v50  ;;  %v7572_v49 = vld [vmem:[#allocation5 + $0xb20] ss:$16 sps:$4 sm:$0xff]   ;;  %v7575_v50 = vld [vmem:[#allocation5 + $0xb28] ss:$16 sps:$4 sm:$0xff]  }
 0x198   :  { %3966 = vmatpush1.bf16.msra.mxu0 %v7479_v51  ;;  %4396 = vmatpush1.bf16.msra.mxu1 %v7482_v52  ;;  %v7580_v51 = vld [vmem:[#allocation5 + $0xb44] ss:$16 sps:$4 sm:$0xff]   ;;  %v7583_v52 = vld [vmem:[#allocation5 + $0xb4c] ss:$16 sps:$4 sm:$0xff]  }
 0x199   :  { %3967 = vmatprep.subr.bf16.mxu0 %v7487_v53  ;;  %4397 = vmatprep.subr.bf16.mxu1 %v7490_v54  ;;  %v7578_v53 = vld [vmem:[#allocation5 + $0xb40] ss:$16 sps:$4 sm:$0xff]   ;;  %v7581_v54 = vld [vmem:[#allocation5 + $0xb48] ss:$16 sps:$4 sm:$0xff]  }
 0x19c   :  { %3968 = vmatpush1.bf16.msra.mxu0 %v7485_v55  ;;  %4398 = vmatpush1.bf16.msra.mxu1 %v7488_v56  ;;  %v7586_v55 = vld [vmem:[#allocation5 + $0xb64] ss:$16 sps:$4 sm:$0xff]   ;;  %v7589_v56 = vld [vmem:[#allocation5 + $0xb6c] ss:$16 sps:$4 sm:$0xff]  }
 0x19d   :  { %3969 = vmatprep.subr.bf16.mxu0 %v7493_v57  ;;  %4399 = vmatprep.subr.bf16.mxu1 %v7496_v58  ;;  %v7584_v57 = vld [vmem:[#allocation5 + $0xb60] ss:$16 sps:$4 sm:$0xff]   ;;  %v7587_v58 = vld [vmem:[#allocation5 + $0xb68] ss:$16 sps:$4 sm:$0xff]  }
 0x1a0   :  { %3970 = vmatpush1.bf16.msra.mxu0 %v7491_v59  ;;  %4400 = vmatpush1.bf16.msra.mxu1 %v7494_v60  ;;  %v7592_v59 = vld [vmem:[#allocation5 + $0xb84] ss:$16 sps:$4 sm:$0xff]   ;;  %v7595_v60 = vld [vmem:[#allocation5 + $0xb8c] ss:$16 sps:$4 sm:$0xff]  }
 0x1a1   :  { %3971 = vmatprep.subr.bf16.mxu0 %v7499_v61  ;;  %4401 = vmatprep.subr.bf16.mxu1 %v7502_v62  ;;  %v7590_v61 = vld [vmem:[#allocation5 + $0xb80] ss:$16 sps:$4 sm:$0xff]   ;;  %v7593_v62 = vld [vmem:[#allocation5 + $0xb88] ss:$16 sps:$4 sm:$0xff]  }
 0x1a4   :  { %3972 = vmatpush1.bf16.msra.mxu0 %v7497_v63  ;;  %4402 = vmatpush1.bf16.msra.mxu1 %v7500_v0  ;;  %v7598_v63 = vld [vmem:[#allocation5 + $0xba4] ss:$16 sps:$4 sm:$0xff]   ;;  %v7601_v0 = vld [vmem:[#allocation5 + $0xbac] ss:$16 sps:$4 sm:$0xff]  }
 0x1a5   :  { %3973 = vmatprep.subr.bf16.mxu0 %v7505_v1  ;;  %4403 = vmatprep.subr.bf16.mxu1 %v7508_v2  ;;  %v7596_v1 = vld [vmem:[#allocation5 + $0xba0] ss:$16 sps:$4 sm:$0xff]   ;;  %v7599_v2 = vld [vmem:[#allocation5 + $0xba8] ss:$16 sps:$4 sm:$0xff]  }
 0x1a8   :  { %3974 = vmatpush1.bf16.msra.mxu0 %v7503_v3  ;;  %4404 = vmatpush1.bf16.msra.mxu1 %v7506_v4  ;;  %v7604_v3 = vld [vmem:[#allocation5 + $0xbc4] ss:$16 sps:$4 sm:$0xff]   ;;  %v7607_v4 = vld [vmem:[#allocation5 + $0xbcc] ss:$16 sps:$4 sm:$0xff]  }
 0x1a9   :  { %3975 = vmatprep.subr.bf16.mxu0 %v7511_v5  ;;  %4405 = vmatprep.subr.bf16.mxu1 %v7514_v6  ;;  %v7602_v5 = vld [vmem:[#allocation5 + $0xbc0] ss:$16 sps:$4 sm:$0xff]   ;;  %v7605_v6 = vld [vmem:[#allocation5 + $0xbc8] ss:$16 sps:$4 sm:$0xff]  }
 0x1ac   :  { %3976 = vmatpush1.bf16.msra.mxu0 %v7509_v7  ;;  %4406 = vmatpush1.bf16.msra.mxu1 %v7512_v8  ;;  %v7610_v7 = vld [vmem:[#allocation5 + $0xbe4] ss:$16 sps:$4 sm:$0xff]   ;;  %v7613_v8 = vld [vmem:[#allocation5 + $0xbec] ss:$16 sps:$4 sm:$0xff]  }
 0x1ad   :  { %3988 = vmatprep.subr.bf16.mxu0 %v7520_v10  ;;  %4418 = vmatprep.subr.bf16.mxu1 %v7523_v11  ;;  %v7611_v10 = vld [vmem:[#allocation5 + $0xbe8] ss:$16 sps:$4 sm:$0xff]   ;;  %v7614_v11 = vld [vmem:[#allocation2 + $0x28] ss:$76 sps:$4 sm:$0xff]  }
 0x1af   :  { %3978 = vmatmul.mubr.bf16.vlgmr.msra.gmra.mrb[0].mxu0 %v7515_v9  ;;  %4408 = vmatmul.mubr.bf16.vlgmr.msra.gmra.mrb[0].mxu1 %v7515_v9  ;;  %v7608_v9 = vld [vmem:[#allocation5 + $0xbe0] ss:$16 sps:$4 sm:$0xff]  }
 0x1b0   :  { %3989 = vmatpush1.bf16.msra.mxu0 %v7518_v12  ;;  %4419 = vmatpush1.bf16.msra.mxu1 %v7521_v13  ;;  %v7619_v12 = vld [vmem:[#allocation5 + $0xc04] ss:$16 sps:$4 sm:$0xff]   ;;  %v7622_v13 = vld [vmem:[#allocation5 + $0xc0c] ss:$16 sps:$4 sm:$0xff]  }
 0x1b1   :  { %3990 = vmatprep.subr.bf16.mxu0 %v7526_v14  ;;  %4420 = vmatprep.subr.bf16.mxu1 %v7529_v15  ;;  %v7617_v14 = vld [vmem:[#allocation5 + $0xc00] ss:$16 sps:$4 sm:$0xff]   ;;  %v7620_v15 = vld [vmem:[#allocation5 + $0xc08] ss:$16 sps:$4 sm:$0xff]  }
 0x1b2   :  { %4020 = vmatprep.mubr.bf16.mxu0 %v7616_v16  ;;  %4450 = vmatprep.mubr.bf16.mxu1 %v7616_v16  ;;  %v7625_v16 = vld [vmem:[#allocation5 + $0xc24] ss:$16 sps:$4 sm:$0xff]  }
 0x1b4   :  { %3991 = vmatpush1.bf16.msra.mxu0 %v7524_v17  ;;  %4421 = vmatpush1.bf16.msra.mxu1 %v7527_v18  ;;  %v7628_v17 = vld [vmem:[#allocation5 + $0xc2c] ss:$16 sps:$4 sm:$0xff]  }
 0x1b5   :  { %3992 = vmatprep.subr.bf16.mxu0 %v7532_v19  ;;  %4422 = vmatprep.subr.bf16.mxu1 %v7535_v20  ;;  %v7715_v18 = vld [vmem:[#allocation2 + $0x34] ss:$76 sps:$4 sm:$0xff]   ;;  %v7623_v19 = vld [vmem:[#allocation5 + $0xc20] ss:$16 sps:$4 sm:$0xff]  }
 0x1b6   :  { %v7626_v20 = vld [vmem:[#allocation5 + $0xc28] ss:$16 sps:$4 sm:$0xff]  }
 0x1b8   :  { %3993 = vmatpush1.bf16.msra.mxu0 %v7530_v21  ;;  %4423 = vmatpush1.bf16.msra.mxu1 %v7533_v22  ;;  %v7631_v21 = vld [vmem:[#allocation5 + $0xc44] ss:$16 sps:$4 sm:$0xff]   ;;  %v7634_v22 = vld [vmem:[#allocation5 + $0xc4c] ss:$16 sps:$4 sm:$0xff]  }
 0x1b9   :  { %3994 = vmatprep.subr.bf16.mxu0 %v7538_v23  ;;  %4424 = vmatprep.subr.bf16.mxu1 %v7541_v24  ;;  %v7629_v23 = vld [vmem:[#allocation5 + $0xc40] ss:$16 sps:$4 sm:$0xff]   ;;  %v7632_v24 = vld [vmem:[#allocation5 + $0xc48] ss:$16 sps:$4 sm:$0xff]  }
 0x1bc   :  { %3995 = vmatpush1.bf16.msra.mxu0 %v7536_v25  ;;  %4425 = vmatpush1.bf16.msra.mxu1 %v7539_v26  ;;  %v7637_v25 = vld [vmem:[#allocation5 + $0xc64] ss:$16 sps:$4 sm:$0xff]   ;;  %v7640_v26 = vld [vmem:[#allocation5 + $0xc6c] ss:$16 sps:$4 sm:$0xff]  }
 0x1bd   :  { %3996 = vmatprep.subr.bf16.mxu0 %v7544_v27  ;;  %4426 = vmatprep.subr.bf16.mxu1 %v7547_v28  ;;  %v7635_v27 = vld [vmem:[#allocation5 + $0xc60] ss:$16 sps:$4 sm:$0xff]   ;;  %v7638_v28 = vld [vmem:[#allocation5 + $0xc68] ss:$16 sps:$4 sm:$0xff]  }
 0x1c0   :  { %3997 = vmatpush1.bf16.msra.mxu0 %v7542_v29  ;;  %4427 = vmatpush1.bf16.msra.mxu1 %v7545_v30  ;;  %v7643_v29 = vld [vmem:[#allocation5 + $0xc84] ss:$16 sps:$4 sm:$0xff]   ;;  %v7646_v30 = vld [vmem:[#allocation5 + $0xc8c] ss:$16 sps:$4 sm:$0xff]  }
 0x1c1   :  { %3998 = vmatprep.subr.bf16.mxu0 %v7550_v31  ;;  %4428 = vmatprep.subr.bf16.mxu1 %v7553_v32  ;;  %v7641_v31 = vld [vmem:[#allocation5 + $0xc80] ss:$16 sps:$4 sm:$0xff]   ;;  %v7644_v32 = vld [vmem:[#allocation5 + $0xc88] ss:$16 sps:$4 sm:$0xff]  }
 0x1c4   :  { %3999 = vmatpush1.bf16.msra.mxu0 %v7548_v33  ;;  %4429 = vmatpush1.bf16.msra.mxu1 %v7551_v34  ;;  %v7649_v33 = vld [vmem:[#allocation5 + $0xca4] ss:$16 sps:$4 sm:$0xff]   ;;  %v7652_v34 = vld [vmem:[#allocation5 + $0xcac] ss:$16 sps:$4 sm:$0xff]  }
 0x1c5   :  { %4000 = vmatprep.subr.bf16.mxu0 %v7556_v35  ;;  %4430 = vmatprep.subr.bf16.mxu1 %v7559_v36  ;;  %v7647_v35 = vld [vmem:[#allocation5 + $0xca0] ss:$16 sps:$4 sm:$0xff]   ;;  %v7650_v36 = vld [vmem:[#allocation5 + $0xca8] ss:$16 sps:$4 sm:$0xff]  }
 0x1c8   :  { %4001 = vmatpush1.bf16.msra.mxu0 %v7554_v37  ;;  %4431 = vmatpush1.bf16.msra.mxu1 %v7557_v38  ;;  %v7655_v37 = vld [vmem:[#allocation5 + $0xcc4] ss:$16 sps:$4 sm:$0xff]   ;;  %v7658_v38 = vld [vmem:[#allocation5 + $0xccc] ss:$16 sps:$4 sm:$0xff]  }
 0x1c9   :  { %4002 = vmatprep.subr.bf16.mxu0 %v7562_v39  ;;  %4432 = vmatprep.subr.bf16.mxu1 %v7565_v40  ;;  %v7653_v39 = vld [vmem:[#allocation5 + $0xcc0] ss:$16 sps:$4 sm:$0xff]   ;;  %v7656_v40 = vld [vmem:[#allocation5 + $0xcc8] ss:$16 sps:$4 sm:$0xff]  }
 0x1cc   :  { %4003 = vmatpush1.bf16.msra.mxu0 %v7560_v41  ;;  %4433 = vmatpush1.bf16.msra.mxu1 %v7563_v42  ;;  %v7661_v41 = vld [vmem:[#allocation5 + $0xce4] ss:$16 sps:$4 sm:$0xff]   ;;  %v7664_v42 = vld [vmem:[#allocation5 + $0xcec] ss:$16 sps:$4 sm:$0xff]  }
 0x1cd   :  { %4004 = vmatprep.subr.bf16.mxu0 %v7568_v43  ;;  %4434 = vmatprep.subr.bf16.mxu1 %v7571_v44  ;;  %v7659_v43 = vld [vmem:[#allocation5 + $0xce0] ss:$16 sps:$4 sm:$0xff]   ;;  %v7662_v44 = vld [vmem:[#allocation5 + $0xce8] ss:$16 sps:$4 sm:$0xff]  }
 0x1d0   :  { %4005 = vmatpush1.bf16.msra.mxu0 %v7566_v45  ;;  %4435 = vmatpush1.bf16.msra.mxu1 %v7569_v46  ;;  %v7667_v45 = vld [vmem:[#allocation5 + $0xd04] ss:$16 sps:$4 sm:$0xff]   ;;  %v7670_v46 = vld [vmem:[#allocation5 + $0xd0c] ss:$16 sps:$4 sm:$0xff]  }
 0x1d1   :  { %4006 = vmatprep.subr.bf16.mxu0 %v7574_v47  ;;  %4436 = vmatprep.subr.bf16.mxu1 %v7577_v48  ;;  %v7665_v47 = vld [vmem:[#allocation5 + $0xd00] ss:$16 sps:$4 sm:$0xff]   ;;  %v7668_v48 = vld [vmem:[#allocation5 + $0xd08] ss:$16 sps:$4 sm:$0xff]  }
 0x1d4   :  { %4007 = vmatpush1.bf16.msra.mxu0 %v7572_v49  ;;  %4437 = vmatpush1.bf16.msra.mxu1 %v7575_v50  ;;  %v7673_v49 = vld [vmem:[#allocation5 + $0xd24] ss:$16 sps:$4 sm:$0xff]   ;;  %v7676_v50 = vld [vmem:[#allocation5 + $0xd2c] ss:$16 sps:$4 sm:$0xff]  }
 0x1d5   :  { %4008 = vmatprep.subr.bf16.mxu0 %v7580_v51  ;;  %4438 = vmatprep.subr.bf16.mxu1 %v7583_v52  ;;  %v7671_v51 = vld [vmem:[#allocation5 + $0xd20] ss:$16 sps:$4 sm:$0xff]   ;;  %v7674_v52 = vld [vmem:[#allocation5 + $0xd28] ss:$16 sps:$4 sm:$0xff]  }
 0x1d8   :  { %4009 = vmatpush1.bf16.msra.mxu0 %v7578_v53  ;;  %4439 = vmatpush1.bf16.msra.mxu1 %v7581_v54  ;;  %v7679_v53 = vld [vmem:[#allocation5 + $0xd44] ss:$16 sps:$4 sm:$0xff]   ;;  %v7682_v54 = vld [vmem:[#allocation5 + $0xd4c] ss:$16 sps:$4 sm:$0xff]  }
 0x1d9   :  { %4010 = vmatprep.subr.bf16.mxu0 %v7586_v55  ;;  %4440 = vmatprep.subr.bf16.mxu1 %v7589_v56  ;;  %v7677_v55 = vld [vmem:[#allocation5 + $0xd40] ss:$16 sps:$4 sm:$0xff]   ;;  %v7680_v56 = vld [vmem:[#allocation5 + $0xd48] ss:$16 sps:$4 sm:$0xff]  }
 0x1dc   :  { %4011 = vmatpush1.bf16.msra.mxu0 %v7584_v57  ;;  %4441 = vmatpush1.bf16.msra.mxu1 %v7587_v58  ;;  %v7685_v57 = vld [vmem:[#allocation5 + $0xd64] ss:$16 sps:$4 sm:$0xff]   ;;  %v7688_v58 = vld [vmem:[#allocation5 + $0xd6c] ss:$16 sps:$4 sm:$0xff]  }
 0x1dd   :  { %4012 = vmatprep.subr.bf16.mxu0 %v7592_v59  ;;  %4442 = vmatprep.subr.bf16.mxu1 %v7595_v60  ;;  %v7683_v59 = vld [vmem:[#allocation5 + $0xd60] ss:$16 sps:$4 sm:$0xff]   ;;  %v7686_v60 = vld [vmem:[#allocation5 + $0xd68] ss:$16 sps:$4 sm:$0xff]  }
 0x1e0   :  { %4013 = vmatpush1.bf16.msra.mxu0 %v7590_v61  ;;  %4443 = vmatpush1.bf16.msra.mxu1 %v7593_v62  ;;  %v7691_v61 = vld [vmem:[#allocation5 + $0xd84] ss:$16 sps:$4 sm:$0xff]   ;;  %v7694_v62 = vld [vmem:[#allocation5 + $0xd8c] ss:$16 sps:$4 sm:$0xff]  }
 0x1e1   :  { %4014 = vmatprep.subr.bf16.mxu0 %v7598_v63  ;;  %4444 = vmatprep.subr.bf16.mxu1 %v7601_v0  ;;  %v7689_v63 = vld [vmem:[#allocation5 + $0xd80] ss:$16 sps:$4 sm:$0xff]   ;;  %v7692_v0 = vld [vmem:[#allocation5 + $0xd88] ss:$16 sps:$4 sm:$0xff]  }
 0x1e4   :  { %4015 = vmatpush1.bf16.msra.mxu0 %v7596_v1  ;;  %4445 = vmatpush1.bf16.msra.mxu1 %v7599_v2  ;;  %v7697_v1 = vld [vmem:[#allocation5 + $0xda4] ss:$16 sps:$4 sm:$0xff]   ;;  %v7700_v2 = vld [vmem:[#allocation5 + $0xdac] ss:$16 sps:$4 sm:$0xff]  }
 0x1e5   :  { %4016 = vmatprep.subr.bf16.mxu0 %v7604_v3  ;;  %4446 = vmatprep.subr.bf16.mxu1 %v7607_v4  ;;  %v7695_v3 = vld [vmem:[#allocation5 + $0xda0] ss:$16 sps:$4 sm:$0xff]   ;;  %v7698_v4 = vld [vmem:[#allocation5 + $0xda8] ss:$16 sps:$4 sm:$0xff]  }
 0x1e8   :  { %4017 = vmatpush1.bf16.msra.mxu0 %v7602_v5  ;;  %4447 = vmatpush1.bf16.msra.mxu1 %v7605_v6  ;;  %v7703_v5 = vld [vmem:[#allocation5 + $0xdc4] ss:$16 sps:$4 sm:$0xff]   ;;  %v7706_v6 = vld [vmem:[#allocation5 + $0xdcc] ss:$16 sps:$4 sm:$0xff]  }
 0x1e9   :  { %4018 = vmatprep.subr.bf16.mxu0 %v7610_v7  ;;  %4448 = vmatprep.subr.bf16.mxu1 %v7613_v8  ;;  %v7701_v7 = vld [vmem:[#allocation5 + $0xdc0] ss:$16 sps:$4 sm:$0xff]   ;;  %v7704_v8 = vld [vmem:[#allocation5 + $0xdc8] ss:$16 sps:$4 sm:$0xff]  }
 0x1ec   :  { %4019 = vmatpush1.bf16.msra.mxu0 %v7608_v9  ;;  %4449 = vmatpush1.bf16.msra.mxu1 %v7611_v10  ;;  %v7709_v9 = vld [vmem:[#allocation5 + $0xde4] ss:$16 sps:$4 sm:$0xff]   ;;  %v7712_v10 = vld [vmem:[#allocation5 + $0xdec] ss:$16 sps:$4 sm:$0xff]  }
 0x1ed   :  { %4031 = vmatprep.subr.bf16.mxu0 %v7619_v12  ;;  %4461 = vmatprep.subr.bf16.mxu1 %v7622_v13  ;;  %v7710_v12 = vld [vmem:[#allocation5 + $0xde8] ss:$16 sps:$4 sm:$0xff]  }
 0x1ee   :  { %v7713_v13 = vld [vmem:[#allocation2 + $0x30] ss:$76 sps:$4 sm:$0xff]  }
 0x1ef   :  { %4021 = vmatmul.mubr.bf16.vlgmr.msra.gmra.mrb[0].mxu0 %v7614_v11  ;;  %4451 = vmatmul.mubr.bf16.vlgmr.msra.gmra.mrb[0].mxu1 %v7614_v11  ;;  %v7707_v11 = vld [vmem:[#allocation5 + $0xde0] ss:$16 sps:$4 sm:$0xff]  }
 0x1f0   :  { %4032 = vmatpush1.bf16.msra.mxu0 %v7617_v14  ;;  %4462 = vmatpush1.bf16.msra.mxu1 %v7620_v15  ;;  %v7718_v14 = vld [vmem:[#allocation5 + $0xe04] ss:$16 sps:$4 sm:$0xff]   ;;  %v7721_v15 = vld [vmem:[#allocation5 + $0xe0c] ss:$16 sps:$4 sm:$0xff]  }
 0x1f1   :  { %4033 = vmatprep.subr.bf16.mxu0 %v7625_v16  ;;  %4463 = vmatprep.subr.bf16.mxu1 %v7628_v17  ;;  %v7716_v16 = vld [vmem:[#allocation5 + $0xe00] ss:$16 sps:$4 sm:$0xff]   ;;  %v7719_v17 = vld [vmem:[#allocation5 + $0xe08] ss:$16 sps:$4 sm:$0xff]  }
 0x1f2   :  { %4063 = vmatprep.mubr.bf16.mxu0 %v7715_v18  ;;  %4493 = vmatprep.mubr.bf16.mxu1 %v7715_v18  ;;  %v7724_v18 = vld [vmem:[#allocation5 + $0xe24] ss:$16 sps:$4 sm:$0xff]  }
 0x1f4   :  { %4034 = vmatpush1.bf16.msra.mxu0 %v7623_v19  ;;  %4464 = vmatpush1.bf16.msra.mxu1 %v7626_v20  ;;  %v7727_v19 = vld [vmem:[#allocation5 + $0xe2c] ss:$16 sps:$4 sm:$0xff]   ;;  %v7814_v20 = vld [vmem:[#allocation2 + $0x3c] ss:$76 sps:$4 sm:$0xff]  }
 0x1f5   :  { %4035 = vmatprep.subr.bf16.mxu0 %v7631_v21  ;;  %4465 = vmatprep.subr.bf16.mxu1 %v7634_v22  ;;  %v7722_v21 = vld [vmem:[#allocation5 + $0xe20] ss:$16 sps:$4 sm:$0xff]   ;;  %v7725_v22 = vld [vmem:[#allocation5 + $0xe28] ss:$16 sps:$4 sm:$0xff]  }
 0x1f8   :  { %4036 = vmatpush1.bf16.msra.mxu0 %v7629_v23  ;;  %4466 = vmatpush1.bf16.msra.mxu1 %v7632_v24  ;;  %v7730_v23 = vld [vmem:[#allocation5 + $0xe44] ss:$16 sps:$4 sm:$0xff]   ;;  %v7733_v24 = vld [vmem:[#allocation5 + $0xe4c] ss:$16 sps:$4 sm:$0xff]  }
 0x1f9   :  { %4037 = vmatprep.subr.bf16.mxu0 %v7637_v25  ;;  %4467 = vmatprep.subr.bf16.mxu1 %v7640_v26  ;;  %v7728_v25 = vld [vmem:[#allocation5 + $0xe40] ss:$16 sps:$4 sm:$0xff]   ;;  %v7731_v26 = vld [vmem:[#allocation5 + $0xe48] ss:$16 sps:$4 sm:$0xff]  }
 0x1fc   :  { %4038 = vmatpush1.bf16.msra.mxu0 %v7635_v27  ;;  %4468 = vmatpush1.bf16.msra.mxu1 %v7638_v28  ;;  %v7736_v27 = vld [vmem:[#allocation5 + $0xe64] ss:$16 sps:$4 sm:$0xff]   ;;  %v7739_v28 = vld [vmem:[#allocation5 + $0xe6c] ss:$16 sps:$4 sm:$0xff]  }
 0x1fd   :  { %4039 = vmatprep.subr.bf16.mxu0 %v7643_v29  ;;  %4469 = vmatprep.subr.bf16.mxu1 %v7646_v30  ;;  %v7734_v29 = vld [vmem:[#allocation5 + $0xe60] ss:$16 sps:$4 sm:$0xff]   ;;  %v7737_v30 = vld [vmem:[#allocation5 + $0xe68] ss:$16 sps:$4 sm:$0xff]  }
 0x200   :  { %4040 = vmatpush1.bf16.msra.mxu0 %v7641_v31  ;;  %4470 = vmatpush1.bf16.msra.mxu1 %v7644_v32  ;;  %v7742_v31 = vld [vmem:[#allocation5 + $0xe84] ss:$16 sps:$4 sm:$0xff]   ;;  %v7745_v32 = vld [vmem:[#allocation5 + $0xe8c] ss:$16 sps:$4 sm:$0xff]  }
 0x201   :  { %4041 = vmatprep.subr.bf16.mxu0 %v7649_v33  ;;  %4471 = vmatprep.subr.bf16.mxu1 %v7652_v34  ;;  %v7740_v33 = vld [vmem:[#allocation5 + $0xe80] ss:$16 sps:$4 sm:$0xff]   ;;  %v7743_v34 = vld [vmem:[#allocation5 + $0xe88] ss:$16 sps:$4 sm:$0xff]  }
 0x204   :  { %4042 = vmatpush1.bf16.msra.mxu0 %v7647_v35  ;;  %4472 = vmatpush1.bf16.msra.mxu1 %v7650_v36  ;;  %v7748_v35 = vld [vmem:[#allocation5 + $0xea4] ss:$16 sps:$4 sm:$0xff]   ;;  %v7751_v36 = vld [vmem:[#allocation5 + $0xeac] ss:$16 sps:$4 sm:$0xff]  }
 0x205   :  { %4043 = vmatprep.subr.bf16.mxu0 %v7655_v37  ;;  %4473 = vmatprep.subr.bf16.mxu1 %v7658_v38  ;;  %v7746_v37 = vld [vmem:[#allocation5 + $0xea0] ss:$16 sps:$4 sm:$0xff]   ;;  %v7749_v38 = vld [vmem:[#allocation5 + $0xea8] ss:$16 sps:$4 sm:$0xff]  }
 0x208   :  { %4044 = vmatpush1.bf16.msra.mxu0 %v7653_v39  ;;  %4474 = vmatpush1.bf16.msra.mxu1 %v7656_v40  ;;  %v7754_v39 = vld [vmem:[#allocation5 + $0xec4] ss:$16 sps:$4 sm:$0xff]   ;;  %v7757_v40 = vld [vmem:[#allocation5 + $0xecc] ss:$16 sps:$4 sm:$0xff]  }
 0x209   :  { %4045 = vmatprep.subr.bf16.mxu0 %v7661_v41  ;;  %4475 = vmatprep.subr.bf16.mxu1 %v7664_v42  ;;  %v7752_v41 = vld [vmem:[#allocation5 + $0xec0] ss:$16 sps:$4 sm:$0xff]   ;;  %v7755_v42 = vld [vmem:[#allocation5 + $0xec8] ss:$16 sps:$4 sm:$0xff]  }
 0x20c   :  { %4046 = vmatpush1.bf16.msra.mxu0 %v7659_v43  ;;  %4476 = vmatpush1.bf16.msra.mxu1 %v7662_v44  ;;  %v7760_v43 = vld [vmem:[#allocation5 + $0xee4] ss:$16 sps:$4 sm:$0xff]   ;;  %v7763_v44 = vld [vmem:[#allocation5 + $0xeec] ss:$16 sps:$4 sm:$0xff]  }
 0x20d   :  { %4047 = vmatprep.subr.bf16.mxu0 %v7667_v45  ;;  %4477 = vmatprep.subr.bf16.mxu1 %v7670_v46  ;;  %v7758_v45 = vld [vmem:[#allocation5 + $0xee0] ss:$16 sps:$4 sm:$0xff]   ;;  %v7761_v46 = vld [vmem:[#allocation5 + $0xee8] ss:$16 sps:$4 sm:$0xff]  }
 0x210   :  { %4048 = vmatpush1.bf16.msra.mxu0 %v7665_v47  ;;  %4478 = vmatpush1.bf16.msra.mxu1 %v7668_v48  ;;  %v7766_v47 = vld [vmem:[#allocation5 + $0xf04] ss:$16 sps:$4 sm:$0xff]   ;;  %v7769_v48 = vld [vmem:[#allocation5 + $0xf0c] ss:$16 sps:$4 sm:$0xff]  }
 0x211   :  { %4049 = vmatprep.subr.bf16.mxu0 %v7673_v49  ;;  %4479 = vmatprep.subr.bf16.mxu1 %v7676_v50  ;;  %v7764_v49 = vld [vmem:[#allocation5 + $0xf00] ss:$16 sps:$4 sm:$0xff]   ;;  %v7767_v50 = vld [vmem:[#allocation5 + $0xf08] ss:$16 sps:$4 sm:$0xff]  }
 0x214   :  { %4050 = vmatpush1.bf16.msra.mxu0 %v7671_v51  ;;  %4480 = vmatpush1.bf16.msra.mxu1 %v7674_v52  ;;  %v7772_v51 = vld [vmem:[#allocation5 + $0xf24] ss:$16 sps:$4 sm:$0xff]   ;;  %v7775_v52 = vld [vmem:[#allocation5 + $0xf2c] ss:$16 sps:$4 sm:$0xff]  }
 0x215   :  { %4051 = vmatprep.subr.bf16.mxu0 %v7679_v53  ;;  %4481 = vmatprep.subr.bf16.mxu1 %v7682_v54  ;;  %v7770_v53 = vld [vmem:[#allocation5 + $0xf20] ss:$16 sps:$4 sm:$0xff]   ;;  %v7773_v54 = vld [vmem:[#allocation5 + $0xf28] ss:$16 sps:$4 sm:$0xff]  }
 0x218   :  { %4052 = vmatpush1.bf16.msra.mxu0 %v7677_v55  ;;  %4482 = vmatpush1.bf16.msra.mxu1 %v7680_v56  ;;  %v7778_v55 = vld [vmem:[#allocation5 + $0xf44] ss:$16 sps:$4 sm:$0xff]   ;;  %v7781_v56 = vld [vmem:[#allocation5 + $0xf4c] ss:$16 sps:$4 sm:$0xff]  }
 0x219   :  { %4053 = vmatprep.subr.bf16.mxu0 %v7685_v57  ;;  %4483 = vmatprep.subr.bf16.mxu1 %v7688_v58  ;;  %v7776_v57 = vld [vmem:[#allocation5 + $0xf40] ss:$16 sps:$4 sm:$0xff]   ;;  %v7779_v58 = vld [vmem:[#allocation5 + $0xf48] ss:$16 sps:$4 sm:$0xff]  }
 0x21c   :  { %4054 = vmatpush1.bf16.msra.mxu0 %v7683_v59  ;;  %4484 = vmatpush1.bf16.msra.mxu1 %v7686_v60  ;;  %v7784_v59 = vld [vmem:[#allocation5 + $0xf64] ss:$16 sps:$4 sm:$0xff]   ;;  %v7787_v60 = vld [vmem:[#allocation5 + $0xf6c] ss:$16 sps:$4 sm:$0xff]  }
 0x21d   :  { %4055 = vmatprep.subr.bf16.mxu0 %v7691_v61  ;;  %4485 = vmatprep.subr.bf16.mxu1 %v7694_v62  ;;  %v7782_v61 = vld [vmem:[#allocation5 + $0xf60] ss:$16 sps:$4 sm:$0xff]   ;;  %v7785_v62 = vld [vmem:[#allocation5 + $0xf68] ss:$16 sps:$4 sm:$0xff]  }
 0x220   :  { %4056 = vmatpush1.bf16.msra.mxu0 %v7689_v63  ;;  %4486 = vmatpush1.bf16.msra.mxu1 %v7692_v0  ;;  %v7790_v63 = vld [vmem:[#allocation5 + $0xf84] ss:$16 sps:$4 sm:$0xff]   ;;  %v7793_v0 = vld [vmem:[#allocation5 + $0xf8c] ss:$16 sps:$4 sm:$0xff]  }
 0x221   :  { %4057 = vmatprep.subr.bf16.mxu0 %v7697_v1  ;;  %4487 = vmatprep.subr.bf16.mxu1 %v7700_v2  ;;  %v7788_v1 = vld [vmem:[#allocation5 + $0xf80] ss:$16 sps:$4 sm:$0xff]   ;;  %v7791_v2 = vld [vmem:[#allocation5 + $0xf88] ss:$16 sps:$4 sm:$0xff]  }
 0x224   :  { %4058 = vmatpush1.bf16.msra.mxu0 %v7695_v3  ;;  %4488 = vmatpush1.bf16.msra.mxu1 %v7698_v4  ;;  %v7796_v3 = vld [vmem:[#allocation5 + $0xfa4] ss:$16 sps:$4 sm:$0xff]   ;;  %v7799_v4 = vld [vmem:[#allocation5 + $0xfac] ss:$16 sps:$4 sm:$0xff]  }
 0x225   :  { %4059 = vmatprep.subr.bf16.mxu0 %v7703_v5  ;;  %4489 = vmatprep.subr.bf16.mxu1 %v7706_v6  ;;  %v7794_v5 = vld [vmem:[#allocation5 + $0xfa0] ss:$16 sps:$4 sm:$0xff]   ;;  %v7797_v6 = vld [vmem:[#allocation5 + $0xfa8] ss:$16 sps:$4 sm:$0xff]  }
 0x228   :  { %4060 = vmatpush1.bf16.msra.mxu0 %v7701_v7  ;;  %4490 = vmatpush1.bf16.msra.mxu1 %v7704_v8  ;;  %v7802_v7 = vld [vmem:[#allocation5 + $0xfc4] ss:$16 sps:$4 sm:$0xff]   ;;  %v7805_v8 = vld [vmem:[#allocation5 + $0xfcc] ss:$16 sps:$4 sm:$0xff]  }
 0x229   :  { %4061 = vmatprep.subr.bf16.mxu0 %v7709_v9  ;;  %4491 = vmatprep.subr.bf16.mxu1 %v7712_v10  ;;  %v7800_v9 = vld [vmem:[#allocation5 + $0xfc0] ss:$16 sps:$4 sm:$0xff]   ;;  %v7803_v10 = vld [vmem:[#allocation5 + $0xfc8] ss:$16 sps:$4 sm:$0xff]  }
 0x22c   :  { %4062 = vmatpush1.bf16.msra.mxu0 %v7707_v11  ;;  %4492 = vmatpush1.bf16.msra.mxu1 %v7710_v12  ;;  %v7808_v11 = vld [vmem:[#allocation5 + $0xfe4] ss:$16 sps:$4 sm:$0xff]   ;;  %v7811_v12 = vld [vmem:[#allocation5 + $0xfec] ss:$16 sps:$4 sm:$0xff]  }
 0x22d   :  { %4074 = vmatprep.subr.bf16.mxu0 %v7718_v14  ;;  %4504 = vmatprep.subr.bf16.mxu1 %v7721_v15  ;;  %v7809_v14 = vld [vmem:[#allocation5 + $0xfe8] ss:$16 sps:$4 sm:$0xff]   ;;  %v7817_v15 = vld [vmem:[#allocation5 + $0x1004] ss:$16 sps:$4 sm:$0xff]  }
 0x22f   :  { %4064 = vmatmul.mubr.bf16.vlgmr.msra.gmra.mrb[0].mxu0 %v7713_v13  ;;  %4494 = vmatmul.mubr.bf16.vlgmr.msra.gmra.mrb[0].mxu1 %v7713_v13  ;;  %v7806_v13 = vld [vmem:[#allocation5 + $0xfe0] ss:$16 sps:$4 sm:$0xff]  }
 0x230   :  { %4075 = vmatpush1.bf16.msra.mxu0 %v7716_v16  ;;  %4505 = vmatpush1.bf16.msra.mxu1 %v7719_v17  ;;  %v7820_v16 = vld [vmem:[#allocation5 + $0x100c] ss:$16 sps:$4 sm:$0xff]  }
 0x231   :  { %4076 = vmatprep.subr.bf16.mxu0 %v7724_v18  ;;  %4506 = vmatprep.subr.bf16.mxu1 %v7727_v19  ;;  %v7812_v17 = vld [vmem:[#allocation2 + $0x38] ss:$76 sps:$4 sm:$0xff]   ;;  %v7818_v19 = vld [vmem:[#allocation5 + $0x1008] ss:$16 sps:$4 sm:$0xff]  }
 0x232   :  { %4106 = vmatprep.mubr.bf16.mxu0 %v7814_v20  ;;  %4536 = vmatprep.mubr.bf16.mxu1 %v7814_v20  ;;  %v7815_v18 = vld [vmem:[#allocation5 + $0x1000] ss:$16 sps:$4 sm:$0xff]   ;;  %v7823_v20 = vld [vmem:[#allocation5 + $0x1024] ss:$16 sps:$4 sm:$0xff]  }
 0x234   :  { %4077 = vmatpush1.bf16.msra.mxu0 %v7722_v21  ;;  %4507 = vmatpush1.bf16.msra.mxu1 %v7725_v22  ;;  %v7826_v21 = vld [vmem:[#allocation5 + $0x102c] ss:$16 sps:$4 sm:$0xff]  }
 0x235   :  { %4078 = vmatprep.subr.bf16.mxu0 %v7730_v23  ;;  %4508 = vmatprep.subr.bf16.mxu1 %v7733_v24  ;;  %v7913_v22 = vld [vmem:[#allocation2 + $0x44] ss:$76 sps:$4 sm:$0xff]   ;;  %v7821_v23 = vld [vmem:[#allocation5 + $0x1020] ss:$16 sps:$4 sm:$0xff]  }
 0x236   :  { %v7824_v24 = vld [vmem:[#allocation5 + $0x1028] ss:$16 sps:$4 sm:$0xff]  }
 0x238   :  { %4079 = vmatpush1.bf16.msra.mxu0 %v7728_v25  ;;  %4509 = vmatpush1.bf16.msra.mxu1 %v7731_v26  ;;  %v7829_v25 = vld [vmem:[#allocation5 + $0x1044] ss:$16 sps:$4 sm:$0xff]   ;;  %v7832_v26 = vld [vmem:[#allocation5 + $0x104c] ss:$16 sps:$4 sm:$0xff]  }
 0x239   :  { %4080 = vmatprep.subr.bf16.mxu0 %v7736_v27  ;;  %4510 = vmatprep.subr.bf16.mxu1 %v7739_v28  ;;  %v7827_v27 = vld [vmem:[#allocation5 + $0x1040] ss:$16 sps:$4 sm:$0xff]   ;;  %v7830_v28 = vld [vmem:[#allocation5 + $0x1048] ss:$16 sps:$4 sm:$0xff]  }
 0x23c   :  { %4081 = vmatpush1.bf16.msra.mxu0 %v7734_v29  ;;  %4511 = vmatpush1.bf16.msra.mxu1 %v7737_v30  ;;  %v7835_v29 = vld [vmem:[#allocation5 + $0x1064] ss:$16 sps:$4 sm:$0xff]   ;;  %v7838_v30 = vld [vmem:[#allocation5 + $0x106c] ss:$16 sps:$4 sm:$0xff]  }
 0x23d   :  { %4082 = vmatprep.subr.bf16.mxu0 %v7742_v31  ;;  %4512 = vmatprep.subr.bf16.mxu1 %v7745_v32  ;;  %v7833_v31 = vld [vmem:[#allocation5 + $0x1060] ss:$16 sps:$4 sm:$0xff]   ;;  %v7836_v32 = vld [vmem:[#allocation5 + $0x1068] ss:$16 sps:$4 sm:$0xff]  }
 0x240   :  { %4083 = vmatpush1.bf16.msra.mxu0 %v7740_v33  ;;  %4513 = vmatpush1.bf16.msra.mxu1 %v7743_v34  ;;  %v7841_v33 = vld [vmem:[#allocation5 + $0x1084] ss:$16 sps:$4 sm:$0xff]   ;;  %v7844_v34 = vld [vmem:[#allocation5 + $0x108c] ss:$16 sps:$4 sm:$0xff]  }
 0x241   :  { %4084 = vmatprep.subr.bf16.mxu0 %v7748_v35  ;;  %4514 = vmatprep.subr.bf16.mxu1 %v7751_v36  ;;  %v7839_v35 = vld [vmem:[#allocation5 + $0x1080] ss:$16 sps:$4 sm:$0xff]   ;;  %v7842_v36 = vld [vmem:[#allocation5 + $0x1088] ss:$16 sps:$4 sm:$0xff]  }
 0x244   :  { %4085 = vmatpush1.bf16.msra.mxu0 %v7746_v37  ;;  %4515 = vmatpush1.bf16.msra.mxu1 %v7749_v38  ;;  %v7847_v37 = vld [vmem:[#allocation5 + $0x10a4] ss:$16 sps:$4 sm:$0xff]   ;;  %v7850_v38 = vld [vmem:[#allocation5 + $0x10ac] ss:$16 sps:$4 sm:$0xff]  }
 0x245   :  { %4086 = vmatprep.subr.bf16.mxu0 %v7754_v39  ;;  %4516 = vmatprep.subr.bf16.mxu1 %v7757_v40  ;;  %v7845_v39 = vld [vmem:[#allocation5 + $0x10a0] ss:$16 sps:$4 sm:$0xff]   ;;  %v7848_v40 = vld [vmem:[#allocation5 + $0x10a8] ss:$16 sps:$4 sm:$0xff]  }
 0x248   :  { %4087 = vmatpush1.bf16.msra.mxu0 %v7752_v41  ;;  %4517 = vmatpush1.bf16.msra.mxu1 %v7755_v42  ;;  %v7853_v41 = vld [vmem:[#allocation5 + $0x10c4] ss:$16 sps:$4 sm:$0xff]   ;;  %v7856_v42 = vld [vmem:[#allocation5 + $0x10cc] ss:$16 sps:$4 sm:$0xff]  }
 0x249   :  { %4088 = vmatprep.subr.bf16.mxu0 %v7760_v43  ;;  %4518 = vmatprep.subr.bf16.mxu1 %v7763_v44  ;;  %v7851_v43 = vld [vmem:[#allocation5 + $0x10c0] ss:$16 sps:$4 sm:$0xff]   ;;  %v7854_v44 = vld [vmem:[#allocation5 + $0x10c8] ss:$16 sps:$4 sm:$0xff]  }
 0x24c   :  { %4089 = vmatpush1.bf16.msra.mxu0 %v7758_v45  ;;  %4519 = vmatpush1.bf16.msra.mxu1 %v7761_v46  ;;  %v7859_v45 = vld [vmem:[#allocation5 + $0x10e4] ss:$16 sps:$4 sm:$0xff]   ;;  %v7862_v46 = vld [vmem:[#allocation5 + $0x10ec] ss:$16 sps:$4 sm:$0xff]  }
 0x24d   :  { %4090 = vmatprep.subr.bf16.mxu0 %v7766_v47  ;;  %4520 = vmatprep.subr.bf16.mxu1 %v7769_v48  ;;  %v7857_v47 = vld [vmem:[#allocation5 + $0x10e0] ss:$16 sps:$4 sm:$0xff]   ;;  %v7860_v48 = vld [vmem:[#allocation5 + $0x10e8] ss:$16 sps:$4 sm:$0xff]  }
 0x250   :  { %4091 = vmatpush1.bf16.msra.mxu0 %v7764_v49  ;;  %4521 = vmatpush1.bf16.msra.mxu1 %v7767_v50  ;;  %v7865_v49 = vld [vmem:[#allocation5 + $0x1104] ss:$16 sps:$4 sm:$0xff]   ;;  %v7868_v50 = vld [vmem:[#allocation5 + $0x110c] ss:$16 sps:$4 sm:$0xff]  }
 0x251   :  { %4092 = vmatprep.subr.bf16.mxu0 %v7772_v51  ;;  %4522 = vmatprep.subr.bf16.mxu1 %v7775_v52  ;;  %v7863_v51 = vld [vmem:[#allocation5 + $0x1100] ss:$16 sps:$4 sm:$0xff]   ;;  %v7866_v52 = vld [vmem:[#allocation5 + $0x1108] ss:$16 sps:$4 sm:$0xff]  }
 0x254   :  { %4093 = vmatpush1.bf16.msra.mxu0 %v7770_v53  ;;  %4523 = vmatpush1.bf16.msra.mxu1 %v7773_v54  ;;  %v7871_v53 = vld [vmem:[#allocation5 + $0x1124] ss:$16 sps:$4 sm:$0xff]   ;;  %v7874_v54 = vld [vmem:[#allocation5 + $0x112c] ss:$16 sps:$4 sm:$0xff]  }
 0x255   :  { %4094 = vmatprep.subr.bf16.mxu0 %v7778_v55  ;;  %4524 = vmatprep.subr.bf16.mxu1 %v7781_v56  ;;  %v7869_v55 = vld [vmem:[#allocation5 + $0x1120] ss:$16 sps:$4 sm:$0xff]   ;;  %v7872_v56 = vld [vmem:[#allocation5 + $0x1128] ss:$16 sps:$4 sm:$0xff]  }
 0x258   :  { %4095 = vmatpush1.bf16.msra.mxu0 %v7776_v57  ;;  %4525 = vmatpush1.bf16.msra.mxu1 %v7779_v58  ;;  %v7877_v57 = vld [vmem:[#allocation5 + $0x1144] ss:$16 sps:$4 sm:$0xff]   ;;  %v7880_v58 = vld [vmem:[#allocation5 + $0x114c] ss:$16 sps:$4 sm:$0xff]  }
 0x259   :  { %4096 = vmatprep.subr.bf16.mxu0 %v7784_v59  ;;  %4526 = vmatprep.subr.bf16.mxu1 %v7787_v60  ;;  %v7875_v59 = vld [vmem:[#allocation5 + $0x1140] ss:$16 sps:$4 sm:$0xff]   ;;  %v7878_v60 = vld [vmem:[#allocation5 + $0x1148] ss:$16 sps:$4 sm:$0xff]  }
 0x25c   :  { %4097 = vmatpush1.bf16.msra.mxu0 %v7782_v61  ;;  %4527 = vmatpush1.bf16.msra.mxu1 %v7785_v62  ;;  %v7883_v61 = vld [vmem:[#allocation5 + $0x1164] ss:$16 sps:$4 sm:$0xff]   ;;  %v7886_v62 = vld [vmem:[#allocation5 + $0x116c] ss:$16 sps:$4 sm:$0xff]  }
 0x25d   :  { %4098 = vmatprep.subr.bf16.mxu0 %v7790_v63  ;;  %4528 = vmatprep.subr.bf16.mxu1 %v7793_v0  ;;  %v7881_v63 = vld [vmem:[#allocation5 + $0x1160] ss:$16 sps:$4 sm:$0xff]   ;;  %v7884_v0 = vld [vmem:[#allocation5 + $0x1168] ss:$16 sps:$4 sm:$0xff]  }
 0x260   :  { %4099 = vmatpush1.bf16.msra.mxu0 %v7788_v1  ;;  %4529 = vmatpush1.bf16.msra.mxu1 %v7791_v2  ;;  %v7889_v1 = vld [vmem:[#allocation5 + $0x1184] ss:$16 sps:$4 sm:$0xff]   ;;  %v7892_v2 = vld [vmem:[#allocation5 + $0x118c] ss:$16 sps:$4 sm:$0xff]  }
 0x261   :  { %4100 = vmatprep.subr.bf16.mxu0 %v7796_v3  ;;  %4530 = vmatprep.subr.bf16.mxu1 %v7799_v4  ;;  %v7887_v3 = vld [vmem:[#allocation5 + $0x1180] ss:$16 sps:$4 sm:$0xff]   ;;  %v7890_v4 = vld [vmem:[#allocation5 + $0x1188] ss:$16 sps:$4 sm:$0xff]  }
 0x264   :  { %4101 = vmatpush1.bf16.msra.mxu0 %v7794_v5  ;;  %4531 = vmatpush1.bf16.msra.mxu1 %v7797_v6  ;;  %v7895_v5 = vld [vmem:[#allocation5 + $0x11a4] ss:$16 sps:$4 sm:$0xff]   ;;  %v7898_v6 = vld [vmem:[#allocation5 + $0x11ac] ss:$16 sps:$4 sm:$0xff]  }
 0x265   :  { %4102 = vmatprep.subr.bf16.mxu0 %v7802_v7  ;;  %4532 = vmatprep.subr.bf16.mxu1 %v7805_v8  ;;  %v7893_v7 = vld [vmem:[#allocation5 + $0x11a0] ss:$16 sps:$4 sm:$0xff]   ;;  %v7896_v8 = vld [vmem:[#allocation5 + $0x11a8] ss:$16 sps:$4 sm:$0xff]  }
 0x268   :  { %4103 = vmatpush1.bf16.msra.mxu0 %v7800_v9  ;;  %4533 = vmatpush1.bf16.msra.mxu1 %v7803_v10  ;;  %v7901_v9 = vld [vmem:[#allocation5 + $0x11c4] ss:$16 sps:$4 sm:$0xff]   ;;  %v7904_v10 = vld [vmem:[#allocation5 + $0x11cc] ss:$16 sps:$4 sm:$0xff]  }
 0x269   :  { %4104 = vmatprep.subr.bf16.mxu0 %v7808_v11  ;;  %4534 = vmatprep.subr.bf16.mxu1 %v7811_v12  ;;  %v7899_v11 = vld [vmem:[#allocation5 + $0x11c0] ss:$16 sps:$4 sm:$0xff]   ;;  %v7902_v12 = vld [vmem:[#allocation5 + $0x11c8] ss:$16 sps:$4 sm:$0xff]  }
 0x26c   :  { %4105 = vmatpush1.bf16.msra.mxu0 %v7806_v13  ;;  %4535 = vmatpush1.bf16.msra.mxu1 %v7809_v14  ;;  %v7907_v13 = vld [vmem:[#allocation5 + $0x11e4] ss:$16 sps:$4 sm:$0xff]   ;;  %v7910_v14 = vld [vmem:[#allocation5 + $0x11ec] ss:$16 sps:$4 sm:$0xff]  }
 0x26d   :  { %4117 = vmatprep.subr.bf16.mxu0 %v7817_v15  ;;  %4547 = vmatprep.subr.bf16.mxu1 %v7820_v16  ;;  %v7905_v15 = vld [vmem:[#allocation5 + $0x11e0] ss:$16 sps:$4 sm:$0xff]   ;;  %v7908_v16 = vld [vmem:[#allocation5 + $0x11e8] ss:$16 sps:$4 sm:$0xff]  }
 0x26f   :  { %4107 = vmatmul.mubr.bf16.vlgmr.msra.gmra.mrb[0].mxu0 %v7812_v17  ;;  %4537 = vmatmul.mubr.bf16.vlgmr.msra.gmra.mrb[0].mxu1 %v7812_v17  ;;  %v7916_v17 = vld [vmem:[#allocation5 + $0x1204] ss:$16 sps:$4 sm:$0xff]  }
 0x270   :  { %4118 = vmatpush1.bf16.msra.mxu0 %v7815_v18  ;;  %4548 = vmatpush1.bf16.msra.mxu1 %v7818_v19  ;;  %v7919_v18 = vld [vmem:[#allocation5 + $0x120c] ss:$16 sps:$4 sm:$0xff]   ;;  %v7911_v19 = vld [vmem:[#allocation2 + $0x40] ss:$76 sps:$4 sm:$0xff]  }
 0x271   :  { %4119 = vmatprep.subr.bf16.mxu0 %v7823_v20  ;;  %4549 = vmatprep.subr.bf16.mxu1 %v7826_v21  ;;  %v7914_v20 = vld [vmem:[#allocation5 + $0x1200] ss:$16 sps:$4 sm:$0xff]   ;;  %v7917_v21 = vld [vmem:[#allocation5 + $0x1208] ss:$16 sps:$4 sm:$0xff]  }
 0x272   :  { %4149 = vmatprep.mubr.bf16.mxu0 %v7913_v22  ;;  %4579 = vmatprep.mubr.bf16.mxu1 %v7913_v22  ;;  %v7922_v22 = vld [vmem:[#allocation5 + $0x1224] ss:$16 sps:$4 sm:$0xff]  }
 0x274   :  { %4120 = vmatpush1.bf16.msra.mxu0 %v7821_v23  ;;  %4550 = vmatpush1.bf16.msra.mxu1 %v7824_v24  ;;  %v7925_v23 = vld [vmem:[#allocation5 + $0x122c] ss:$16 sps:$4 sm:$0xff]   ;;  %v7920_v24 = vld [vmem:[#allocation5 + $0x1220] ss:$16 sps:$4 sm:$0xff]  }
 0x275   :  { %4121 = vmatprep.subr.bf16.mxu0 %v7829_v25  ;;  %4551 = vmatprep.subr.bf16.mxu1 %v7832_v26  ;;  %v7923_v25 = vld [vmem:[#allocation5 + $0x1228] ss:$16 sps:$4 sm:$0xff]   ;;  %v7928_v26 = vld [vmem:[#allocation5 + $0x1244] ss:$16 sps:$4 sm:$0xff]  }
 0x278   :  { %4122 = vmatpush1.bf16.msra.mxu0 %v7827_v27  ;;  %4552 = vmatpush1.bf16.msra.mxu1 %v7830_v28  ;;  %v7931_v27 = vld [vmem:[#allocation5 + $0x124c] ss:$16 sps:$4 sm:$0xff]   ;;  %v8395_v28 = vmov 0  }
 0x279   :  { %4123 = vmatprep.subr.bf16.mxu0 %v7835_v29  ;;  %4553 = vmatprep.subr.bf16.mxu1 %v7838_v30  ;;  %v7926_v29 = vld [vmem:[#allocation5 + $0x1240] ss:$16 sps:$4 sm:$0xff]   ;;  %v7929_v30 = vld [vmem:[#allocation5 + $0x1248] ss:$16 sps:$4 sm:$0xff]  }
 0x27c   :  { %4124 = vmatpush1.bf16.msra.mxu0 %v7833_v31  ;;  %4554 = vmatpush1.bf16.msra.mxu1 %v7836_v32  ;;  %v7935_v31 = vld [vmem:[#allocation8 + $0x4] ss:$16 sps:$4 sm:$0xff]   ;;  %v7938_v32 = vld [vmem:[#allocation8 + $0xc] ss:$16 sps:$4 sm:$0xff]  }
 0x27d   :  { %4125 = vmatprep.subr.bf16.mxu0 %v7841_v33  ;;  %4555 = vmatprep.subr.bf16.mxu1 %v7844_v34  ;;  %v7932_v33 = vld [vmem:[#allocation2 + $0x48] ss:$76 sps:$4 sm:$0xff]   ;;  %v7933_v34 = vld [vmem:[#allocation8] ss:$16 sps:$4 sm:$0xff]  }
 0x280   :  { %4126 = vmatpush1.bf16.msra.mxu0 %v7839_v35  ;;  %4556 = vmatpush1.bf16.msra.mxu1 %v7842_v36  ;;  %v7936_v35 = vld [vmem:[#allocation8 + $0x8] ss:$16 sps:$4 sm:$0xff]   ;;  %v7941_v36 = vld [vmem:[#allocation8 + $0x24] ss:$16 sps:$4 sm:$0xff]  }
 0x281   :  { %4127 = vmatprep.subr.bf16.mxu0 %v7847_v37  ;;  %4557 = vmatprep.subr.bf16.mxu1 %v7850_v38  ;;  %v7944_v37 = vld [vmem:[#allocation8 + $0x2c] ss:$16 sps:$4 sm:$0xff]   ;;  %v7939_v38 = vld [vmem:[#allocation8 + $0x20] ss:$16 sps:$4 sm:$0xff]  }
 0x284   :  { %4128 = vmatpush1.bf16.msra.mxu0 %v7845_v39  ;;  %4558 = vmatpush1.bf16.msra.mxu1 %v7848_v40  ;;  %v7942_v39 = vld [vmem:[#allocation8 + $0x28] ss:$16 sps:$4 sm:$0xff]   ;;  %v7947_v40 = vld [vmem:[#allocation8 + $0x44] ss:$16 sps:$4 sm:$0xff]  }
 0x285   :  { %4129 = vmatprep.subr.bf16.mxu0 %v7853_v41  ;;  %4559 = vmatprep.subr.bf16.mxu1 %v7856_v42  ;;  %v7950_v41 = vld [vmem:[#allocation8 + $0x4c] ss:$16 sps:$4 sm:$0xff]   ;;  %v7945_v42 = vld [vmem:[#allocation8 + $0x40] ss:$16 sps:$4 sm:$0xff]  }
 0x288   :  { %4130 = vmatpush1.bf16.msra.mxu0 %v7851_v43  ;;  %4560 = vmatpush1.bf16.msra.mxu1 %v7854_v44  ;;  %v7948_v43 = vld [vmem:[#allocation8 + $0x48] ss:$16 sps:$4 sm:$0xff]   ;;  %v7953_v44 = vld [vmem:[#allocation8 + $0x64] ss:$16 sps:$4 sm:$0xff]  }
 0x289   :  { %4131 = vmatprep.subr.bf16.mxu0 %v7859_v45  ;;  %4561 = vmatprep.subr.bf16.mxu1 %v7862_v46  ;;  %v7956_v45 = vld [vmem:[#allocation8 + $0x6c] ss:$16 sps:$4 sm:$0xff]   ;;  %v7951_v46 = vld [vmem:[#allocation8 + $0x60] ss:$16 sps:$4 sm:$0xff]  }
 0x28c   :  { %4132 = vmatpush1.bf16.msra.mxu0 %v7857_v47  ;;  %4562 = vmatpush1.bf16.msra.mxu1 %v7860_v48  ;;  %v7954_v47 = vld [vmem:[#allocation8 + $0x68] ss:$16 sps:$4 sm:$0xff]   ;;  %v7959_v48 = vld [vmem:[#allocation8 + $0x84] ss:$16 sps:$4 sm:$0xff]  }
 0x28d   :  { %4133 = vmatprep.subr.bf16.mxu0 %v7865_v49  ;;  %4563 = vmatprep.subr.bf16.mxu1 %v7868_v50  ;;  %v7962_v49 = vld [vmem:[#allocation8 + $0x8c] ss:$16 sps:$4 sm:$0xff]   ;;  %v7957_v50 = vld [vmem:[#allocation8 + $0x80] ss:$16 sps:$4 sm:$0xff]  }
 0x290   :  { %4134 = vmatpush1.bf16.msra.mxu0 %v7863_v51  ;;  %4564 = vmatpush1.bf16.msra.mxu1 %v7866_v52  ;;  %v7960_v51 = vld [vmem:[#allocation8 + $0x88] ss:$16 sps:$4 sm:$0xff]   ;;  %v7965_v52 = vld [vmem:[#allocation8 + $0xa4] ss:$16 sps:$4 sm:$0xff]  }
 0x291   :  { %4135 = vmatprep.subr.bf16.mxu0 %v7871_v53  ;;  %4565 = vmatprep.subr.bf16.mxu1 %v7874_v54  ;;  %v7968_v53 = vld [vmem:[#allocation8 + $0xac] ss:$16 sps:$4 sm:$0xff]   ;;  %v7963_v54 = vld [vmem:[#allocation8 + $0xa0] ss:$16 sps:$4 sm:$0xff]  }
 0x294   :  { %4136 = vmatpush1.bf16.msra.mxu0 %v7869_v55  ;;  %4566 = vmatpush1.bf16.msra.mxu1 %v7872_v56  ;;  %v7966_v55 = vld [vmem:[#allocation8 + $0xa8] ss:$16 sps:$4 sm:$0xff]   ;;  %v7971_v56 = vld [vmem:[#allocation8 + $0xc4] ss:$16 sps:$4 sm:$0xff]  }
 0x295   :  { %4137 = vmatprep.subr.bf16.mxu0 %v7877_v57  ;;  %4567 = vmatprep.subr.bf16.mxu1 %v7880_v58  ;;  %v7974_v57 = vld [vmem:[#allocation8 + $0xcc] ss:$16 sps:$4 sm:$0xff]   ;;  %v7969_v58 = vld [vmem:[#allocation8 + $0xc0] ss:$16 sps:$4 sm:$0xff]  }
 0x298   :  { %4138 = vmatpush1.bf16.msra.mxu0 %v7875_v59  ;;  %4568 = vmatpush1.bf16.msra.mxu1 %v7878_v60  ;;  %v7972_v59 = vld [vmem:[#allocation8 + $0xc8] ss:$16 sps:$4 sm:$0xff]   ;;  %v7977_v60 = vld [vmem:[#allocation8 + $0xe4] ss:$16 sps:$4 sm:$0xff]  }
 0x299   :  { %4139 = vmatprep.subr.bf16.mxu0 %v7883_v61  ;;  %4569 = vmatprep.subr.bf16.mxu1 %v7886_v62  ;;  %v7980_v61 = vld [vmem:[#allocation8 + $0xec] ss:$16 sps:$4 sm:$0xff]   ;;  %v7975_v62 = vld [vmem:[#allocation8 + $0xe0] ss:$16 sps:$4 sm:$0xff]  }
 0x29c   :  { %4140 = vmatpush1.bf16.msra.mxu0 %v7881_v63  ;;  %4570 = vmatpush1.bf16.msra.mxu1 %v7884_v0  ;;  %v7978_v63 = vld [vmem:[#allocation8 + $0xe8] ss:$16 sps:$4 sm:$0xff]   ;;  %v7983_v0 = vld [vmem:[#allocation8 + $0x104] ss:$16 sps:$4 sm:$0xff]  }
 0x29d   :  { %4141 = vmatprep.subr.bf16.mxu0 %v7889_v1  ;;  %4571 = vmatprep.subr.bf16.mxu1 %v7892_v2  ;;  %v7986_v1 = vld [vmem:[#allocation8 + $0x10c] ss:$16 sps:$4 sm:$0xff]   ;;  %v7981_v2 = vld [vmem:[#allocation8 + $0x100] ss:$16 sps:$4 sm:$0xff]  }
 0x2a0   :  { %4142 = vmatpush1.bf16.msra.mxu0 %v7887_v3  ;;  %4572 = vmatpush1.bf16.msra.mxu1 %v7890_v4  ;;  %v7984_v3 = vld [vmem:[#allocation8 + $0x108] ss:$16 sps:$4 sm:$0xff]   ;;  %v7989_v4 = vld [vmem:[#allocation8 + $0x124] ss:$16 sps:$4 sm:$0xff]  }
 0x2a1   :  { %4143 = vmatprep.subr.bf16.mxu0 %v7895_v5  ;;  %4573 = vmatprep.subr.bf16.mxu1 %v7898_v6  ;;  %v7992_v5 = vld [vmem:[#allocation8 + $0x12c] ss:$16 sps:$4 sm:$0xff]   ;;  %v7987_v6 = vld [vmem:[#allocation8 + $0x120] ss:$16 sps:$4 sm:$0xff]  }
 0x2a4   :  { %4144 = vmatpush1.bf16.msra.mxu0 %v7893_v7  ;;  %4574 = vmatpush1.bf16.msra.mxu1 %v7896_v8  ;;  %v7990_v7 = vld [vmem:[#allocation8 + $0x128] ss:$16 sps:$4 sm:$0xff]   ;;  %v7995_v8 = vld [vmem:[#allocation8 + $0x144] ss:$16 sps:$4 sm:$0xff]  }
 0x2a5   :  { %4145 = vmatprep.subr.bf16.mxu0 %v7901_v9  ;;  %4575 = vmatprep.subr.bf16.mxu1 %v7904_v10  ;;  %v7998_v9 = vld [vmem:[#allocation8 + $0x14c] ss:$16 sps:$4 sm:$0xff]   ;;  %v7993_v10 = vld [vmem:[#allocation8 + $0x140] ss:$16 sps:$4 sm:$0xff]  }
 0x2a8   :  { %4146 = vmatpush1.bf16.msra.mxu0 %v7899_v11  ;;  %4576 = vmatpush1.bf16.msra.mxu1 %v7902_v12  ;;  %v7996_v11 = vld [vmem:[#allocation8 + $0x148] ss:$16 sps:$4 sm:$0xff]   ;;  %v8001_v12 = vld [vmem:[#allocation8 + $0x164] ss:$16 sps:$4 sm:$0xff]  }
 0x2a9   :  { %4147 = vmatprep.subr.bf16.mxu0 %v7907_v13  ;;  %4577 = vmatprep.subr.bf16.mxu1 %v7910_v14  ;;  %v8004_v13 = vld [vmem:[#allocation8 + $0x16c] ss:$16 sps:$4 sm:$0xff]   ;;  %v7999_v14 = vld [vmem:[#allocation8 + $0x160] ss:$16 sps:$4 sm:$0xff]  }
 0x2ac   :  { %4148 = vmatpush1.bf16.msra.mxu0 %v7905_v15  ;;  %4578 = vmatpush1.bf16.msra.mxu1 %v7908_v16  ;;  %v8002_v15 = vld [vmem:[#allocation8 + $0x168] ss:$16 sps:$4 sm:$0xff]   ;;  %v8007_v16 = vld [vmem:[#allocation8 + $0x184] ss:$16 sps:$4 sm:$0xff]  }
 0x2ad   :  { %4160 = vmatprep.subr.bf16.mxu0 %v7916_v17  ;;  %4590 = vmatprep.subr.bf16.mxu1 %v7919_v18  ;;  %v8010_v17 = vld [vmem:[#allocation8 + $0x18c] ss:$16 sps:$4 sm:$0xff]   ;;  %v8005_v18 = vld [vmem:[#allocation8 + $0x180] ss:$16 sps:$4 sm:$0xff]  }
 0x2af   :  { %4150 = vmatmul.mubr.bf16.vlgmr.msra.gmra.mrb[0].mxu0 %v7911_v19  ;;  %4580 = vmatmul.mubr.bf16.vlgmr.msra.gmra.mrb[0].mxu1 %v7911_v19  ;;  %v8008_v19 = vld [vmem:[#allocation8 + $0x188] ss:$16 sps:$4 sm:$0xff]  }
 0x2b0   :  { %4161 = vmatpush1.bf16.msra.mxu0 %v7914_v20  ;;  %4591 = vmatpush1.bf16.msra.mxu1 %v7917_v21  ;;  %v8013_v20 = vld [vmem:[#allocation8 + $0x1a4] ss:$16 sps:$4 sm:$0xff]   ;;  %v8016_v21 = vld [vmem:[#allocation8 + $0x1ac] ss:$16 sps:$4 sm:$0xff]  }
 0x2b1   :  { %4162 = vmatprep.subr.bf16.mxu0 %v7922_v22  ;;  %4592 = vmatprep.subr.bf16.mxu1 %v7925_v23  ;;  %v8011_v22 = vld [vmem:[#allocation8 + $0x1a0] ss:$16 sps:$4 sm:$0xff]   ;;  %v8014_v23 = vld [vmem:[#allocation8 + $0x1a8] ss:$16 sps:$4 sm:$0xff]  }
 0x2b2   :  { %4192 = vmatprep.mubr.bf16.mxu0 %v8395_v28  ;;  %4622 = vmatprep.mubr.bf16.mxu1 %v8395_v28  ;;  %v8025_v28 = vld [vmem:[#allocation8 + $0x1e4] ss:$16 sps:$4 sm:$0xff]  }
 0x2b4   :  { %4163 = vmatpush1.bf16.msra.mxu0 %v7920_v24  ;;  %4593 = vmatpush1.bf16.msra.mxu1 %v7923_v25  ;;  %v8019_v24 = vld [vmem:[#allocation8 + $0x1c4] ss:$16 sps:$4 sm:$0xff]   ;;  %v8022_v25 = vld [vmem:[#allocation8 + $0x1cc] ss:$16 sps:$4 sm:$0xff]  }
 0x2b5   :  { %4164 = vmatprep.subr.bf16.mxu0 %v7928_v26  ;;  %4594 = vmatprep.subr.bf16.mxu1 %v7931_v27  ;;  %v8017_v26 = vld [vmem:[#allocation8 + $0x1c0] ss:$16 sps:$4 sm:$0xff]   ;;  %v8020_v27 = vld [vmem:[#allocation8 + $0x1c8] ss:$16 sps:$4 sm:$0xff]  }
 0x2b8   :  { %4165 = vmatpush1.bf16.msra.mxu0 %v7926_v29  ;;  %4595 = vmatpush1.bf16.msra.mxu1 %v7929_v30  ;;  %v8028_v29 = vld [vmem:[#allocation8 + $0x1ec] ss:$16 sps:$4 sm:$0xff]   ;;  %v8023_v30 = vld [vmem:[#allocation8 + $0x1e0] ss:$16 sps:$4 sm:$0xff]  }
 0x2b9   :  { %5483 = vmatprep.subr.bf16.mxu0 %v7935_v31  ;;  %5569 = vmatprep.subr.bf16.mxu1 %v7938_v32  ;;  %v8026_v31 = vld [vmem:[#allocation8 + $0x1e8] ss:$16 sps:$4 sm:$0xff]   ;;  %v8031_v32 = vld [vmem:[#allocation8 + $0x204] ss:$16 sps:$4 sm:$0xff]  }
 0x2bb   :  { %6690 = vmatmul.mubr.msk.bf16.vlgmr.msra.gmra.mrb[0].mxu0 %vm3769_vm0, %v7932_v33  ;;  %6691 = vmatmul.mubr.msk.bf16.vlgmr.msra.gmra.mrb[0].mxu1 %vm3769_vm0, %v7932_v33  ;;  %v8034_v33 = vld [vmem:[#allocation8 + $0x20c] ss:$16 sps:$4 sm:$0xff]  }
 0x2bc   :  { %5484 = vmatpush1.bf16.msra.mxu0 %v7933_v34  ;;  %5570 = vmatpush1.bf16.msra.mxu1 %v7936_v35  ;;  %v714_v34 = vlaneseq }
 0x2bd   :  { %5485 = vmatprep.subr.bf16.mxu0 %v7941_v36  ;;  %5571 = vmatprep.subr.bf16.mxu1 %v7944_v37 }
 0x2be   :  { %v8511_v35 = vshrl.u32 %v714_v34, 7 }
 0x2c0   :  { %5486 = vmatpush1.bf16.msra.mxu0 %v7939_v38  ;;  %5572 = vmatpush1.bf16.msra.mxu1 %v7942_v39  ;;  %v716_v36 = vsub.s32 0, %v8511_v35  ;;  %v724_v37 = vsub.s32 2, %v8511_v35  ;;  %v712_v38 = vld [vmem:[#allocation7] sm:$0xf]  ;;  %v720_v39 = vsub.s32 1, %v8511_v35 }
 0x2c1   :  { %5487 = vmatprep.subr.bf16.mxu0 %v7947_v40  ;;  %5573 = vmatprep.subr.bf16.mxu1 %v7950_v41  ;;  %v728_v40 = vsub.s32 3, %v8511_v35 }
 0x2c2   :  { %v717_v41 = vrot.slane %v712_v38, %v716_v36 }
 0x2c4   :  { %5488 = vmatpush1.bf16.msra.mxu0 %v7945_v42  ;;  %5574 = vmatpush1.bf16.msra.mxu1 %v7948_v43  ;;  %v725_v42 = vrot.slane %v712_v38, %v724_v37  ;;  %v721_v43 = vrot.slane %v712_v38, %v720_v39 }
 0x2c5   :  { %5489 = vmatprep.subr.bf16.mxu0 %v7953_v44  ;;  %5575 = vmatprep.subr.bf16.mxu1 %v7956_v45  ;;  %v729_v44 = vrot.slane %v712_v38, %v728_v40 }
 0x2c8   :  { %5490 = vmatpush1.bf16.msra.mxu0 %v7951_v46  ;;  %5576 = vmatpush1.bf16.msra.mxu1 %v7954_v47 }
 0x2c9   :  { %5491 = vmatprep.subr.bf16.mxu0 %v7959_v48  ;;  %5577 = vmatprep.subr.bf16.mxu1 %v7962_v49 }
 0x2cc   :  { %5492 = vmatpush1.bf16.msra.mxu0 %v7957_v50  ;;  %5578 = vmatpush1.bf16.msra.mxu1 %v7960_v51 }
 0x2cd   :  { %5493 = vmatprep.subr.bf16.mxu0 %v7965_v52  ;;  %5579 = vmatprep.subr.bf16.mxu1 %v7968_v53 }
 0x2d0   :  { %5494 = vmatpush1.bf16.msra.mxu0 %v7963_v54  ;;  %5580 = vmatpush1.bf16.msra.mxu1 %v7966_v55 }
 0x2d1   :  { %5495 = vmatprep.subr.bf16.mxu0 %v7971_v56  ;;  %5581 = vmatprep.subr.bf16.mxu1 %v7974_v57 }
 0x2d4   :  { %5496 = vmatpush1.bf16.msra.mxu0 %v7969_v58  ;;  %5582 = vmatpush1.bf16.msra.mxu1 %v7972_v59 }
 0x2d5   :  { %5497 = vmatprep.subr.bf16.mxu0 %v7977_v60  ;;  %5583 = vmatprep.subr.bf16.mxu1 %v7980_v61 }
 0x2d8   :  { %5498 = vmatpush1.bf16.msra.mxu0 %v7975_v62  ;;  %5584 = vmatpush1.bf16.msra.mxu1 %v7978_v63 }
 0x2d9   :  { %5499 = vmatprep.subr.bf16.mxu0 %v7983_v0  ;;  %5585 = vmatprep.subr.bf16.mxu1 %v7986_v1 }
 0x2dc   :  { %5500 = vmatpush1.bf16.msra.mxu0 %v7981_v2  ;;  %5586 = vmatpush1.bf16.msra.mxu1 %v7984_v3 }
 0x2dd   :  { %5501 = vmatprep.subr.bf16.mxu0 %v7989_v4  ;;  %5587 = vmatprep.subr.bf16.mxu1 %v7992_v5 }
 0x2e0   :  { %5502 = vmatpush1.bf16.msra.mxu0 %v7987_v6  ;;  %5588 = vmatpush1.bf16.msra.mxu1 %v7990_v7 }
 0x2e1   :  { %5503 = vmatprep.subr.bf16.mxu0 %v7995_v8  ;;  %5589 = vmatprep.subr.bf16.mxu1 %v7998_v9 }
 0x2e4   :  { %5504 = vmatpush1.bf16.msra.mxu0 %v7993_v10  ;;  %5590 = vmatpush1.bf16.msra.mxu1 %v7996_v11 }
 0x2e5   :  { %5505 = vmatprep.subr.bf16.mxu0 %v8001_v12  ;;  %5591 = vmatprep.subr.bf16.mxu1 %v8004_v13 }
 0x2e8   :  { %5506 = vmatpush1.bf16.msra.mxu0 %v7999_v14  ;;  %5592 = vmatpush1.bf16.msra.mxu1 %v8002_v15 }
 0x2e9   :  { %5507 = vmatprep.subr.bf16.mxu0 %v8007_v16  ;;  %5593 = vmatprep.subr.bf16.mxu1 %v8010_v17 }
 0x2ec   :  { %5508 = vmatpush1.bf16.msra.mxu0 %v8005_v18  ;;  %5594 = vmatpush1.bf16.msra.mxu1 %v8008_v19 }
 0x2ed   :  { %5509 = vmatprep.subr.bf16.mxu0 %v8013_v20  ;;  %5595 = vmatprep.subr.bf16.mxu1 %v8016_v21 }
 0x2f0   :  { %5510 = vmatpush1.bf16.msra.mxu0 %v8011_v22  ;;  %5596 = vmatpush1.bf16.msra.mxu1 %v8014_v23 }
 0x2f1   :  { %5511 = vmatprep.subr.bf16.mxu0 %v8019_v24  ;;  %5597 = vmatprep.subr.bf16.mxu1 %v8022_v25 }
 0x2f4   :  { %5512 = vmatpush1.bf16.msra.mxu0 %v8017_v26  ;;  %5598 = vmatpush1.bf16.msra.mxu1 %v8020_v27 }
 0x2f5   :  { %5513 = vmatprep.subr.bf16.mxu0 %v8025_v28  ;;  %5599 = vmatprep.subr.bf16.mxu1 %v8028_v29 }
 0x2f8   :  { %5514 = vmatpush1.bf16.msra.mxu0 %v8023_v30  ;;  %5600 = vmatpush1.bf16.msra.mxu1 %v8026_v31 }
 0x2f9   :  { %5526 = vmatprep.subr.bf16.mxu0 %v8031_v32  ;;  %5612 = vmatprep.subr.bf16.mxu1 %v8034_v33 }
 0x38e   :  { %v4194_v45 = vpop.f32.mrb[0].mxu0  ;;  %v4624_v46 = vpop.f32.mrb[0].mxu1 }
 0x38f   :  { %v6913_v47 = vadd.f32 %v4194_v45, %v717_v41  ;;  %v6917_v48 = vadd.f32 %v4624_v46, %v725_v42  ;;  %v4196_v49 = vpop.f32.mrb[1].mxu0  ;;  %v4626_v50 = vpop.f32.mrb[1].mxu1  ;;  %v8029_v45 = vld [vmem:[#allocation8 + $0x200] ss:$16 sps:$4 sm:$0xff]   ;;  %v8032_v46 = vld [vmem:[#allocation8 + $0x208] ss:$16 sps:$4 sm:$0xff]  }
 0x390   :  { %v6914_v51 = vadd.f32 %v4196_v49, %v721_v43  ;;  %v8525_v52 = vadd.f32 %v4626_v50, %v729_v44  ;;  %v4198_v53 = vpop.f32.mrb[2].mxu0  ;;  %v4628_v54 = vpop.f32.mrb[2].mxu1  ;;  %v8040_v50 = vld [vmem:[#allocation8 + $0x22c] ss:$16 sps:$4 sm:$0xff]  }
 0x391   :  { %v6692_v55 = vmul.f32 -1.442695, %v6913_v47  ;;  %v6694_v56 = vmul.f32 -1.442695, %v6917_v48  ;;  %v6915_v57 = vadd.f32 %v4198_v53, %v717_v41  ;;  %v6919_v58 = vadd.f32 %v4628_v54, %v725_v42  ;;  %v4200_v59 = vpop.f32.mrb[3].mxu0  ;;  %v4630_v60 = vpop.f32.mrb[3].mxu1 }
 0x392   :  { %v6693_v61 = vmul.f32 -1.442695, %v6914_v51  ;;  %v6695_v62 = vmul.f32 -1.442695, %v8525_v52  ;;  %v6916_v63 = vadd.f32 %v4200_v59, %v721_v43  ;;  %v6920_v0 = vadd.f32 %v4630_v60, %v729_v44  ;;  %v8046_v53 = vld [vmem:[#allocation8 + $0x24c] ss:$16 sps:$4 sm:$0xff]  }
 0x393   :  { %8157 = vpow2.f32 %v6692_v55  ;;  %v6696_v1 = vmul.f32 -1.442695, %v6915_v57  ;;  %v6698_v2 = vmul.f32 -1.442695, %v6919_v58  ;;  %v8041_v54 = vld [vmem:[#allocation8 + $0x240] ss:$16 sps:$4 sm:$0xff]  }
 0x394   :  { %8159 = vpow2.f32 %v6694_v56  ;;  %v6697_v3 = vmul.f32 -1.442695, %v6916_v63  ;;  %v6699_v4 = vmul.f32 -1.442695, %v6920_v0  ;;  %v8044_v55 = vld [vmem:[#allocation8 + $0x248] ss:$16 sps:$4 sm:$0xff]  }
 0x395   :  { %8161 = vpow2.f32 %v6693_v61  ;;  %v8049_v56 = vld [vmem:[#allocation8 + $0x264] ss:$16 sps:$4 sm:$0xff]   ;;  %v8050_v59 = vld [vmem:[#allocation8 + $0x268] ss:$16 sps:$4 sm:$0xff]   ;;  %v8058_v61 = vld [vmem:[#allocation8 + $0x28c] ss:$16 sps:$4 sm:$0xff]  }
 0x396   :  { %8163 = vpow2.f32 %v6695_v62  ;;  %v8055_v60 = vld [vmem:[#allocation8 + $0x284] ss:$16 sps:$4 sm:$0xff]   ;;  %v8053_v62 = vld [vmem:[#allocation8 + $0x280] ss:$16 sps:$4 sm:$0xff]  }
 0x397   :  { %8165 = vpow2.f32 %v6696_v1  ;;  %v8064_v1 = vld [vmem:[#allocation8 + $0x2ac] ss:$16 sps:$4 sm:$0xff]  }
 0x398   :  { %8167 = vpow2.f32 %v6698_v2  ;;  %v8059_v2 = vld [vmem:[#allocation8 + $0x2a0] ss:$16 sps:$4 sm:$0xff]  }
 0x399   :  { %8169 = vpow2.f32 %v6697_v3  ;;  %v8062_v3 = vld [vmem:[#allocation8 + $0x2a8] ss:$16 sps:$4 sm:$0xff]  }
 0x39a   :  { %8171 = vpow2.f32 %v6699_v4  ;;  %v8067_v4 = vld [vmem:[#allocation8 + $0x2c4] ss:$16 sps:$4 sm:$0xff]  }
 0x39d   :  { %v8158_v5 = vpop.eup %8157 }
 0x39e   :  { %v8160_v6 = vpop.eup %8159  ;;  %v4657_v7 = vadd.f32 1.0, %v8158_v5  ;;  %v8070_v5 = vld [vmem:[#allocation8 + $0x2cc] ss:$16 sps:$4 sm:$0xff]  }
 0x39f   :  { %v8162_v8 = vpop.eup %8161  ;;  %v4659_v9 = vadd.f32 1.0, %v8160_v6  ;;  %v8065_v6 = vld [vmem:[#allocation8 + $0x2c0] ss:$16 sps:$4 sm:$0xff]  }
 0x3a0   :  { %v8164_v10 = vpop.eup %8163  ;;  %8173 = vrcp.f32 %v4657_v7  ;;  %v4658_v11 = vadd.f32 1.0, %v8162_v8  ;;  %v8068_v7 = vld [vmem:[#allocation8 + $0x2c8] ss:$16 sps:$4 sm:$0xff]   ;;  %v8073_v8 = vld [vmem:[#allocation8 + $0x2e4] ss:$16 sps:$4 sm:$0xff]  }
 0x3a1   :  { %v8166_v12 = vpop.eup %8165  ;;  %8175 = vrcp.f32 %v4659_v9  ;;  %v4660_v13 = vadd.f32 1.0, %v8164_v10  ;;  %v8076_v9 = vld [vmem:[#allocation8 + $0x2ec] ss:$16 sps:$4 sm:$0xff]   ;;  %v8071_v10 = vld [vmem:[#allocation8 + $0x2e0] ss:$16 sps:$4 sm:$0xff]  }
 0x3a2   :  { %v8168_v14 = vpop.eup %8167  ;;  %8177 = vrcp.f32 %v4658_v11  ;;  %v4661_v15 = vadd.f32 1.0, %v8166_v12  ;;  %v8074_v11 = vld [vmem:[#allocation8 + $0x2e8] ss:$16 sps:$4 sm:$0xff]   ;;  %v8079_v12 = vld [vmem:[#allocation8 + $0x304] ss:$16 sps:$4 sm:$0xff]  }
 0x3a3   :  { %v8170_v16 = vpop.eup %8169  ;;  %8179 = vrcp.f32 %v4660_v13  ;;  %v4663_v17 = vadd.f32 1.0, %v8168_v14  ;;  %v8082_v13 = vld [vmem:[#allocation8 + $0x30c] ss:$16 sps:$4 sm:$0xff]   ;;  %v8077_v14 = vld [vmem:[#allocation8 + $0x300] ss:$16 sps:$4 sm:$0xff]  }
 0x3a4   :  { %v8172_v18 = vpop.eup %8171  ;;  %8181 = vrcp.f32 %v4661_v15  ;;  %v4662_v19 = vadd.f32 1.0, %v8170_v16  ;;  %v8080_v15 = vld [vmem:[#allocation8 + $0x308] ss:$16 sps:$4 sm:$0xff]   ;;  %v8085_v16 = vld [vmem:[#allocation8 + $0x324] ss:$16 sps:$4 sm:$0xff]  }
 0x3a5   :  { %8183 = vrcp.f32 %v4663_v17  ;;  %v4664_v20 = vadd.f32 1.0, %v8172_v18  ;;  %v8088_v17 = vld [vmem:[#allocation8 + $0x32c] ss:$16 sps:$4 sm:$0xff]   ;;  %v8083_v18 = vld [vmem:[#allocation8 + $0x320] ss:$16 sps:$4 sm:$0xff]  }
 0x3a6   :  { %8185 = vrcp.f32 %v4662_v19  ;;  %v8086_v19 = vld [vmem:[#allocation8 + $0x328] ss:$16 sps:$4 sm:$0xff]  }
 0x3a7   :  { %8187 = vrcp.f32 %v4664_v20  ;;  %v8091_v20 = vld [vmem:[#allocation8 + $0x344] ss:$16 sps:$4 sm:$0xff]  }
 0x3aa   :  { %v8174_v21 = vpop.eup %8173 }
 0x3ab   :  { %v8176_v22 = vpop.eup %8175  ;;  %v4681_v27 = vmul.f32 %v8174_v21, %v6913_v47  ;;  %v8037_v47 = vld [vmem:[#allocation8 + $0x224] ss:$16 sps:$4 sm:$0xff]   ;;  %v8094_v21 = vld [vmem:[#allocation8 + $0x34c] ss:$16 sps:$4 sm:$0xff]  }
 0x3ac   :  { %v8178_v23 = vpop.eup %8177  ;;  %v4683_v30 = vmul.f32 %v8176_v22, %v6917_v48  ;;  %v8035_v48 = vld [vmem:[#allocation8 + $0x220] ss:$16 sps:$4 sm:$0xff]  }
 0x3ad   :  { %v8180_v24 = vpop.eup %8179  ;;  %v4682_v33 = vmul.f32 %v8178_v23, %v6914_v51  ;;  %v8038_v51 = vld [vmem:[#allocation8 + $0x228] ss:$16 sps:$4 sm:$0xff]   ;;  %v8089_v22 = vld [vmem:[#allocation8 + $0x340] ss:$16 sps:$4 sm:$0xff]  }
 0x3ae   :  { %v8182_v25 = vpop.eup %8181  ;;  %v4684_v41 = vmul.f32 %v8180_v24, %v8525_v52  ;;  %v8043_v52 = vld [vmem:[#allocation8 + $0x244] ss:$16 sps:$4 sm:$0xff]   ;;  %v8092_v23 = vld [vmem:[#allocation8 + $0x348] ss:$16 sps:$4 sm:$0xff]  }
 0x3af   :  { %v8184_v26 = vpop.eup %8183  ;;  %v4685_v28 = vmul.f32 %v8182_v25, %v6915_v57  ;;  %v8052_v57 = vld [vmem:[#allocation8 + $0x26c] ss:$16 sps:$4 sm:$0xff]   ;;  %v8097_v24 = vld [vmem:[#allocation8 + $0x364] ss:$16 sps:$4 sm:$0xff]  }
 0x3b0   :  { %v8186_v29 = vpop.eup %8185  ;;  %v4687_v31 = vmul.f32 %v8184_v26, %v6919_v58  ;;  %v8047_v58 = vld [vmem:[#allocation8 + $0x260] ss:$16 sps:$4 sm:$0xff]   ;;  %v8100_v25 = vld [vmem:[#allocation8 + $0x36c] ss:$16 sps:$4 sm:$0xff]  }
 0x3b1   :  { %v8188_v32 = vpop.eup %8187  ;;  %v4689_v34 = vpack.c.bf16 %v4685_v28, %v4681_v27  ;;  %v4686_v38 = vmul.f32 %v8186_v29, %v6916_v63  ;;  %v8056_v63 = vld [vmem:[#allocation8 + $0x288] ss:$16 sps:$4 sm:$0xff]   ;;  %v8095_v26 = vld [vmem:[#allocation8 + $0x360] ss:$16 sps:$4 sm:$0xff]   ;;  %v8103_v28 = vld [vmem:[#allocation8 + $0x384] ss:$16 sps:$4 sm:$0xff]  }
 0x3b2   :  { %v8529_v42 = vpack.c.bf16 %v4687_v31, %v4683_v30  ;;  %v4688_v43 = vmul.f32 %v8188_v32, %v6920_v0  ;;  %v8061_v0 = vld [vmem:[#allocation8 + $0x2a4] ss:$16 sps:$4 sm:$0xff]   ;;  %v8098_v27 = vld [vmem:[#allocation8 + $0x368] ss:$16 sps:$4 sm:$0xff]   ;;  %v8106_v29 = vld [vmem:[#allocation8 + $0x38c] ss:$16 sps:$4 sm:$0xff]  }
 0x3b3   :  { %v4690_v44 = vpack.c.bf16 %v4686_v38, %v4682_v33  ;;  %v8101_v30 = vld [vmem:[#allocation8 + $0x380] ss:$16 sps:$4 sm:$0xff]   ;;  %v8104_v31 = vld [vmem:[#allocation8 + $0x388] ss:$16 sps:$4 sm:$0xff]   ;;  %v8109_v32 = vld [vmem:[#allocation8 + $0x3a4] ss:$16 sps:$4 sm:$0xff]  }
 0x3b4   :  { %v4692_v49 = vpack.c.bf16 %v4688_v43, %v4684_v41  ;;  %v8112_v33 = vld [vmem:[#allocation8 + $0x3ac] ss:$16 sps:$4 sm:$0xff]   ;;  %v8110_v38 = vld [vmem:[#allocation8 + $0x3a8] ss:$16 sps:$4 sm:$0xff]   ;;  %v8115_v41 = vld [vmem:[#allocation8 + $0x3c4] ss:$16 sps:$4 sm:$0xff]  }
 0x3b5   :  { %5515 = vmatprep.mubr.bf16.mxu0 %v4690_v44  ;;  %5601 = vmatprep.mubr.bf16.mxu1 %v4690_v44  ;;  %v8118_v43 = vld [vmem:[#allocation8 + $0x3cc] ss:$16 sps:$4 sm:$0xff]   ;;  %v8113_v44 = vld [vmem:[#allocation8 + $0x3c0] ss:$16 sps:$4 sm:$0xff]  }
 0x3b6   :  { %5516 = vmatmul.mubr.bf16.vlgmr.msra.gmra.mrb[4].mxu0 %v4689_v34  ;;  %5602 = vmatmul.mubr.bf16.vlgmr.msra.gmra.mrb[4].mxu1 %v4689_v34  ;;  %v8107_v34 = vld [vmem:[#allocation8 + $0x3a0] ss:$16 sps:$4 sm:$0xff]  }
 0x3b7   :  { %5527 = vmatpush1.bf16.msra.mxu0 %v8029_v45  ;;  %5613 = vmatpush1.bf16.msra.mxu1 %v8032_v46  ;;  %v8116_v45 = vld [vmem:[#allocation8 + $0x3c8] ss:$16 sps:$4 sm:$0xff]   ;;  %v8121_v46 = vld [vmem:[#allocation8 + $0x3e4] ss:$16 sps:$4 sm:$0xff]  }
 0x3b8   :  { %5558 = vmatprep.mubr.bf16.mxu0 %v4692_v49  ;;  %5644 = vmatprep.mubr.bf16.mxu1 %v4692_v49  ;;  %v8124_v49 = vld [vmem:[#allocation8 + $0x3ec] ss:$16 sps:$4 sm:$0xff]  }
 0x3b9   :  { %5528 = vmatprep.subr.bf16.mxu0 %v8037_v47  ;;  %5614 = vmatprep.subr.bf16.mxu1 %v8040_v50  ;;  %v8119_v47 = vld [vmem:[#allocation8 + $0x3e0] ss:$16 sps:$4 sm:$0xff]   ;;  %v8122_v50 = vld [vmem:[#allocation8 + $0x3e8] ss:$16 sps:$4 sm:$0xff]  }
 0x3bb   :  { %5529 = vmatpush1.bf16.msra.mxu0 %v8035_v48  ;;  %5615 = vmatpush1.bf16.msra.mxu1 %v8038_v51  ;;  %v8125_v48 = vld [vmem:[%s8658_s5 + $0x40] sm:$0xff]  }
 0x3bc   :  { %5530 = vmatprep.subr.bf16.mxu0 %v8043_v52  ;;  %5616 = vmatprep.subr.bf16.mxu1 %v8046_v53  ;;  %v8126_v51 = vld [vmem:[%s8658_s5 + $0xc0] sm:$0xff]  }
 0x3bd   :  { %v8127_v52 = vld [vmem:[%s8658_s5] sm:$0xff]  }
 0x3be   :  { %v8128_v53 = vld [vmem:[%s8658_s5 + $0x80] sm:$0xff]  }
 0x3bf   :  { %5531 = vmatpush1.bf16.msra.mxu0 %v8041_v54  ;;  %5617 = vmatpush1.bf16.msra.mxu1 %v8044_v55  ;;  %v8130_v54 = vld [vmem:[%s8658_s5 + $0xc8] sm:$0xff]  }
 0x3c0   :  { %5532 = vmatprep.subr.bf16.mxu0 %v8049_v56  ;;  %5618 = vmatprep.subr.bf16.mxu1 %v8052_v57  ;;  %v8131_v55 = vld [vmem:[%s8658_s5 + $0x8] sm:$0xff]   ;;  %v8133_v57 = vld [vmem:[%s8658_s5 + $0x50] sm:$0xff]  }
 0x3c1   :  { %v8132_v56 = vld [vmem:[%s8658_s5 + $0x88] sm:$0xff]  }
 0x3c3   :  { %5533 = vmatpush1.bf16.msra.mxu0 %v8047_v58  ;;  %5619 = vmatpush1.bf16.msra.mxu1 %v8050_v59  ;;  %v8134_v58 = vld [vmem:[%s8658_s5 + $0xd0] sm:$0xff]  }
 0x3c4   :  { %5534 = vmatprep.subr.bf16.mxu0 %v8055_v60  ;;  %5620 = vmatprep.subr.bf16.mxu1 %v8058_v61  ;;  %v8135_v59 = vld [vmem:[%s8658_s5 + $0x10] sm:$0xff]   ;;  %v8137_v61 = vld [vmem:[%s8658_s5 + $0x58] sm:$0xff]  }
 0x3c5   :  { %v8136_v60 = vld [vmem:[%s8658_s5 + $0x90] sm:$0xff]  }
 0x3c7   :  { %5535 = vmatpush1.bf16.msra.mxu0 %v8053_v62  ;;  %5621 = vmatpush1.bf16.msra.mxu1 %v8056_v63  ;;  %v8138_v62 = vld [vmem:[%s8658_s5 + $0xd8] sm:$0xff]  }
 0x3c8   :  { %5536 = vmatprep.subr.bf16.mxu0 %v8061_v0  ;;  %5622 = vmatprep.subr.bf16.mxu1 %v8064_v1  ;;  %v8139_v63 = vld [vmem:[%s8658_s5 + $0x18] sm:$0xff]   ;;  %v8141_v1 = vld [vmem:[%s8658_s5 + $0x60] sm:$0xff]  }
 0x3c9   :  { %v8140_v0 = vld [vmem:[%s8658_s5 + $0x98] sm:$0xff]  }
 0x3cb   :  { %5537 = vmatpush1.bf16.msra.mxu0 %v8059_v2  ;;  %5623 = vmatpush1.bf16.msra.mxu1 %v8062_v3  ;;  %v8142_v2 = vld [vmem:[%s8658_s5 + $0xe0] sm:$0xff]  }
 0x3cc   :  { %5538 = vmatprep.subr.bf16.mxu0 %v8067_v4  ;;  %5624 = vmatprep.subr.bf16.mxu1 %v8070_v5  ;;  %v8143_v3 = vld [vmem:[%s8658_s5 + $0x20] sm:$0xff]   ;;  %v8145_v5 = vld [vmem:[%s8658_s5 + $0x68] sm:$0xff]  }
 0x3cd   :  { %v8144_v4 = vld [vmem:[%s8658_s5 + $0xa0] sm:$0xff]  }
 0x3cf   :  { %5539 = vmatpush1.bf16.msra.mxu0 %v8065_v6  ;;  %5625 = vmatpush1.bf16.msra.mxu1 %v8068_v7  ;;  %v8146_v6 = vld [vmem:[%s8658_s5 + $0xe8] sm:$0xff]  }
 0x3d0   :  { %5540 = vmatprep.subr.bf16.mxu0 %v8073_v8  ;;  %5626 = vmatprep.subr.bf16.mxu1 %v8076_v9  ;;  %v8147_v7 = vld [vmem:[%s8658_s5 + $0x28] sm:$0xff]   ;;  %v8149_v9 = vld [vmem:[%s8658_s5 + $0x70] sm:$0xff]  }
 0x3d1   :  { %v8148_v8 = vld [vmem:[%s8658_s5 + $0xa8] sm:$0xff]  }
 0x3d3   :  { %5541 = vmatpush1.bf16.msra.mxu0 %v8071_v10  ;;  %5627 = vmatpush1.bf16.msra.mxu1 %v8074_v11  ;;  %v8150_v10 = vld [vmem:[%s8658_s5 + $0xf0] sm:$0xff]  }
 0x3d4   :  { %5542 = vmatprep.subr.bf16.mxu0 %v8079_v12  ;;  %5628 = vmatprep.subr.bf16.mxu1 %v8082_v13  ;;  %v8151_v11 = vld [vmem:[%s8658_s5 + $0x30] sm:$0xff]   ;;  %v8153_v13 = vld [vmem:[%s8658_s5 + $0x78] sm:$0xff]  }
 0x3d5   :  { %v8152_v12 = vld [vmem:[%s8658_s5 + $0xb0] sm:$0xff]  }
 0x3d7   :  { %5543 = vmatpush1.bf16.msra.mxu0 %v8077_v14  ;;  %5629 = vmatpush1.bf16.msra.mxu1 %v8080_v15  ;;  %v8154_v14 = vld [vmem:[%s8658_s5 + $0xf8] sm:$0xff]  }
 0x3d8   :  { %5544 = vmatprep.subr.bf16.mxu0 %v8085_v16  ;;  %5630 = vmatprep.subr.bf16.mxu1 %v8088_v17  ;;  %v8155_v15 = vld [vmem:[%s8658_s5 + $0x38] sm:$0xff]  }
 0x3d9   :  { %v8156_v16 = vld [vmem:[%s8658_s5 + $0xb8] sm:$0xff]  }
 0x3da   :  { %v4821_v17 = vld [vmem:[#allocation10] sm:$0xf] }
 0x3db   :  { %5545 = vmatpush1.bf16.msra.mxu0 %v8083_v18  ;;  %5631 = vmatpush1.bf16.msra.mxu1 %v8086_v19  ;;  %v4826_v18 = vrot.slane %v4821_v17, %v716_v36  ;;  %v4834_v19 = vrot.slane %v4821_v17, %v724_v37 }
 0x3dc   :  { %5546 = vmatprep.subr.bf16.mxu0 %v8091_v20  ;;  %5632 = vmatprep.subr.bf16.mxu1 %v8094_v21  ;;  %v4830_v20 = vrot.slane %v4821_v17, %v720_v39  ;;  %v4838_v21 = vrot.slane %v4821_v17, %v728_v40 }
 0x3df   :  { %5547 = vmatpush1.bf16.msra.mxu0 %v8089_v22  ;;  %5633 = vmatpush1.bf16.msra.mxu1 %v8092_v23 }
 0x3e0   :  { %5548 = vmatprep.subr.bf16.mxu0 %v8097_v24  ;;  %5634 = vmatprep.subr.bf16.mxu1 %v8100_v25 }
 0x3e3   :  { %5549 = vmatpush1.bf16.msra.mxu0 %v8095_v26  ;;  %5635 = vmatpush1.bf16.msra.mxu1 %v8098_v27 }
 0x3e4   :  { %5550 = vmatprep.subr.bf16.mxu0 %v8103_v28  ;;  %5636 = vmatprep.subr.bf16.mxu1 %v8106_v29 }
 0x3e7   :  { %5551 = vmatpush1.bf16.msra.mxu0 %v8101_v30  ;;  %5637 = vmatpush1.bf16.msra.mxu1 %v8104_v31 }
 0x3e8   :  { %5552 = vmatprep.subr.bf16.mxu0 %v8109_v32  ;;  %5638 = vmatprep.subr.bf16.mxu1 %v8112_v33 }
 0x3eb   :  { %5553 = vmatpush1.bf16.msra.mxu0 %v8107_v34  ;;  %5639 = vmatpush1.bf16.msra.mxu1 %v8110_v38 }
 0x3ec   :  { %5554 = vmatprep.subr.bf16.mxu0 %v8115_v41  ;;  %5640 = vmatprep.subr.bf16.mxu1 %v8118_v43 }
 0x3ef   :  { %5555 = vmatpush1.bf16.msra.mxu0 %v8113_v44  ;;  %5641 = vmatpush1.bf16.msra.mxu1 %v8116_v45 }
 0x3f0   :  { %5556 = vmatprep.subr.bf16.mxu0 %v8121_v46  ;;  %5642 = vmatprep.subr.bf16.mxu1 %v8124_v49 }
 0x3f3   :  { %5557 = vmatpush1.bf16.msra.mxu0 %v8119_v47  ;;  %5643 = vmatpush1.bf16.msra.mxu1 %v8122_v50 }
 0x3f4   :  { %6869 = vmatprep.subr.bf16.mxu0 %v8125_v48  ;;  %6891 = vmatprep.subr.bf16.mxu1 %v8126_v51 }
 0x3f6   :  { %5559 = vmatmul.mubr.bf16.vlgmr.msra.gmra.mrb[4].mxu0 %v8529_v42  ;;  %5645 = vmatmul.mubr.bf16.vlgmr.msra.gmra.mrb[4].mxu1 %v8529_v42  ;;  %v8129_v42 = vld [vmem:[%s8658_s5 + $0x48] sm:$0xff]   ;;  %s8396_s5 = smov [#allocation13]  }
 0x3f7   :  { %6870 = vmatpush3.bf16.msra.mxu0 %v8127_v52  ;;  %6892 = vmatpush3.bf16.msra.mxu1 %v8128_v53  ;;  %s6068_s28 = sshll.u32 %s8396_s5, 4  ;;  %s6069_s28 = int_to_ptr.vmem [resolvable:$true] %s6068_s28 }
 0x3f8   :  { %6871 = vmatprep.subr.bf16.mxu0 %v8129_v42  ;;  %6893 = vmatprep.subr.bf16.mxu1 %v8130_v54  ;;  %s8353_s29 = scalar_lea.vmem %s6069_s28, 256  ;;  %p8358_p7 = scmp.lt.s32.totalorder %s6069_s28, %s6069_s28 }
 0x3f9   :  { %p8354_p6 = scmp.ne.s32.totalorder %s6069_s28, %s8353_s29  ;;  %p8359_p8 = scmp.lt.s32.totalorder %s8353_s29, %s8353_s29 }
 0x3fb   :  { %6872 = vmatpush3.bf16.msra.mxu0 %v8131_v55  ;;  %6894 = vmatpush3.bf16.msra.mxu1 %v8132_v56  ;;  %p8360_p9 = por %p8359_p8, %p8358_p7 }
 0x3fc   :  { %6873 = vmatprep.subr.bf16.mxu0 %v8133_v57  ;;  %6895 = vmatprep.subr.bf16.mxu1 %v8134_v58 }
 0x3fd   :  { %p8361_p10 = pnand %p8360_p9, %p8354_p6 }
 0x3ff   :  { %6874 = vmatpush3.bf16.msra.mxu0 %v8135_v59  ;;  %6896 = vmatpush3.bf16.msra.mxu1 %v8136_v60 }
 0x400   :  { %6875 = vmatprep.subr.bf16.mxu0 %v8137_v61  ;;  %6897 = vmatprep.subr.bf16.mxu1 %v8138_v62 }
 0x403   :  { %6876 = vmatpush3.bf16.msra.mxu0 %v8139_v63  ;;  %6898 = vmatpush3.bf16.msra.mxu1 %v8140_v0 }
 0x404   :  { %6877 = vmatprep.subr.bf16.mxu0 %v8141_v1  ;;  %6899 = vmatprep.subr.bf16.mxu1 %v8142_v2 }
 0x407   :  { %6878 = vmatpush3.bf16.msra.mxu0 %v8143_v3  ;;  %6900 = vmatpush3.bf16.msra.mxu1 %v8144_v4 }
 0x408   :  { %6879 = vmatprep.subr.bf16.mxu0 %v8145_v5  ;;  %6901 = vmatprep.subr.bf16.mxu1 %v8146_v6 }
 0x40b   :  { %6880 = vmatpush3.bf16.msra.mxu0 %v8147_v7  ;;  %6902 = vmatpush3.bf16.msra.mxu1 %v8148_v8 }
 0x40c   :  { %6881 = vmatprep.subr.bf16.mxu0 %v8149_v9  ;;  %6903 = vmatprep.subr.bf16.mxu1 %v8150_v10 }
 0x40f   :  { %6882 = vmatpush3.bf16.msra.mxu0 %v8151_v11  ;;  %6904 = vmatpush3.bf16.msra.mxu1 %v8152_v12 }
 0x410   :  { %6883 = vmatprep.subr.bf16.mxu0 %v8153_v13  ;;  %6905 = vmatprep.subr.bf16.mxu1 %v8154_v14 }
 0x413   :  { %6884 = vmatpush3.bf16.msra.mxu0 %v8155_v15  ;;  %6906 = vmatpush3.bf16.msra.mxu1 %v8156_v16 }
 0x4c9   :  { %v5560_v22 = vpop.f32.mrb[4].mxu0  ;;  %v5646_v23 = vpop.f32.mrb[4].mxu1 }
 0x4ca   :  { %v6921_v24 = vadd.f32 %v5560_v22, %v4826_v18  ;;  %v6925_v25 = vadd.f32 %v5646_v23, %v4834_v19  ;;  %v5562_v26 = vpop.f32.mrb[5].mxu0  ;;  %v5648_v27 = vpop.f32.mrb[5].mxu1 }
 0x4cb   :  { %v6922_v28 = vadd.f32 %v5562_v26, %v4830_v20  ;;  %v8637_v29 = vadd.f32 %v5648_v27, %v4838_v21  ;;  %v5564_v30 = vpop.f32.mrb[6].mxu0  ;;  %v5650_v36 = vpop.f32.mrb[6].mxu1 }
 0x4cc   :  { %v6828_v31 = vmul.f32 -1.442695, %v6921_v24  ;;  %v6830_v32 = vmul.f32 -1.442695, %v6925_v25  ;;  %v6923_v37 = vadd.f32 %v5564_v30, %v4826_v18  ;;  %v6927_v33 = vadd.f32 %v5650_v36, %v4834_v19  ;;  %v5566_v34 = vpop.f32.mrb[7].mxu0  ;;  %v5652_v39 = vpop.f32.mrb[7].mxu1 }
 0x4cd   :  { %v6829_v38 = vmul.f32 -1.442695, %v6922_v28  ;;  %v6831_v35 = vmul.f32 -1.442695, %v8637_v29  ;;  %v6924_v40 = vadd.f32 %v5566_v34, %v4830_v20  ;;  %v6928_v41 = vadd.f32 %v5652_v39, %v4838_v21  ;;  %v6836_v20 = vld [vmem:[#allocation11] ss:$0 sm:$0xff] }
 0x4ce   :  { %8189 = vpow2.f32 %v6828_v31  ;;  %v6832_v43 = vmul.f32 -1.442695, %v6923_v37  ;;  %v6834_v44 = vmul.f32 -1.442695, %v6927_v33 }
 0x4cf   :  { %8191 = vpow2.f32 %v6830_v32  ;;  %v6833_v45 = vmul.f32 -1.442695, %v6924_v40  ;;  %v6835_v46 = vmul.f32 -1.442695, %v6928_v41 }
 0x4d0   :  { %8193 = vpow2.f32 %v6829_v38 }
 0x4d1   :  { %8195 = vpow2.f32 %v6831_v35 }
 0x4d2   :  { %8197 = vpow2.f32 %v6832_v43 }
 0x4d3   :  { %8199 = vpow2.f32 %v6834_v44 }
 0x4d4   :  { %8201 = vpow2.f32 %v6833_v45 }
 0x4d5   :  { %8203 = vpow2.f32 %v6835_v46 }
 0x4d8   :  { %v8190_v49 = vpop.eup %8189 }
 0x4d9   :  { %v8192_v47 = vpop.eup %8191  ;;  %v5679_v50 = vadd.f32 1.0, %v8190_v49 }
 0x4da   :  { %v8194_v48 = vpop.eup %8193  ;;  %v5681_v51 = vadd.f32 1.0, %v8192_v47 }
 0x4db   :  { %v8196_v52 = vpop.eup %8195  ;;  %8205 = vrcp.f32 %v5679_v50  ;;  %v5680_v53 = vadd.f32 1.0, %v8194_v48 }
 0x4dc   :  { %v8198_v42 = vpop.eup %8197  ;;  %8207 = vrcp.f32 %v5681_v51  ;;  %v5682_v54 = vadd.f32 1.0, %v8196_v52 }
 0x4dd   :  { %v8200_v55 = vpop.eup %8199  ;;  %8209 = vrcp.f32 %v5680_v53  ;;  %v5683_v56 = vadd.f32 1.0, %v8198_v42 }
 0x4de   :  { %v8202_v57 = vpop.eup %8201  ;;  %8211 = vrcp.f32 %v5682_v54  ;;  %v5685_v58 = vadd.f32 1.0, %v8200_v55 }
 0x4df   :  { %v8204_v59 = vpop.eup %8203  ;;  %8213 = vrcp.f32 %v5683_v56  ;;  %v5684_v60 = vadd.f32 1.0, %v8202_v57 }
 0x4e0   :  { %8215 = vrcp.f32 %v5685_v58  ;;  %v5686_v61 = vadd.f32 1.0, %v8204_v59 }
 0x4e1   :  { %8217 = vrcp.f32 %v5684_v60 }
 0x4e2   :  { %8219 = vrcp.f32 %v5686_v61 }
 0x4e5   :  { %v8206_v62 = vpop.eup %8205 }
 0x4e6   :  { %v8208_v63 = vpop.eup %8207  ;;  %v5703_v4 = vmul.f32 %v8206_v62, %v6921_v24 }
 0x4e7   :  { %v8210_v0 = vpop.eup %8209  ;;  %v5705_v7 = vmul.f32 %v8208_v63, %v6925_v25 }
 0x4e8   :  { %v8212_v1 = vpop.eup %8211  ;;  %v5704_v10 = vmul.f32 %v8210_v0, %v6922_v28 }
 0x4e9   :  { %v8214_v2 = vpop.eup %8213  ;;  %v5706_v13 = vmul.f32 %v8212_v1, %v8637_v29 }
 0x4ea   :  { %v8216_v3 = vpop.eup %8215  ;;  %v5707_v5 = vmul.f32 %v8214_v2, %v6923_v37 }
 0x4eb   :  { %v8218_v6 = vpop.eup %8217  ;;  %v5709_v8 = vmul.f32 %v8216_v3, %v6927_v33 }
 0x4ec   :  { %v8220_v9 = vpop.eup %8219  ;;  %v5711_v11 = vpack.c.bf16 %v5707_v5, %v5703_v4  ;;  %v5708_v12 = vmul.f32 %v8218_v6, %v6924_v40 }
 0x4ed   :  { %v5713_v14 = vpack.c.bf16 %v5709_v8, %v5705_v7  ;;  %v5710_v15 = vmul.f32 %v8220_v9, %v6928_v41 }
 0x4ee   :  { %v5712_v16 = vpack.c.bf16 %v5708_v12, %v5704_v10 }
 0x4ef   :  { %v5714_v17 = vpack.c.bf16 %v5710_v15, %v5706_v13 }
 0x4f0   :  { %6010 = vmatprep.mubr.bf16.mxu0 %v5712_v16 }
 0x4f1   :  { %6051 = vmatprep.mubr.bf16.mxu1 %v5714_v17  ;;  %6011 = vmatmul.mubr.bf16.vlgmr.msra.gmra.mrb[8].mxu0 %v5711_v11 }
 0x4f2   :  { %6052 = vmatmul.mubr.bf16.vlgmr.msra.gmra.mrb[8].mxu1 %v5713_v14 }
 0x5c4   :  { %v6885_v18 = vpop.f32.mrb[8].mxu0 }
 0x5c5   :  { %v6907_v19 = vpop.f32.mrb[8].mxu1  ;;  %v6886_v21 = vpop.f32.mrb[9].mxu0 }
 0x5c6   :  { %v6887_v22 = vadd.f32 %v6886_v21, %v6885_v18  ;;  %v6908_v23 = vpop.f32.mrb[9].mxu1  ;;  %v6888_v24 = vpop.f32.mrb[10].mxu0 }
 0x5c7   :  { %v6909_v25 = vadd.f32 %v6908_v23, %v6907_v19  ;;  %v6910_v26 = vpop.f32.mrb[10].mxu1  ;;  %v6889_v27 = vpop.f32.mrb[11].mxu0 }
 0x5c8   :  { %v6013_v28 = vadd.f32 %v6887_v22, %v6836_v20  ;;  %v6890_v29 = vadd.f32 %v6889_v27, %v6888_v24  ;;  %v6911_v30 = vpop.f32.mrb[11].mxu1 }
 0x5c9   :  { %v6912_v36 = vadd.f32 %v6911_v30, %v6910_v26 }
 0x5ca   :  { %v6054_v31 = vadd.f32 %v6909_v25, %v6013_v28  ;;  %v6016_v32 = vadd.f32 %v6890_v29, %v6836_v20 }
 0x5cc   :  { %6061 = vst.msk [vmem:[#allocation13] sm:$0xff] %vm6060_vm1, %v6054_v31  ;;  %v6057_v37 = vadd.f32 %v6912_v36, %v6016_v32 }
 0x5ce   :  { %6062 = vst.msk [vmem:[#allocation13 + $0x8] sm:$0xff] %vm6060_vm1, %v6057_v37 }
 0x5cf   :  { %8364 = shalt.err (!%p8361_p10)
}
 0x5d0   :  { %s8365_s9 = scalar_lea.hbm %s8660_s7, 256 }
 0x5d1   :  { %p8366_p11 = scmp.ne.s32.totalorder %s8660_s7, %s8365_s9  ;;  %p8369_p12 = scmp.lt.u32.totalorder %s8365_s9, %s8660_s7 }
 0x5d3   :  { %p8371_p13 = pnand %p8369_p12, %p8366_p11 }
 0x5d5   :  { %8374 = shalt.err (!%p8371_p13)
}
 0x5d6   :  { %s8397_s3 = smov 128   ;;  %s8398_s11 = smov 8  }
 0x5d7   :  { %6074 = dma.vmem_to_hbm [thread:$0]  %s6069_s28, 256, %s8660_s7, [#allocation4], %s8397_s3, %s8397_s3, %s8398_s11  }
 0x5d8   :  { %8383 = dma.done.wait [#allocation4], 256  }
 0x5d9   :  { %8384 = vsyncadd [#allocation4], 4294967040 }
 0x5da   :  { %6078 = vsyncpa [#allocation3], 1 }
 0x5db   :  { %6079 = vsyncpa [#allocation6], 1 }
 0x5dc   :  { %6080 = vsyncpa [#allocation9], 1 }
 0x5dd   :  { %6081 = vsyncpa [#allocation12], 1 }
 0x5de   :  { %6082 = vsyncpa [#allocation4], 1 }

</bundles_post_ra>
